<compile_context>
chip_gen: v5e
topology: v5e:2x2
jax: 0.10.0
libtpu: 0.0.40
codegen_flags: <defaults>
</compile_context>

<pallas_src>
import numpy as np
import jax
import jax.numpy as jnp
from jax.experimental import pallas as pl
from jax.experimental.pallas import tpu as pltpu

INPUT_SIZE = 5
HIDDEN = 128
FFN = 2048          # TransformerEncoderLayer default dim_feedforward
NLAYERS = 2
FC1 = 64
OUT = 2
OUT_PAD = 128       # lane-dense padded output width
EPS = 1e-5          # nn.LayerNorm default eps


def _cdiv(a, b):
    return -(-a // b)


def _round_up(n, m):
    return ((n + m - 1) // m) * m


def hybrid_kernel(x_ref, w_ih_t_ref, b_lstm_ref,
                  attn_w_ref, attn_b_ref,
                  ff1_w_ref, ff1_b_ref, ff2_w_ref, ff2_b_ref,
                  n1_g_ref, n1_b_ref, n2_g_ref, n2_b_ref,
                  fc1_w_ref, fc1_b_ref, fc2_w_ref, fc2_b_ref,
                  out_ref):
    H = HIDDEN
    x = x_ref[...]                                                    # (tb, 5)

    # ---- LSTM, single time step, h0 = c0 = 0; forget gate already removed ----
    # weight columns are [input | cell(g) | output] gates -> (5, 3H)
    gates = jnp.dot(x, w_ih_t_ref[...],
                    preferred_element_type=jnp.float32) + b_lstm_ref[...]
    i_g = jax.nn.sigmoid(gates[:, 0 * H:1 * H])
    g_g = jnp.tanh(gates[:, 1 * H:2 * H])
    o_g = jax.nn.sigmoid(gates[:, 2 * H:3 * H])
    c = i_g * g_g
    h = o_g * jnp.tanh(c)                                             # (tb, 128)

    def layer_norm(v, gamma, beta):
        mu = jnp.mean(v, axis=-1, keepdims=True)
        var = jnp.mean((v - mu) * (v - mu), axis=-1, keepdims=True)
        return (v - mu) * jax.lax.rsqrt(var + EPS) * gamma + beta

    # ---- 2 post-norm TransformerEncoder layers (eval: dropout = identity) ----
    # seq_len == 1 => softmax over one key is 1 => attention is affine and has been
    # fused into a single (128,128) bf16 matmul per layer. Accumulate in f32.
    y = h
    for l in range(NLAYERS):
        attn = jnp.dot(y.astype(jnp.bfloat16), attn_w_ref[l],
                       preferred_element_type=jnp.float32) + attn_b_ref[l]
        y = layer_norm(y + attn, n1_g_ref[l], n1_b_ref[l])
        ff = jnp.dot(y.astype(jnp.bfloat16), ff1_w_ref[l],
                     preferred_element_type=jnp.float32) + ff1_b_ref[l]
        ff = jnp.maximum(ff, 0.0)
        ff = jnp.dot(ff.astype(jnp.bfloat16), ff2_w_ref[l],
                     preferred_element_type=jnp.float32) + ff2_b_ref[l]
        y = layer_norm(y + ff, n2_g_ref[l], n2_b_ref[l])

    # mean over seq dim of size 1 is identity; nn.Dropout in eval is identity.
    z = jnp.dot(y, fc1_w_ref[...],
                preferred_element_type=jnp.float32) + fc1_b_ref[...]
    z = jnp.maximum(z, 0.0)                                           # relu(fc1)
    # fc2 is zero-padded to 128 lanes -> unmasked, lane-dense store.
    out_ref[...] = jnp.dot(z, fc2_w_ref[...],
                           preferred_element_type=jnp.float32) + fc2_b_ref[...]


# ---------------------------------------------------------------------------
# Parameter construction (deterministic, PyTorch-layout shapes).
# ---------------------------------------------------------------------------
def init_params(key):
    ks = iter(jax.random.split(key, 64))

    def u(shape, fan_in):
        b = 1.0 / np.sqrt(fan_in)
        return jax.random.uniform(next(ks), shape, jnp.float32, -b, b)

    p = {}
    p["w_ih"] = u((4 * HIDDEN, INPUT_SIZE), HIDDEN)
    p["w_hh"] = u((4 * HIDDEN, HIDDEN), HIDDEN)   # present in the module; unused since h0 = 0
    p["b_ih"] = u((4 * HIDDEN,), HIDDEN)
    p["b_hh"] = u((4 * HIDDEN,), HIDDEN)
    for l in range(NLAYERS):
        p[f"in_proj_w_{l}"] = u((3 * HIDDEN, HIDDEN), HIDDEN)
        p[f"in_proj_b_{l}"] = u((3 * HIDDEN,), HIDDEN)
        p[f"out_proj_w_{l}"] = u((HIDDEN, HIDDEN), HIDDEN)
        p[f"out_proj_b_{l}"] = u((HIDDEN,), HIDDEN)
        p[f"lin1_w_{l}"] = u((FFN, HIDDEN), HIDDEN)
        p[f"lin1_b_{l}"] = u((FFN,), HIDDEN)
        p[f"lin2_w_{l}"] = u((HIDDEN, FFN), FFN)
        p[f"lin2_b_{l}"] = u((HIDDEN,), FFN)
        p[f"n1_g_{l}"] = jnp.ones((HIDDEN,), jnp.float32)
        p[f"n1_b_{l}"] = jnp.zeros((HIDDEN,), jnp.float32)
        p[f"n2_g_{l}"] = jnp.ones((HIDDEN,), jnp.float32)
        p[f"n2_b_{l}"] = jnp.zeros((HIDDEN,), jnp.float32)
    p["fc1_w"] = u((FC1, HIDDEN), HIDDEN)
    p["fc1_b"] = u((FC1,), HIDDEN)
    p["fc2_w"] = u((OUT, FC1), FC1)
    p["fc2_b"] = u((OUT,), FC1)
    return p


def _prepare_args(x, p):
    """Plain-JAX glue (runs once under jit): transpose to (in, out), drop the dead
    forget gate, fuse the attention V/out projections in f32, cast the big weights
    to bf16, stack the 2 encoder layers, 2-D biases, lane-pad fc2 to 128 outputs."""
    H, L = HIDDEN, NLAYERS
    bf16 = jnp.bfloat16
    hi = jax.lax.Precision.HIGHEST

    # LSTM: keep only input / cell / output gate blocks (forget gate hits c0 == 0).
    w_ih = p["w_ih"]                                   # (4H, 5), rows = [i | f | g | o]
    b = p["b_ih"] + p["b_hh"]                          # (4H,)
    w_keep = jnp.concatenate([w_ih[0:H], w_ih[2 * H:4 * H]], axis=0)   # (3H, 5) = [i | g | o]
    b_keep = jnp.concatenate([b[0:H], b[2 * H:4 * H]])                 # (3H,)

    # Fused (seq_len == 1) attention:  attn = y @ (Wv^T Wo^T) + (bv Wo^T + bo).
    attn_w, attn_b = [], []
    for l in range(L):
        Wv = p[f"in_proj_w_{l}"][2 * H:3 * H]          # (H, H)
        bv = p[f"in_proj_b_{l}"][2 * H:3 * H]
        Wo = p[f"out_proj_w_{l}"]                      # (H, H)
        bo = p[f"out_proj_b_{l}"]
        A = jnp.dot(Wv.T, Wo.T, precision=hi)          # f32 product, then bf16 cast
        attn_w.append(A)
        attn_b.append((jnp.dot(bv, Wo.T, precision=hi) + bo).reshape(1, H))

    # Lane-dense output head: pad fc2 to 128 output lanes with zeros.
    fc2_w_pad = jnp.zeros((FC1, OUT_PAD), jnp.float32).at[:, :OUT].set(p["fc2_w"].T)
    fc2_b_pad = jnp.zeros((1, OUT_PAD), jnp.float32).at[0, :OUT].set(p["fc2_b"])

    return [
        x,
        w_keep.T,                                                      # (5, 384) f32
        b_keep.reshape(1, 3 * H),                                      # (1, 384) f32
        jnp.stack(attn_w).astype(bf16),                                # (2, 128, 128) bf16
        jnp.stack(attn_b),                                             # (2, 1, 128) f32
        jnp.stack([p[f"lin1_w_{l}"].T for l in range(L)]).astype(bf16),   # (2, 128, 2048)
        jnp.stack([p[f"lin1_b_{l}"].reshape(1, FFN) for l in range(L)]),
        jnp.stack([p[f"lin2_w_{l}"].T for l in range(L)]).astype(bf16),   # (2, 2048, 128)
        jnp.stack([p[f"lin2_b_{l}"].reshape(1, H) for l in range(L)]),
        jnp.stack([p[f"n1_g_{l}"].reshape(1, H) for l in range(L)]),
        jnp.stack([p[f"n1_b_{l}"].reshape(1, H) for l in range(L)]),
        jnp.stack([p[f"n2_g_{l}"].reshape(1, H) for l in range(L)]),
        jnp.stack([p[f"n2_b_{l}"].reshape(1, H) for l in range(L)]),
        p["fc1_w"].T, p["fc1_b"].reshape(1, FC1),
        fc2_w_pad, fc2_b_pad,
    ]


def _choose_batch_tiling(B, max_tile_b, min_tiles):
    """Padding-aware batch tiling: distribute B as evenly as possible over
    n_tiles = cdiv(B, max_tile_b) (at least min_tiles so both v7x TCs get work),
    rounding the tile to the 8-row sublane granule."""
    n_tiles = max(min_tiles, _cdiv(B, max_tile_b))
    tb = _round_up(_cdiv(B, n_tiles), 8)
    n_tiles = _cdiv(B, tb)
    return tb, n_tiles, tb * n_tiles


def hybrid_forward(x, params, max_tile_b=256, min_tiles=2, vmem_limit_bytes=None):
    """Batch-tiled forward. Weights use constant index_maps AND Buffered(1)
    (single-buffered, fetched once, VMEM-resident across batch tiles); the batch
    axis is 'parallel' so the two TensorCores on v7x split the tiles.
    max_tile_b=256 is safe under every generation's default scoped-VMEM limit
    (incl. v5e's 16 MiB); on v6e/v7x pass max_tile_b=512..1024 together with an
    explicit vmem_limit_bytes for fewer grid steps."""
    B = x.shape[0]
    tb, n_tiles, Bp = _choose_batch_tiling(B, max_tile_b, min_tiles)
    if Bp != B:
        x = jnp.concatenate([x, jnp.zeros((Bp - B, x.shape[1]), x.dtype)], axis=0)

    args = _prepare_args(x, params)

    def resident(a):
        # full-array block, constant block index, single-buffered:
        # loaded once, kept in VMEM, no wasted double-buffer space.
        return pl.BlockSpec(a.shape, lambda i, _n=a.ndim: (0,) * _n,
                            pipeline_mode=pl.Buffered(1))

    in_specs = [pl.BlockSpec((tb, INPUT_SIZE), lambda i: (i, 0))]
    in_specs += [resident(a) for a in args[1:]]
    out_spec = pl.BlockSpec((tb, OUT_PAD), lambda i: (i, 0))

    cp_kwargs = dict(dimension_semantics=("parallel",))
    if vmem_limit_bytes is not None:
        cp_kwargs["vmem_limit_bytes"] = vmem_limit_bytes

    out = pl.pallas_call(
        hybrid_kernel,
        out_shape=jax.ShapeDtypeStruct((Bp, OUT_PAD), jnp.float32),
        grid=(n_tiles,),
        in_specs=in_specs,
        out_specs=out_spec,
        compiler_params=pltpu.CompilerParams(**cp_kwargs),
    )(*args)
    return out[:B, :OUT]


# ---------------------------------------------------------------------------
# Pure-JAX f32 reference (same math, PyTorch weight orientation) for validation.
# ---------------------------------------------------------------------------
def ref_forward(x, p):
    H = HIDDEN
    sig = lambda v: 1.0 / (1.0 + jnp.exp(-v))
    gates = x @ p["w_ih"].T + p["b_ih"] + p["b_hh"]
    i_g = sig(gates[:, :H])
    g_g = jnp.tanh(gates[:, 2 * H:3 * H])
    o_g = sig(gates[:, 3 * H:4 * H])
    h = o_g * jnp.tanh(i_g * g_g)

    def ln(v, g, b):
        mu = v.mean(-1, keepdims=True)
        var = ((v - mu) ** 2).mean(-1, keepdims=True)
        return (v - mu) / jnp.sqrt(var + EPS) * g + b

    y = h
    for l in range(NLAYERS):
        Wv = p[f"in_proj_w_{l}"][2 * H:3 * H]
        bv = p[f"in_proj_b_{l}"][2 * H:3 * H]
        attn = (y @ Wv.T + bv) @ p[f"out_proj_w_{l}"].T + p[f"out_proj_b_{l}"]
        y = ln(y + attn, p[f"n1_g_{l}"], p[f"n1_b_{l}"])
        ff = jnp.maximum(y @ p[f"lin1_w_{l}"].T + p[f"lin1_b_{l}"], 0.0)
        ff = ff @ p[f"lin2_w_{l}"].T + p[f"lin2_b_{l}"]
        y = ln(y + ff, p[f"n2_g_{l}"], p[f"n2_b_{l}"])
    z = jnp.maximum(y @ p["fc1_w"].T + p["fc1_b"], 0.0)
    return z @ p["fc2_w"].T + p["fc2_b"]


if __name__ == "__main__":
    key = jax.random.PRNGKey(0)
    kp, kx = jax.random.split(key)
    params = init_params(kp)

    # Small example: B=12 -> padding-aware tiling gives tb=8 and a 2-step parallel
    # grid, exercising the batch grid, weight residency across tiles, the
    # batch-padding path, and the lane-dense padded output slice.
    B = 12
    x = jax.random.normal(kx, (B, INPUT_SIZE), jnp.float32)

    forward = jax.jit(lambda xx, pp: hybrid_forward(xx, pp))
    out = jax.block_until_ready(forward(x, params))

    ref = ref_forward(x, params)
    assert out.shape == (B, OUT)
    # bf16-streamed fused-attention / FFN weights vs. f32 reference: 2e-2 is ample.
    np.testing.assert_allclose(np.asarray(out), np.asarray(ref), atol=2e-2, rtol=2e-2)
    print("KERNEL_OK")
</pallas_src>

<mosaic_0001>
module attributes {stable_mosaic.version = 11 : i64} {
  func.func @hybrid_kernel(%arg0: i32, %arg1: memref<8x5xf32, #tpu.memory_space<vmem>>, %arg2: memref<5x384xf32, #tpu.memory_space<vmem>>, %arg3: memref<1x384xf32, #tpu.memory_space<vmem>>, %arg4: memref<2x128x128xbf16, #tpu.memory_space<vmem>>, %arg5: memref<2x1x128xf32, #tpu.memory_space<vmem>>, %arg6: memref<2x128x2048xbf16, #tpu.memory_space<vmem>>, %arg7: memref<2x1x2048xf32, #tpu.memory_space<vmem>>, %arg8: memref<2x2048x128xbf16, #tpu.memory_space<vmem>>, %arg9: memref<2x1x128xf32, #tpu.memory_space<vmem>>, %arg10: memref<2x1x128xf32, #tpu.memory_space<vmem>>, %arg11: memref<2x1x128xf32, #tpu.memory_space<vmem>>, %arg12: memref<2x1x128xf32, #tpu.memory_space<vmem>>, %arg13: memref<2x1x128xf32, #tpu.memory_space<vmem>>, %arg14: memref<128x64xf32, #tpu.memory_space<vmem>>, %arg15: memref<1x64xf32, #tpu.memory_space<vmem>>, %arg16: memref<64x128xf32, #tpu.memory_space<vmem>>, %arg17: memref<1x128xf32, #tpu.memory_space<vmem>>, %arg18: memref<8x128xf32, #tpu.memory_space<vmem>>) attributes {dimension_semantics = [#tpu.dimension_semantics<parallel>], iteration_bounds = array<i64: 2>, scalar_prefetch = 0 : i64, scratch_operands = 0 : i64, tpu.core_type = #tpu.core_type<tc>, window_params = [{transform_indices = @transform_0, window_bounds = array<i64: 8, 5>}, {pipeline_mode = #tpu.pipeline_mode<synchronous>, transform_indices = @transform_1, window_bounds = array<i64: 5, 384>}, {pipeline_mode = #tpu.pipeline_mode<synchronous>, transform_indices = @transform_2, window_bounds = array<i64: 1, 384>}, {pipeline_mode = #tpu.pipeline_mode<synchronous>, transform_indices = @transform_3, window_bounds = array<i64: 2, 128, 128>}, {pipeline_mode = #tpu.pipeline_mode<synchronous>, transform_indices = @transform_4, window_bounds = array<i64: 2, 1, 128>}, {pipeline_mode = #tpu.pipeline_mode<synchronous>, transform_indices = @transform_5, window_bounds = array<i64: 2, 128, 2048>}, {pipeline_mode = #tpu.pipeline_mode<synchronous>, transform_indices = @transform_6, window_bounds = array<i64: 2, 1, 2048>}, {pipeline_mode = #tpu.pipeline_mode<synchronous>, transform_indices = @transform_7, window_bounds = array<i64: 2, 2048, 128>}, {pipeline_mode = #tpu.pipeline_mode<synchronous>, transform_indices = @transform_8, window_bounds = array<i64: 2, 1, 128>}, {pipeline_mode = #tpu.pipeline_mode<synchronous>, transform_indices = @transform_9, window_bounds = array<i64: 2, 1, 128>}, {pipeline_mode = #tpu.pipeline_mode<synchronous>, transform_indices = @transform_10, window_bounds = array<i64: 2, 1, 128>}, {pipeline_mode = #tpu.pipeline_mode<synchronous>, transform_indices = @transform_11, window_bounds = array<i64: 2, 1, 128>}, {pipeline_mode = #tpu.pipeline_mode<synchronous>, transform_indices = @transform_12, window_bounds = array<i64: 2, 1, 128>}, {pipeline_mode = #tpu.pipeline_mode<synchronous>, transform_indices = @transform_13, window_bounds = array<i64: 128, 64>}, {pipeline_mode = #tpu.pipeline_mode<synchronous>, transform_indices = @transform_14, window_bounds = array<i64: 1, 64>}, {pipeline_mode = #tpu.pipeline_mode<synchronous>, transform_indices = @transform_15, window_bounds = array<i64: 64, 128>}, {pipeline_mode = #tpu.pipeline_mode<synchronous>, transform_indices = @transform_16, window_bounds = array<i64: 1, 128>}, {transform_indices = @transform_17, window_bounds = array<i64: 8, 128>}]} {
    %c0 = arith.constant 0 : index
    %c0_0 = arith.constant 0 : index
    %0 = vector.load %arg1[%c0, %c0_0] : memref<8x5xf32, #tpu.memory_space<vmem>>, vector<8x5xf32>
    %c0_1 = arith.constant 0 : index
    %c0_2 = arith.constant 0 : index
    %1 = vector.load %arg2[%c0_1, %c0_2] : memref<5x384xf32, #tpu.memory_space<vmem>>, vector<5x384xf32>
    %cst = arith.constant dense<0.000000e+00> : vector<8x384xf32>
    %2 = tpu.matmul %0, %1, %cst {dimension_numbers = #tpu.dot_dimension_numbers<[1], [0], [0], [1], [0, 0, 1, 1], [], []>} : vector<8x5xf32>, vector<5x384xf32>, vector<8x384xf32> -> vector<8x384xf32>
    %c0_3 = arith.constant 0 : index
    %c0_4 = arith.constant 0 : index
    %3 = vector.load %arg3[%c0_3, %c0_4] : memref<1x384xf32, #tpu.memory_space<vmem>>, vector<1x384xf32>
    %4 = vector.broadcast %3 : vector<1x384xf32> to vector<8x384xf32>
    %5 = arith.addf %2, %4 : vector<8x384xf32>
    %6 = vector.extract_strided_slice %5 {offsets = [0, 0], sizes = [8, 128], strides = [1, 1]} : vector<8x384xf32> to vector<8x128xf32>
    %7 = arith.negf %6 : vector<8x128xf32>
    %8 = math.exp %7 : vector<8x128xf32>
    %cst_5 = arith.constant 1.000000e+00 : f32
    %9 = vector.broadcast %cst_5 : f32 to vector<8x128xf32>
    %10 = arith.addf %9, %8 : vector<8x128xf32>
    %11 = arith.divf %9, %10 : vector<8x128xf32>
    %12 = vector.extract_strided_slice %5 {offsets = [0, 128], sizes = [8, 128], strides = [1, 1]} : vector<8x384xf32> to vector<8x128xf32>
    %13 = math.tanh %12 : vector<8x128xf32>
    %14 = vector.extract_strided_slice %5 {offsets = [0, 256], sizes = [8, 128], strides = [1, 1]} : vector<8x384xf32> to vector<8x128xf32>
    %15 = arith.negf %14 : vector<8x128xf32>
    %16 = math.exp %15 : vector<8x128xf32>
    %cst_6 = arith.constant 1.000000e+00 : f32
    %17 = vector.broadcast %cst_6 : f32 to vector<8x128xf32>
    %18 = arith.addf %17, %16 : vector<8x128xf32>
    %19 = arith.divf %17, %18 : vector<8x128xf32>
    %20 = arith.mulf %11, %13 : vector<8x128xf32>
    %21 = math.tanh %20 : vector<8x128xf32>
    %22 = arith.mulf %19, %21 : vector<8x128xf32>
    %23 = arith.truncf %22 : vector<8x128xf32> to vector<8x128xbf16>
    %c0_7 = arith.constant 0 : index
    %c0_8 = arith.constant 0 : index
    %c0_9 = arith.constant 0 : index
    %24 = vector.load %arg4[%c0_7, %c0_8, %c0_9] : memref<2x128x128xbf16, #tpu.memory_space<vmem>>, vector<1x128x128xbf16>
    %25 = vector.shape_cast %24 : vector<1x128x128xbf16> to vector<128x128xbf16>
    %cst_10 = arith.constant dense<0.000000e+00> : vector<8x128xf32>
    %26 = tpu.matmul %23, %25, %cst_10 {dimension_numbers = #tpu.dot_dimension_numbers<[1], [0], [0], [1], [0, 0, 1, 1], [], []>} : vector<8x128xbf16>, vector<128x128xbf16>, vector<8x128xf32> -> vector<8x128xf32>
    %c0_11 = arith.constant 0 : index
    %c0_12 = arith.constant 0 : index
    %c0_13 = arith.constant 0 : index
    %27 = vector.load %arg5[%c0_11, %c0_12, %c0_13] : memref<2x1x128xf32, #tpu.memory_space<vmem>>, vector<1x1x128xf32>
    %28 = vector.shape_cast %27 : vector<1x1x128xf32> to vector<1x128xf32>
    %29 = vector.broadcast %28 : vector<1x128xf32> to vector<8x128xf32>
    %30 = arith.addf %26, %29 : vector<8x128xf32>
    %31 = arith.addf %22, %30 : vector<8x128xf32>
    %c0_14 = arith.constant 0 : index
    %c0_15 = arith.constant 0 : index
    %c0_16 = arith.constant 0 : index
    %32 = vector.load %arg10[%c0_14, %c0_15, %c0_16] : memref<2x1x128xf32, #tpu.memory_space<vmem>>, vector<1x1x128xf32>
    %33 = vector.shape_cast %32 : vector<1x1x128xf32> to vector<1x128xf32>
    %c0_17 = arith.constant 0 : index
    %c0_18 = arith.constant 0 : index
    %c0_19 = arith.constant 0 : index
    %34 = vector.load %arg11[%c0_17, %c0_18, %c0_19] : memref<2x1x128xf32, #tpu.memory_space<vmem>>, vector<1x1x128xf32>
    %35 = vector.shape_cast %34 : vector<1x1x128xf32> to vector<1x128xf32>
    %cst_20 = arith.constant dense<0.000000e+00> : vector<8xf32>
    %36 = vector.multi_reduction <add>, %31, %cst_20 [1] : vector<8x128xf32> to vector<8xf32>
    %37 = vector.shape_cast %36 : vector<8xf32> to vector<8x1xf32>
    %cst_21 = arith.constant 1.280000e+02 : f32
    %38 = vector.broadcast %cst_21 : f32 to vector<8x1xf32>
    %39 = arith.divf %37, %38 : vector<8x1xf32>
    %40 = vector.broadcast %39 : vector<8x1xf32> to vector<8x128xf32>
    %41 = arith.subf %31, %40 : vector<8x128xf32>
    %42 = vector.broadcast %39 : vector<8x1xf32> to vector<8x128xf32>
    %43 = arith.subf %31, %42 : vector<8x128xf32>
    %44 = arith.mulf %41, %43 : vector<8x128xf32>
    %cst_22 = arith.constant dense<0.000000e+00> : vector<8xf32>
    %45 = vector.multi_reduction <add>, %44, %cst_22 [1] : vector<8x128xf32> to vector<8xf32>
    %46 = vector.shape_cast %45 : vector<8xf32> to vector<8x1xf32>
    %cst_23 = arith.constant 1.280000e+02 : f32
    %47 = vector.broadcast %cst_23 : f32 to vector<8x1xf32>
    %48 = arith.divf %46, %47 : vector<8x1xf32>
    %49 = vector.broadcast %39 : vector<8x1xf32> to vector<8x128xf32>
    %50 = arith.subf %31, %49 : vector<8x128xf32>
    %cst_24 = arith.constant 9.99999974E-6 : f32
    %51 = vector.broadcast %cst_24 : f32 to vector<8x1xf32>
    %52 = arith.addf %48, %51 : vector<8x1xf32>
    %53 = math.rsqrt %52 : vector<8x1xf32>
    %54 = vector.broadcast %53 : vector<8x1xf32> to vector<8x128xf32>
    %55 = arith.mulf %50, %54 : vector<8x128xf32>
    %56 = vector.broadcast %33 : vector<1x128xf32> to vector<8x128xf32>
    %57 = arith.mulf %55, %56 : vector<8x128xf32>
    %58 = vector.broadcast %35 : vector<1x128xf32> to vector<8x128xf32>
    %59 = arith.addf %57, %58 : vector<8x128xf32>
    %60 = arith.truncf %59 : vector<8x128xf32> to vector<8x128xbf16>
    %c0_25 = arith.constant 0 : index
    %c0_26 = arith.constant 0 : index
    %c0_27 = arith.constant 0 : index
    %61 = vector.load %arg6[%c0_25, %c0_26, %c0_27] : memref<2x128x2048xbf16, #tpu.memory_space<vmem>>, vector<1x128x2048xbf16>
    %62 = vector.shape_cast %61 : vector<1x128x2048xbf16> to vector<128x2048xbf16>
    %cst_28 = arith.constant dense<0.000000e+00> : vector<8x2048xf32>
    %63 = tpu.matmul %60, %62, %cst_28 {dimension_numbers = #tpu.dot_dimension_numbers<[1], [0], [0], [1], [0, 0, 1, 1], [], []>} : vector<8x128xbf16>, vector<128x2048xbf16>, vector<8x2048xf32> -> vector<8x2048xf32>
    %c0_29 = arith.constant 0 : index
    %c0_30 = arith.constant 0 : index
    %c0_31 = arith.constant 0 : index
    %64 = vector.load %arg7[%c0_29, %c0_30, %c0_31] : memref<2x1x2048xf32, #tpu.memory_space<vmem>>, vector<1x1x2048xf32>
    %65 = vector.shape_cast %64 : vector<1x1x2048xf32> to vector<1x2048xf32>
    %66 = vector.broadcast %65 : vector<1x2048xf32> to vector<8x2048xf32>
    %67 = arith.addf %63, %66 : vector<8x2048xf32>
    %cst_32 = arith.constant 0.000000e+00 : f32
    %68 = vector.broadcast %cst_32 : f32 to vector<8x2048xf32>
    %69 = arith.maximumf %67, %68 : vector<8x2048xf32>
    %70 = arith.truncf %69 : vector<8x2048xf32> to vector<8x2048xbf16>
    %c0_33 = arith.constant 0 : index
    %c0_34 = arith.constant 0 : index
    %c0_35 = arith.constant 0 : index
    %71 = vector.load %arg8[%c0_33, %c0_34, %c0_35] : memref<2x2048x128xbf16, #tpu.memory_space<vmem>>, vector<1x2048x128xbf16>
    %72 = vector.shape_cast %71 : vector<1x2048x128xbf16> to vector<2048x128xbf16>
    %cst_36 = arith.constant dense<0.000000e+00> : vector<8x128xf32>
    %73 = tpu.matmul %70, %72, %cst_36 {dimension_numbers = #tpu.dot_dimension_numbers<[1], [0], [0], [1], [0, 0, 1, 1], [], []>} : vector<8x2048xbf16>, vector<2048x128xbf16>, vector<8x128xf32> -> vector<8x128xf32>
    %c0_37 = arith.constant 0 : index
    %c0_38 = arith.constant 0 : index
    %c0_39 = arith.constant 0 : index
    %74 = vector.load %arg9[%c0_37, %c0_38, %c0_39] : memref<2x1x128xf32, #tpu.memory_space<vmem>>, vector<1x1x128xf32>
    %75 = vector.shape_cast %74 : vector<1x1x128xf32> to vector<1x128xf32>
    %76 = vector.broadcast %75 : vector<1x128xf32> to vector<8x128xf32>
    %77 = arith.addf %73, %76 : vector<8x128xf32>
    %78 = arith.addf %59, %77 : vector<8x128xf32>
    %c0_40 = arith.constant 0 : index
    %c0_41 = arith.constant 0 : index
    %c0_42 = arith.constant 0 : index
    %79 = vector.load %arg12[%c0_40, %c0_41, %c0_42] : memref<2x1x128xf32, #tpu.memory_space<vmem>>, vector<1x1x128xf32>
    %80 = vector.shape_cast %79 : vector<1x1x128xf32> to vector<1x128xf32>
    %c0_43 = arith.constant 0 : index
    %c0_44 = arith.constant 0 : index
    %c0_45 = arith.constant 0 : index
    %81 = vector.load %arg13[%c0_43, %c0_44, %c0_45] : memref<2x1x128xf32, #tpu.memory_space<vmem>>, vector<1x1x128xf32>
    %82 = vector.shape_cast %81 : vector<1x1x128xf32> to vector<1x128xf32>
    %cst_46 = arith.constant dense<0.000000e+00> : vector<8xf32>
    %83 = vector.multi_reduction <add>, %78, %cst_46 [1] : vector<8x128xf32> to vector<8xf32>
    %84 = vector.shape_cast %83 : vector<8xf32> to vector<8x1xf32>
    %cst_47 = arith.constant 1.280000e+02 : f32
    %85 = vector.broadcast %cst_47 : f32 to vector<8x1xf32>
    %86 = arith.divf %84, %85 : vector<8x1xf32>
    %87 = vector.broadcast %86 : vector<8x1xf32> to vector<8x128xf32>
    %88 = arith.subf %78, %87 : vector<8x128xf32>
    %89 = vector.broadcast %86 : vector<8x1xf32> to vector<8x128xf32>
    %90 = arith.subf %78, %89 : vector<8x128xf32>
    %91 = arith.mulf %88, %90 : vector<8x128xf32>
    %cst_48 = arith.constant dense<0.000000e+00> : vector<8xf32>
    %92 = vector.multi_reduction <add>, %91, %cst_48 [1] : vector<8x128xf32> to vector<8xf32>
    %93 = vector.shape_cast %92 : vector<8xf32> to vector<8x1xf32>
    %cst_49 = arith.constant 1.280000e+02 : f32
    %94 = vector.broadcast %cst_49 : f32 to vector<8x1xf32>
    %95 = arith.divf %93, %94 : vector<8x1xf32>
    %96 = vector.broadcast %86 : vector<8x1xf32> to vector<8x128xf32>
    %97 = arith.subf %78, %96 : vector<8x128xf32>
    %cst_50 = arith.constant 9.99999974E-6 : f32
    %98 = vector.broadcast %cst_50 : f32 to vector<8x1xf32>
    %99 = arith.addf %95, %98 : vector<8x1xf32>
    %100 = math.rsqrt %99 : vector<8x1xf32>
    %101 = vector.broadcast %100 : vector<8x1xf32> to vector<8x128xf32>
    %102 = arith.mulf %97, %101 : vector<8x128xf32>
    %103 = vector.broadcast %80 : vector<1x128xf32> to vector<8x128xf32>
    %104 = arith.mulf %102, %103 : vector<8x128xf32>
    %105 = vector.broadcast %82 : vector<1x128xf32> to vector<8x128xf32>
    %106 = arith.addf %104, %105 : vector<8x128xf32>
    %107 = arith.truncf %106 : vector<8x128xf32> to vector<8x128xbf16>
    %c1 = arith.constant 1 : index
    %c0_51 = arith.constant 0 : index
    %c0_52 = arith.constant 0 : index
    %108 = vector.load %arg4[%c1, %c0_51, %c0_52] : memref<2x128x128xbf16, #tpu.memory_space<vmem>>, vector<1x128x128xbf16>
    %109 = vector.shape_cast %108 : vector<1x128x128xbf16> to vector<128x128xbf16>
    %cst_53 = arith.constant dense<0.000000e+00> : vector<8x128xf32>
    %110 = tpu.matmul %107, %109, %cst_53 {dimension_numbers = #tpu.dot_dimension_numbers<[1], [0], [0], [1], [0, 0, 1, 1], [], []>} : vector<8x128xbf16>, vector<128x128xbf16>, vector<8x128xf32> -> vector<8x128xf32>
    %c1_54 = arith.constant 1 : index
    %c0_55 = arith.constant 0 : index
    %c0_56 = arith.constant 0 : index
    %111 = vector.load %arg5[%c1_54, %c0_55, %c0_56] : memref<2x1x128xf32, #tpu.memory_space<vmem>>, vector<1x1x128xf32>
    %112 = vector.shape_cast %111 : vector<1x1x128xf32> to vector<1x128xf32>
    %113 = vector.broadcast %112 : vector<1x128xf32> to vector<8x128xf32>
    %114 = arith.addf %110, %113 : vector<8x128xf32>
    %115 = arith.addf %106, %114 : vector<8x128xf32>
    %c1_57 = arith.constant 1 : index
    %c0_58 = arith.constant 0 : index
    %c0_59 = arith.constant 0 : index
    %116 = vector.load %arg10[%c1_57, %c0_58, %c0_59] : memref<2x1x128xf32, #tpu.memory_space<vmem>>, vector<1x1x128xf32>
    %117 = vector.shape_cast %116 : vector<1x1x128xf32> to vector<1x128xf32>
    %c1_60 = arith.constant 1 : index
    %c0_61 = arith.constant 0 : index
    %c0_62 = arith.constant 0 : index
    %118 = vector.load %arg11[%c1_60, %c0_61, %c0_62] : memref<2x1x128xf32, #tpu.memory_space<vmem>>, vector<1x1x128xf32>
    %119 = vector.shape_cast %118 : vector<1x1x128xf32> to vector<1x128xf32>
    %cst_63 = arith.constant dense<0.000000e+00> : vector<8xf32>
    %120 = vector.multi_reduction <add>, %115, %cst_63 [1] : vector<8x128xf32> to vector<8xf32>
    %121 = vector.shape_cast %120 : vector<8xf32> to vector<8x1xf32>
    %cst_64 = arith.constant 1.280000e+02 : f32
    %122 = vector.broadcast %cst_64 : f32 to vector<8x1xf32>
    %123 = arith.divf %121, %122 : vector<8x1xf32>
    %124 = vector.broadcast %123 : vector<8x1xf32> to vector<8x128xf32>
    %125 = arith.subf %115, %124 : vector<8x128xf32>
    %126 = vector.broadcast %123 : vector<8x1xf32> to vector<8x128xf32>
    %127 = arith.subf %115, %126 : vector<8x128xf32>
    %128 = arith.mulf %125, %127 : vector<8x128xf32>
    %cst_65 = arith.constant dense<0.000000e+00> : vector<8xf32>
    %129 = vector.multi_reduction <add>, %128, %cst_65 [1] : vector<8x128xf32> to vector<8xf32>
    %130 = vector.shape_cast %129 : vector<8xf32> to vector<8x1xf32>
    %cst_66 = arith.constant 1.280000e+02 : f32
    %131 = vector.broadcast %cst_66 : f32 to vector<8x1xf32>
    %132 = arith.divf %130, %131 : vector<8x1xf32>
    %133 = vector.broadcast %123 : vector<8x1xf32> to vector<8x128xf32>
    %134 = arith.subf %115, %133 : vector<8x128xf32>
    %cst_67 = arith.constant 9.99999974E-6 : f32
    %135 = vector.broadcast %cst_67 : f32 to vector<8x1xf32>
    %136 = arith.addf %132, %135 : vector<8x1xf32>
    %137 = math.rsqrt %136 : vector<8x1xf32>
    %138 = vector.broadcast %137 : vector<8x1xf32> to vector<8x128xf32>
    %139 = arith.mulf %134, %138 : vector<8x128xf32>
    %140 = vector.broadcast %117 : vector<1x128xf32> to vector<8x128xf32>
    %141 = arith.mulf %139, %140 : vector<8x128xf32>
    %142 = vector.broadcast %119 : vector<1x128xf32> to vector<8x128xf32>
    %143 = arith.addf %141, %142 : vector<8x128xf32>
    %144 = arith.truncf %143 : vector<8x128xf32> to vector<8x128xbf16>
    %c1_68 = arith.constant 1 : index
    %c0_69 = arith.constant 0 : index
    %c0_70 = arith.constant 0 : index
    %145 = vector.load %arg6[%c1_68, %c0_69, %c0_70] : memref<2x128x2048xbf16, #tpu.memory_space<vmem>>, vector<1x128x2048xbf16>
    %146 = vector.shape_cast %145 : vector<1x128x2048xbf16> to vector<128x2048xbf16>
    %cst_71 = arith.constant dense<0.000000e+00> : vector<8x2048xf32>
    %147 = tpu.matmul %144, %146, %cst_71 {dimension_numbers = #tpu.dot_dimension_numbers<[1], [0], [0], [1], [0, 0, 1, 1], [], []>} : vector<8x128xbf16>, vector<128x2048xbf16>, vector<8x2048xf32> -> vector<8x2048xf32>
    %c1_72 = arith.constant 1 : index
    %c0_73 = arith.constant 0 : index
    %c0_74 = arith.constant 0 : index
    %148 = vector.load %arg7[%c1_72, %c0_73, %c0_74] : memref<2x1x2048xf32, #tpu.memory_space<vmem>>, vector<1x1x2048xf32>
    %149 = vector.shape_cast %148 : vector<1x1x2048xf32> to vector<1x2048xf32>
    %150 = vector.broadcast %149 : vector<1x2048xf32> to vector<8x2048xf32>
    %151 = arith.addf %147, %150 : vector<8x2048xf32>
    %cst_75 = arith.constant 0.000000e+00 : f32
    %152 = vector.broadcast %cst_75 : f32 to vector<8x2048xf32>
    %153 = arith.maximumf %151, %152 : vector<8x2048xf32>
    %154 = arith.truncf %153 : vector<8x2048xf32> to vector<8x2048xbf16>
    %c1_76 = arith.constant 1 : index
    %c0_77 = arith.constant 0 : index
    %c0_78 = arith.constant 0 : index
    %155 = vector.load %arg8[%c1_76, %c0_77, %c0_78] : memref<2x2048x128xbf16, #tpu.memory_space<vmem>>, vector<1x2048x128xbf16>
    %156 = vector.shape_cast %155 : vector<1x2048x128xbf16> to vector<2048x128xbf16>
    %cst_79 = arith.constant dense<0.000000e+00> : vector<8x128xf32>
    %157 = tpu.matmul %154, %156, %cst_79 {dimension_numbers = #tpu.dot_dimension_numbers<[1], [0], [0], [1], [0, 0, 1, 1], [], []>} : vector<8x2048xbf16>, vector<2048x128xbf16>, vector<8x128xf32> -> vector<8x128xf32>
    %c1_80 = arith.constant 1 : index
    %c0_81 = arith.constant 0 : index
    %c0_82 = arith.constant 0 : index
    %158 = vector.load %arg9[%c1_80, %c0_81, %c0_82] : memref<2x1x128xf32, #tpu.memory_space<vmem>>, vector<1x1x128xf32>
    %159 = vector.shape_cast %158 : vector<1x1x128xf32> to vector<1x128xf32>
    %160 = vector.broadcast %159 : vector<1x128xf32> to vector<8x128xf32>
    %161 = arith.addf %157, %160 : vector<8x128xf32>
    %162 = arith.addf %143, %161 : vector<8x128xf32>
    %c1_83 = arith.constant 1 : index
    %c0_84 = arith.constant 0 : index
    %c0_85 = arith.constant 0 : index
    %163 = vector.load %arg12[%c1_83, %c0_84, %c0_85] : memref<2x1x128xf32, #tpu.memory_space<vmem>>, vector<1x1x128xf32>
    %164 = vector.shape_cast %163 : vector<1x1x128xf32> to vector<1x128xf32>
    %c1_86 = arith.constant 1 : index
    %c0_87 = arith.constant 0 : index
    %c0_88 = arith.constant 0 : index
    %165 = vector.load %arg13[%c1_86, %c0_87, %c0_88] : memref<2x1x128xf32, #tpu.memory_space<vmem>>, vector<1x1x128xf32>
    %166 = vector.shape_cast %165 : vector<1x1x128xf32> to vector<1x128xf32>
    %cst_89 = arith.constant dense<0.000000e+00> : vector<8xf32>
    %167 = vector.multi_reduction <add>, %162, %cst_89 [1] : vector<8x128xf32> to vector<8xf32>
    %168 = vector.shape_cast %167 : vector<8xf32> to vector<8x1xf32>
    %cst_90 = arith.constant 1.280000e+02 : f32
    %169 = vector.broadcast %cst_90 : f32 to vector<8x1xf32>
    %170 = arith.divf %168, %169 : vector<8x1xf32>
    %171 = vector.broadcast %170 : vector<8x1xf32> to vector<8x128xf32>
    %172 = arith.subf %162, %171 : vector<8x128xf32>
    %173 = vector.broadcast %170 : vector<8x1xf32> to vector<8x128xf32>
    %174 = arith.subf %162, %173 : vector<8x128xf32>
    %175 = arith.mulf %172, %174 : vector<8x128xf32>
    %cst_91 = arith.constant dense<0.000000e+00> : vector<8xf32>
    %176 = vector.multi_reduction <add>, %175, %cst_91 [1] : vector<8x128xf32> to vector<8xf32>
    %177 = vector.shape_cast %176 : vector<8xf32> to vector<8x1xf32>
    %cst_92 = arith.constant 1.280000e+02 : f32
    %178 = vector.broadcast %cst_92 : f32 to vector<8x1xf32>
    %179 = arith.divf %177, %178 : vector<8x1xf32>
    %180 = vector.broadcast %170 : vector<8x1xf32> to vector<8x128xf32>
    %181 = arith.subf %162, %180 : vector<8x128xf32>
    %cst_93 = arith.constant 9.99999974E-6 : f32
    %182 = vector.broadcast %cst_93 : f32 to vector<8x1xf32>
    %183 = arith.addf %179, %182 : vector<8x1xf32>
    %184 = math.rsqrt %183 : vector<8x1xf32>
    %185 = vector.broadcast %184 : vector<8x1xf32> to vector<8x128xf32>
    %186 = arith.mulf %181, %185 : vector<8x128xf32>
    %187 = vector.broadcast %164 : vector<1x128xf32> to vector<8x128xf32>
    %188 = arith.mulf %186, %187 : vector<8x128xf32>
    %189 = vector.broadcast %166 : vector<1x128xf32> to vector<8x128xf32>
    %190 = arith.addf %188, %189 : vector<8x128xf32>
    %c0_94 = arith.constant 0 : index
    %c0_95 = arith.constant 0 : index
    %191 = vector.load %arg14[%c0_94, %c0_95] : memref<128x64xf32, #tpu.memory_space<vmem>>, vector<128x64xf32>
    %cst_96 = arith.constant dense<0.000000e+00> : vector<8x64xf32>
    %192 = tpu.matmul %190, %191, %cst_96 {dimension_numbers = #tpu.dot_dimension_numbers<[1], [0], [0], [1], [0, 0, 1, 1], [], []>} : vector<8x128xf32>, vector<128x64xf32>, vector<8x64xf32> -> vector<8x64xf32>
    %c0_97 = arith.constant 0 : index
    %c0_98 = arith.constant 0 : index
    %193 = vector.load %arg15[%c0_97, %c0_98] : memref<1x64xf32, #tpu.memory_space<vmem>>, vector<1x64xf32>
    %194 = vector.broadcast %193 : vector<1x64xf32> to vector<8x64xf32>
    %195 = arith.addf %192, %194 : vector<8x64xf32>
    %cst_99 = arith.constant 0.000000e+00 : f32
    %196 = vector.broadcast %cst_99 : f32 to vector<8x64xf32>
    %197 = arith.maximumf %195, %196 : vector<8x64xf32>
    %c0_100 = arith.constant 0 : index
    %c0_101 = arith.constant 0 : index
    %198 = vector.load %arg16[%c0_100, %c0_101] : memref<64x128xf32, #tpu.memory_space<vmem>>, vector<64x128xf32>
    %cst_102 = arith.constant dense<0.000000e+00> : vector<8x128xf32>
    %199 = tpu.matmul %197, %198, %cst_102 {dimension_numbers = #tpu.dot_dimension_numbers<[1], [0], [0], [1], [0, 0, 1, 1], [], []>} : vector<8x64xf32>, vector<64x128xf32>, vector<8x128xf32> -> vector<8x128xf32>
    %c0_103 = arith.constant 0 : index
    %c0_104 = arith.constant 0 : index
    %200 = vector.load %arg17[%c0_103, %c0_104] : memref<1x128xf32, #tpu.memory_space<vmem>>, vector<1x128xf32>
    %201 = vector.broadcast %200 : vector<1x128xf32> to vector<8x128xf32>
    %202 = arith.addf %199, %201 : vector<8x128xf32>
    %c0_105 = arith.constant 0 : index
    %c0_106 = arith.constant 0 : index
    %203 = vector.load %arg18[%c0_105, %c0_106] : memref<8x128xf32, #tpu.memory_space<vmem>>, vector<8x128xf32>
    tpu.vector_store %arg18[%c0_105, %c0_106], %202 {strides = array<i32>} : memref<8x128xf32, #tpu.memory_space<vmem>>, vector<8x128xf32>,
    return
  }
  func.func @transform_0(%arg0: i32) -> (i32, i32) {
    %c0_i32 = arith.constant 0 : i32
    %c0_i32_0 = arith.constant 0 : i32
    return %arg0, %c0_i32 : i32, i32
  }
  func.func @transform_1(%arg0: i32) -> (i32, i32) {
    %c0_i32 = arith.constant 0 : i32
    %c0_i32_0 = arith.constant 0 : i32
    %c0_i32_1 = arith.constant 0 : i32
    return %c0_i32, %c0_i32_0 : i32, i32
  }
  func.func @transform_2(%arg0: i32) -> (i32, i32) {
    %c0_i32 = arith.constant 0 : i32
    %c0_i32_0 = arith.constant 0 : i32
    %c0_i32_1 = arith.constant 0 : i32
    return %c0_i32, %c0_i32_0 : i32, i32
  }
  func.func @transform_3(%arg0: i32) -> (i32, i32, i32) {
    %c0_i32 = arith.constant 0 : i32
    %c0_i32_0 = arith.constant 0 : i32
    %c0_i32_1 = arith.constant 0 : i32
    %c0_i32_2 = arith.constant 0 : i32
    return %c0_i32, %c0_i32_0, %c0_i32_1 : i32, i32, i32
  }
  func.func @transform_4(%arg0: i32) -> (i32, i32, i32) {
    %c0_i32 = arith.constant 0 : i32
    %c0_i32_0 = arith.constant 0 : i32
    %c0_i32_1 = arith.constant 0 : i32
    %c0_i32_2 = arith.constant 0 : i32
    return %c0_i32, %c0_i32_0, %c0_i32_1 : i32, i32, i32
  }
  func.func @transform_5(%arg0: i32) -> (i32, i32, i32) {
    %c0_i32 = arith.constant 0 : i32
    %c0_i32_0 = arith.constant 0 : i32
    %c0_i32_1 = arith.constant 0 : i32
    %c0_i32_2 = arith.constant 0 : i32
    return %c0_i32, %c0_i32_0, %c0_i32_1 : i32, i32, i32
  }
  func.func @transform_6(%arg0: i32) -> (i32, i32, i32) {
    %c0_i32 = arith.constant 0 : i32
    %c0_i32_0 = arith.constant 0 : i32
    %c0_i32_1 = arith.constant 0 : i32
    %c0_i32_2 = arith.constant 0 : i32
    return %c0_i32, %c0_i32_0, %c0_i32_1 : i32, i32, i32
  }
  func.func @transform_7(%arg0: i32) -> (i32, i32, i32) {
    %c0_i32 = arith.constant 0 : i32
    %c0_i32_0 = arith.constant 0 : i32
    %c0_i32_1 = arith.constant 0 : i32
    %c0_i32_2 = arith.constant 0 : i32
    return %c0_i32, %c0_i32_0, %c0_i32_1 : i32, i32, i32
  }
  func.func @transform_8(%arg0: i32) -> (i32, i32, i32) {
    %c0_i32 = arith.constant 0 : i32
    %c0_i32_0 = arith.constant 0 : i32
    %c0_i32_1 = arith.constant 0 : i32
    %c0_i32_2 = arith.constant 0 : i32
    return %c0_i32, %c0_i32_0, %c0_i32_1 : i32, i32, i32
  }
  func.func @transform_9(%arg0: i32) -> (i32, i32, i32) {
    %c0_i32 = arith.constant 0 : i32
    %c0_i32_0 = arith.constant 0 : i32
    %c0_i32_1 = arith.constant 0 : i32
    %c0_i32_2 = arith.constant 0 : i32
    return %c0_i32, %c0_i32_0, %c0_i32_1 : i32, i32, i32
  }
  func.func @transform_10(%arg0: i32) -> (i32, i32, i32) {
    %c0_i32 = arith.constant 0 : i32
    %c0_i32_0 = arith.constant 0 : i32
    %c0_i32_1 = arith.constant 0 : i32
    %c0_i32_2 = arith.constant 0 : i32
    return %c0_i32, %c0_i32_0, %c0_i32_1 : i32, i32, i32
  }
  func.func @transform_11(%arg0: i32) -> (i32, i32, i32) {
    %c0_i32 = arith.constant 0 : i32
    %c0_i32_0 = arith.constant 0 : i32
    %c0_i32_1 = arith.constant 0 : i32
    %c0_i32_2 = arith.constant 0 : i32
    return %c0_i32, %c0_i32_0, %c0_i32_1 : i32, i32, i32
  }
  func.func @transform_12(%arg0: i32) -> (i32, i32, i32) {
    %c0_i32 = arith.constant 0 : i32
    %c0_i32_0 = arith.constant 0 : i32
    %c0_i32_1 = arith.constant 0 : i32
    %c0_i32_2 = arith.constant 0 : i32
    return %c0_i32, %c0_i32_0, %c0_i32_1 : i32, i32, i32
  }
  func.func @transform_13(%arg0: i32) -> (i32, i32) {
    %c0_i32 = arith.constant 0 : i32
    %c0_i32_0 = arith.constant 0 : i32
    %c0_i32_1 = arith.constant 0 : i32
    return %c0_i32, %c0_i32_0 : i32, i32
  }
  func.func @transform_14(%arg0: i32) -> (i32, i32) {
    %c0_i32 = arith.constant 0 : i32
    %c0_i32_0 = arith.constant 0 : i32
    %c0_i32_1 = arith.constant 0 : i32
    return %c0_i32, %c0_i32_0 : i32, i32
  }
  func.func @transform_15(%arg0: i32) -> (i32, i32) {
    %c0_i32 = arith.constant 0 : i32
    %c0_i32_0 = arith.constant 0 : i32
    %c0_i32_1 = arith.constant 0 : i32
    return %c0_i32, %c0_i32_0 : i32, i32
  }
  func.func @transform_16(%arg0: i32) -> (i32, i32) {
    %c0_i32 = arith.constant 0 : i32
    %c0_i32_0 = arith.constant 0 : i32
    %c0_i32_1 = arith.constant 0 : i32
    return %c0_i32, %c0_i32_0 : i32, i32
  }
  func.func @transform_17(%arg0: i32) -> (i32, i32) {
    %c0_i32 = arith.constant 0 : i32
    %c0_i32_0 = arith.constant 0 : i32
    return %arg0, %c0_i32 : i32, i32
  }
}

</mosaic_0001>

<bundles_post_ra>
// kernel: _lambda_.1
= control target key start
LH: loop header
LB: loop body
LE: loop exit
PB: predicated region body
PF: predicated region fallthrough
CT: control target
= control target key end

     0   :  { %s8880_s24 = smov 0   ;;  %s11518_s0 = inlined_call_operand.vmem [shape: f32[16,5], index: 0, kind: input, shape index: {}]   ;;  %s11519_s1 = inlined_call_operand.vmem [shape: f32[5,384], index: 1, kind: input, shape index: {}]   ;;  %s11520_s2 = inlined_call_operand.vmem [shape: f32[1,384], index: 2, kind: input, shape index: {}]   ;;  %s11521_s3 = inlined_call_operand.vmem [shape: bf16[2,128,128], index: 3, kind: input, shape index: {}]   ;;  %s11522_s4 = inlined_call_operand.vmem [shape: f32[2,1,128], index: 4, kind: input, shape index: {}]   ;;  %s11523_s5 = inlined_call_operand.vmem [shape: bf16[2,128,2048], index: 5, kind: input, shape index: {}]   ;;  %s11524_s6 = inlined_call_operand.vmem [shape: f32[2,1,2048], index: 6, kind: input, shape index: {}]   ;;  %s11525_s7 = inlined_call_operand.vmem [shape: bf16[2,2048,128], index: 7, kind: input, shape index: {}]   ;;  %s11526_s8 = inlined_call_operand.vmem [shape: f32[2,1,128], index: 8, kind: input, shape index: {}]   ;;  %s11527_s9 = inlined_call_operand.vmem [shape: f32[2,1,128], index: 9, kind: input, shape index: {}]   ;;  %s11528_s10 = inlined_call_operand.vmem [shape: f32[2,1,128], index: 10, kind: input, shape index: {}]   ;;  %s11529_s11 = inlined_call_operand.vmem [shape: f32[2,1,128], index: 11, kind: input, shape index: {}]   ;;  %s11530_s12 = inlined_call_operand.vmem [shape: f32[2,1,128], index: 12, kind: input, shape index: {}]   ;;  %s11531_s13 = inlined_call_operand.vmem [shape: f32[128,64], index: 13, kind: input, shape index: {}]   ;;  %s11532_s14 = inlined_call_operand.vmem [shape: f32[1,64], index: 14, kind: input, shape index: {}]   ;;  %s11533_s15 = inlined_call_operand.vmem [shape: f32[64,128], index: 15, kind: input, shape index: {}]   ;;  %s11534_s16 = inlined_call_operand.vmem [shape: f32[1,128], index: 16, kind: input, shape index: {}]   ;;  %s11535_s17 = inlined_call_operand.vmem [shape: f32[16,128], index: 17, kind: output, shape index: {}]  }
   0x1   :  { %11538 = sst [smem:[#allocation2_spill]] %s11518_s0 }
   0x2   :  { %11539 = sst [smem:[#allocation3_spill]] %s11519_s1 }
   0x3 LB: > { %s5670_s25 = sadd.s32 4294967295, %s8787_s24   ;;  %p5674_p0 = scmp.ge.s32.totalorder %s8787_s24, 1  ;;  %s8787_s24 = sphi %s8880_s24, %s27_s24  }
   0x4   : > { %p486_p1 = scmp.lt.s32.totalorder %s8787_s24, 3 }
   0x6   : > { %p487_p2 = pnand %p5674_p0, %p486_p1 }
   0x7   : > { %s11540_s28 = sld [smem:[#allocation3_spill]] (!%p487_p2)  ;;  %p536_p3 = scmp.lt.s32.totalorder (!%p487_p2), %s5670_s25, 1 }
   0x8   : > { %490 = sbr.rel (%p487_p2) target bundleno = 2479 (0x9af), region = 88  ;;  %s11541_s21 = sld [smem:[#allocation2_spill]] (!%p487_p2) }
   0xd   : > { %v545_v0 = vld [vmem:[%s11540_s28] sm:$0x1f]  ;;  %vm560_vm0 = vcmask 1044480   ;;  %v547_v1 = vld [vmem:[%s11540_s28 + $0x10] sm:$0x1f]  ;;  %s11544_s25 = smov (!%p536_p3, %s5670_s25), 1 }
   0xe   : > { %5677 = vmatpush.msk.msra.mxu2 %vm560_vm0, %v545_v0  ;;  %v546_v2 = vld [vmem:[%s11540_s28 + $0x8] sm:$0x1f]  ;;  %s11537_s19 = sshll.u32 %s11544_s25, 3  ;;  %vm556_vm1 = vcmask 39936   ;;  %v8215_v4 = vld [vmem:[%s11521_s3 + $0x38] sm:$0xff]  ;;  %v8214_v5 = vld [vmem:[%s11521_s3 + $0x30] sm:$0xff] }
   0xf   : > { %5679 = vmatpush.msk.msra.mxu1 %vm560_vm0, %v546_v2  ;;  %s539_s22 = scalar_lea.vmem %s11541_s21, %s11537_s19  ;;  %741 = vmatpush.bf16.msra.mxu3 %v8215_v4  ;;  %v8213_v6 = vld [vmem:[%s11521_s3 + $0x28] sm:$0xff]  ;;  %v8212_v7 = vld [vmem:[%s11521_s3 + $0x20] sm:$0xff]  ;;  %v8211_v9 = vld [vmem:[%s11521_s3 + $0x18] sm:$0xff]  ;;  %v8789_v58 = vmov 128.0   ;;  %s11542_s19 = sshll.u32 %s11544_s25, 3 }
  0x10   : > { %5681 = vmatpush.msk.msrb.mxu2 %vm560_vm0, %v547_v1  ;;  %v544_v3 = vld [vmem:[%s539_s22] sm:$0xff]  ;;  %v8210_v11 = vld [vmem:[%s11521_s3 + $0x10] sm:$0xff]  ;;  %v8209_v14 = vld [vmem:[%s11521_s3 + $0x8] sm:$0xff]  ;;  %s543_s30 = scalar_lea.vmem %s11535_s17, %s11542_s19 }
  0x11   : > { %5678 = vmatmul.msk.f32.vlgmr.msra.gmra.mxu2 %vm556_vm1, %v544_v3  ;;  %5680 = vmatmul.msk.f32.vlgmr.msra.gmra.mxu1 %vm556_vm1, %v544_v3  ;;  %v548_v8 = vld [vmem:[%s11520_s2] sm:$0x7]  ;;  %v8328_v63 = vld [vmem:[%s11523_s5 + $0x384] sm:$0xf]  ;;  %v6175_v2 = vld [vmem:[%s11523_s5 + $0x388] sm:$0xf] }
  0x12   : > { %v550_v10 = vperm.slane %v548_v8, 0  ;;  %v552_v16 = vperm.slane %v548_v8, 2  ;;  %v8208_v17 = vld [vmem:[%s11521_s3] sm:$0xff]  ;;  %v551_v23 = vperm.slane %v548_v8, 1 }
  0x13   : > { %742 = vmatpush.bf16.msra.mxu3 %v8214_v5  ;;  %v8745_v53 = vld [vmem:[%s11522_s4] ss:$0 sm:$0xff]  ;;  %v6169_v1 = vld [vmem:[%s11523_s5 + $0x3c0] sm:$0xf0] }
  0x14   : > { %v6167_v61 = vld [vmem:[%s11523_s5 + $0x380] sm:$0xf]  ;;  %v6172_v4 = vor.u32 %v8328_v63, %v6169_v1  ;;  %v5855_v1 = vld [vmem:[%s11523_s5 + $0x108] sm:$0xf] }
  0x15   : > { %v8336_v62 = vld [vmem:[%s11523_s5 + $0x3bc] sm:$0xf0] }
  0x16   : > { %v6168_v0 = vor.u32 %v8336_v62, %v6167_v61  ;;  %v6103_v8 = vld [vmem:[%s11523_s5 + $0x300] sm:$0xf]  ;;  %1610 = vmatpush.bf16.msrb.mxu1 %v6172_v4  ;;  %v8248_v62 = vld [vmem:[%s11523_s5 + $0x104] sm:$0xf]  ;;  %v5857_v4 = vld [vmem:[%s11523_s5 + $0x148] sm:$0xf0] }
  0x17   : > { %743 = vmatpush.bf16.msra.mxu3 %v8213_v6  ;;  %v8329_v6 = vld [vmem:[%s11523_s5 + $0x38c] sm:$0xf]  ;;  %v8256_v61 = vld [vmem:[%s11523_s5 + $0x13c] sm:$0xf0] }
  0x18   : > { %1597 = vmatpush.bf16.msra.mxu0 %v6168_v0  ;;  %v5849_v0 = vld [vmem:[%s11523_s5 + $0x140] sm:$0xf0] }
  0x19   : > { %5682 = vmatmul.msk.f32.vlgmr.msrb.gmra.mxu2 %vm556_vm1, %v544_v3  ;;  %v8337_v3 = vld [vmem:[%s11523_s5 + $0x3c4] sm:$0xf0] }
  0x1a   : > { %v6176_v5 = vor.u32 %v8337_v3, %v6175_v2  ;;  %v8257_v2 = vld [vmem:[%s11523_s5 + $0x144] sm:$0xf0]  ;;  %v8249_v3 = vld [vmem:[%s11523_s5 + $0x10c] sm:$0xf] }
  0x1b   : > { %744 = vmatpush.bf16.msra.mxu3 %v8212_v7  ;;  %v6177_v7 = vld [vmem:[%s11523_s5 + $0x3c8] sm:$0xf0] }
  0x1c   : > { %1623 = vmatpush.bf16.msra.mxu2 %v6176_v5 }
  0x1f   : > { %745 = vmatpush.bf16.msra.mxu3 %v8211_v9  ;;  %v6180_v9 = vor.u32 %v8329_v6, %v6177_v7  ;;  %v5852_v7 = vor.u32 %v8248_v62, %v5849_v0  ;;  %v8306_v0 = vld [vmem:[%s11523_s5 + $0x2cc] sm:$0xf0] }
  0x23   : > { %746 = vmatpush.bf16.msra.mxu3 %v8210_v11  ;;  %v8312_v11 = vld [vmem:[%s11523_s5 + $0x304] sm:$0xf] }
  0x27   : > { %747 = vmatpush.bf16.msra.mxu3 %v8209_v14 }
  0x2b   : > { %748 = vmatpush.bf16.msra.mxu3 %v8208_v17  ;;  %v8313_v17 = vld [vmem:[%s11523_s5 + $0x30c] sm:$0xf] }
  0x2f   : > { %1636 = vmatpush.bf16.msrb.mxu3 %v6180_v9  ;;  %v5783_v9 = vld [vmem:[%s11523_s5 + $0x80] sm:$0xf] }
  0x8e   : > { %v607_v24 = vpop.f32.mrf.mxu1 }
  0x8f   : > { %v608_v25 = vadd.f32 %v607_v24, %v551_v23  ;;  %v8296_v23 = vld [vmem:[%s11523_s5 + $0x284] sm:$0xf] }
  0x90   : > { %v6041_v24 = vld [vmem:[%s11523_s5 + $0x2c0] sm:$0xf0] }
  0x94   : > { %v587_v12 = vpop.f32.mrf.mxu2 }
  0x95   : > { %v588_v13 = vadd.f32 %v587_v12, %v550_v10  ;;  %v8320_v10 = vld [vmem:[%s11523_s5 + $0x33c] sm:$0xf0]  ;;  %v6105_v12 = vld [vmem:[%s11523_s5 + $0x340] sm:$0xf0] }
  0x96   : > { %v6108_v14 = vor.u32 %v8312_v11, %v6105_v12  ;;  %v8232_v11 = vld [vmem:[%s11523_s5 + $0x84] sm:$0xf]  ;;  %v5860_v12 = vor.u32 %v8249_v3, %v5857_v4  ;;  %v6057_v3 = vld [vmem:[%s11523_s5 + $0x2d0] sm:$0xf0]  ;;  %v6063_v4 = vld [vmem:[%s11523_s5 + $0x298] sm:$0xf] }
  0x97   : > { %v5683_v15 = vmul.f32 -1.442695, %v588_v13  ;;  %v6104_v13 = vor.u32 %v8320_v10, %v6103_v8  ;;  %v5856_v8 = vor.u32 %v8257_v2, %v5855_v1  ;;  %v8240_v10 = vld [vmem:[%s11523_s5 + $0xbc] sm:$0xf0]  ;;  %v8298_v1 = vld [vmem:[%s11523_s5 + $0x294] sm:$0xf] }
  0x98   : > { %1611 = vmatpush.bf16.msrb.mxu1 %v6108_v14  ;;  %v5791_v14 = vld [vmem:[%s11523_s5 + $0x88] sm:$0xf] }
  0x99   : > { %8759 = vpow2.f32 %v5683_v15  ;;  %v6111_v15 = vld [vmem:[%s11523_s5 + $0x308] sm:$0xf]  ;;  %1598 = vmatpush.bf16.msra.mxu0 %v6104_v13  ;;  %v5785_v13 = vld [vmem:[%s11523_s5 + $0xc0] sm:$0xf0] }
  0x9c   : > { %v627_v18 = vpop.f32.mrf.mxu2 }
  0x9d   : > { %v628_v19 = vadd.f32 %v627_v18, %v552_v16  ;;  %v8321_v16 = vld [vmem:[%s11523_s5 + $0x344] sm:$0xf0] }
  0x9e   : > { %v6112_v18 = vor.u32 %v8321_v16, %v6111_v15  ;;  %v8241_v15 = vld [vmem:[%s11523_s5 + $0xc4] sm:$0xf0]  ;;  %v8233_v16 = vld [vmem:[%s11523_s5 + $0x8c] sm:$0xf] }
  0x9f   : > { %v8760_v20 = vpop.eup %8759  ;;  %v5684_v21 = vmul.f32 -1.442695, %v628_v19  ;;  %v6113_v19 = vld [vmem:[%s11523_s5 + $0x348] sm:$0xf0] }
  0xa0   : > { %v633_v22 = vadd.f32 1.0, %v8760_v20  ;;  %v6039_v20 = vld [vmem:[%s11523_s5 + $0x280] sm:$0xf]  ;;  %1624 = vmatpush.bf16.msra.mxu2 %v6112_v18 }
  0xa1   : > { %8761 = vpow2.f32 %v5684_v21  ;;  %v8304_v21 = vld [vmem:[%s11523_s5 + $0x2bc] sm:$0xf0] }
  0xa2   : > { %8763 = vrcp.f32 %v633_v22  ;;  %v645_v31 = vand.u32 2147483648, %v633_v22  ;;  %v643_v33 = vand.u32 2147483647, %v633_v22  ;;  %vm639_vm3 = vweird.f32 %v633_v22 }
  0xa3   : > { %8765 = vtanh.f32 %v608_v25  ;;  %v6047_v25 = vld [vmem:[%s11523_s5 + $0x288] sm:$0xf] }
  0xa4   : > { %v646_v37 = vor.u32 1.1754944e-38, %v645_v31  ;;  %vm644_vm5 = vcmp.eq.f32.partialorder %v643_v33, 8.507059e+37  ;;  %v8288_v33 = vld [vmem:[%s11523_s5 + $0x23c] sm:$0xf0] }
  0xa7   : > { %v8762_v26 = vpop.eup %8761 }
  0xa8   : > { %v8764_v27 = vpop.eup %8763  ;;  %v653_v28 = vadd.f32 1.0, %v8762_v26  ;;  %v6040_v26 = vor.u32 %v8304_v21, %v6039_v20  ;;  %v5788_v20 = vor.u32 %v8232_v11, %v5785_v13  ;;  %v5792_v21 = vor.u32 %v8241_v15, %v5791_v14  ;;  %v5991_v11 = vld [vmem:[%s11523_s5 + $0x210] sm:$0xf]  ;;  %v8282_v13 = vld [vmem:[%s11523_s5 + $0x214] sm:$0xf] }
  0xa9   : > { %v635_v29 = vmul.f32 %v8764_v27, %v633_v22  ;;  %vm640_vm2 = vweird.f32 %v8764_v27  ;;  %v8766_v34 = vpop.eup %8765  ;;  %v6116_v22 = vor.u32 %v8313_v17, %v6113_v19  ;;  %v5793_v17 = vld [vmem:[%s11523_s5 + $0xc8] sm:$0xf0]  ;;  %v5784_v19 = vor.u32 %v8240_v10, %v5783_v9  ;;  %v6065_v9 = vld [vmem:[%s11523_s5 + $0x2d8] sm:$0xf0]  ;;  %v5993_v15 = vld [vmem:[%s11523_s5 + $0x250] sm:$0xf0] }
  0xaa   : > { %8767 = vrcp.f32 %v653_v28  ;;  %vm641_vm4 = vmor %vm639_vm3, %vm640_vm2  ;;  %v665_v43 = vand.u32 2147483648, %v653_v28  ;;  %v663_v45 = vand.u32 2147483647, %v653_v28  ;;  %vm659_vm7 = vweird.f32 %v653_v28  ;;  %1599 = vmatpush.bf16.msra.mxu0 %v6040_v26  ;;  %v5719_v26 = vld [vmem:[%s11523_s5] sm:$0xf] }
  0xab   : > { %v636_v30 = vsub.f32 1.0, %v635_v29  ;;  %v6049_v29 = vld [vmem:[%s11523_s5 + $0x2c8] sm:$0xf0]  ;;  %1637 = vmatpush.bf16.msrb.mxu3 %v6116_v22 }
  0xac   : > { %v666_v47 = vor.u32 1.1754944e-38, %v665_v43  ;;  %vm664_vm9 = vcmp.eq.f32.partialorder %v663_v45, 8.507059e+37  ;;  %v5911_v45 = vld [vmem:[%s11523_s5 + $0x180] sm:$0xf] }
  0xad   : > { %v637_v32 = vmul.f32 %v8764_v27, %v636_v30  ;;  %v6044_v30 = vor.u32 %v8296_v23, %v6041_v24  ;;  %v5796_v23 = vor.u32 %v8233_v16, %v5793_v17  ;;  %v5999_v16 = vld [vmem:[%s11523_s5 + $0x218] sm:$0xf] }
  0xae   : > { %v8291_v17 = vld [vmem:[%s11523_s5 + $0x254] sm:$0xf0] }
  0xaf   : > { %v638_v35 = vadd.f32 %v8764_v27, %v637_v32  ;;  %v5975_v32 = vld [vmem:[%s11523_s5 + $0x200] sm:$0xf]  ;;  %1612 = vmatpush.bf16.msrb.mxu1 %v6044_v30  ;;  %v5727_v30 = vld [vmem:[%s11523_s5 + $0x8] sm:$0xf] }
  0xb0   : > { %v8768_v36 = vpop.eup %8767 }
  0xb1   : > { %v642_v38 = vsel %vm641_vm4, %v8764_v27, %v638_v35  ;;  %v655_v39 = vmul.f32 %v8768_v36, %v653_v28  ;;  %vm660_vm6 = vweird.f32 %v8768_v36  ;;  %v8305_v27 = vld [vmem:[%s11523_s5 + $0x2c4] sm:$0xf0]  ;;  %v8297_v28 = vld [vmem:[%s11523_s5 + $0x28c] sm:$0xf] }
  0xb2   : > { %v647_v40 = vsel %vm644_vm5, %v646_v37, %v642_v38  ;;  %vm661_vm8 = vmor %vm659_vm7, %vm660_vm6  ;;  %v6048_v31 = vor.u32 %v8305_v27, %v6047_v25  ;;  %v6052_v35 = vor.u32 %v8297_v28, %v6049_v29  ;;  %v5983_v37 = vld [vmem:[%s11523_s5 + $0x208] sm:$0xf]  ;;  %v8224_v27 = vld [vmem:[%s11523_s5 + $0x3c] sm:$0xf0]  ;;  %vm5592_vm7 = vcmask 523264  }
  0xb3   : > { %v669_v41 = vmul.f32 %v8766_v34, %v647_v40  ;;  %v656_v42 = vsub.f32 1.0, %v655_v39  ;;  %v8280_v34 = vld [vmem:[%s11523_s5 + $0x204] sm:$0xf]  ;;  %v8289_v38 = vld [vmem:[%s11523_s5 + $0x244] sm:$0xf0]  ;;  %v5720_v28 = vor.u32 %v8224_v27, %v5719_v26 }
  0xb4   : > { %v8281_v39 = vld [vmem:[%s11523_s5 + $0x20c] sm:$0xf]  ;;  %1625 = vmatpush.bf16.msra.mxu2 %v6048_v31  ;;  %1638 = vmatpush.bf16.msrb.mxu3 %v6052_v35  ;;  %v5721_v29 = vld [vmem:[%s11523_s5 + $0x40] sm:$0xf0]  ;;  %v8225_v31 = vld [vmem:[%s11523_s5 + $0x44] sm:$0xf0] }
  0xb5   : > { %8769 = vtanh.f32 %v669_v41  ;;  %v657_v44 = vmul.f32 %v8768_v36, %v656_v42  ;;  %v5985_v40 = vld [vmem:[%s11523_s5 + $0x248] sm:$0xf0]  ;;  %v5976_v42 = vor.u32 %v8288_v33, %v5975_v32  ;;  %v5728_v33 = vor.u32 %v8225_v31, %v5727_v30  ;;  %v8266_v26 = vld [vmem:[%s11523_s5 + $0x194] sm:$0xf] }
  0xb6   : > { %8771 = vrcp.f32 %v8789_v58  ;;  %v5729_v35 = vld [vmem:[%s11523_s5 + $0x48] sm:$0xf0] }
  0xb7   : > { %v658_v46 = vadd.f32 %v8768_v36, %v657_v44  ;;  %v5984_v44 = vor.u32 %v8289_v38, %v5983_v37  ;;  %1600 = vmatpush.bf16.msra.mxu0 %v5976_v42  ;;  %v8338_v38 = vld [vmem:[%s11523_s5 + $0x3cc] sm:$0xf0] }
  0xb9   : > { %v662_v48 = vsel %vm661_vm8, %v8768_v36, %v658_v46  ;;  %v5977_v36 = vld [vmem:[%s11523_s5 + $0x240] sm:$0xf0]  ;;  %v8272_v46 = vld [vmem:[%s11523_s5 + $0x1bc] sm:$0xf0]  ;;  %1626 = vmatpush.bf16.msra.mxu2 %v5984_v44  ;;  %v8339_v44 = vld [vmem:[%s11523_s5 + $0x3d4] sm:$0xf0] }
  0xba   : > { %v667_v49 = vsel %vm664_vm9, %v666_v47, %v662_v48  ;;  %v5980_v43 = vor.u32 %v8280_v34, %v5977_v36  ;;  %v8264_v47 = vld [vmem:[%s11523_s5 + $0x184] sm:$0xf]  ;;  %v5988_v48 = vor.u32 %v8281_v39, %v5985_v40  ;;  %v8217_v34 = vld [vmem:[%s11523_s5 + $0xc] sm:$0xf]  ;;  %v6183_v36 = vld [vmem:[%s11523_s5 + $0x390] sm:$0xf] }
  0xbb   : > { %v8770_v50 = vpop.eup %8769  ;;  %v5732_v37 = vor.u32 %v8217_v34, %v5729_v35  ;;  %v8330_v39 = vld [vmem:[%s11523_s5 + $0x394] sm:$0xf]  ;;  %v5863_v35 = vld [vmem:[%s11523_s5 + $0x110] sm:$0xf] }
  0xbc   : > { %v671_v51 = vmul.f32 %v8770_v50, %v667_v49  ;;  %v8938_v59 = vpop.eup %8771  ;;  %v5913_v49 = vld [vmem:[%s11523_s5 + $0x1c0] sm:$0xf0]  ;;  %v5919_v50 = vld [vmem:[%s11523_s5 + $0x188] sm:$0xf]  ;;  %1613 = vmatpush.bf16.msrb.mxu1 %v5980_v43  ;;  %1639 = vmatpush.bf16.msrb.mxu3 %v5988_v48  ;;  %v6185_v40 = vld [vmem:[%s11523_s5 + $0x3d0] sm:$0xf0] }
  0xbd   : > { %v8941_v60 = vmul.f32 128.0, %v8938_v59  ;;  %vm764_vm10 = vweird.f32 %v8938_v59  ;;  %v6188_v42 = vor.u32 %v8330_v39, %v6185_v40  ;;  %v6191_v43 = vld [vmem:[%s11523_s5 + $0x398] sm:$0xf]  ;;  %v6119_v48 = vld [vmem:[%s11523_s5 + $0x310] sm:$0xf] }
  0xbe   : > { %v672_v52 = vpack.c.bf16 %v671_v51, %v671_v51  ;;  %v5865_v39 = vld [vmem:[%s11523_s5 + $0x150] sm:$0xf0]  ;;  %v5871_v40 = vld [vmem:[%s11523_s5 + $0x118] sm:$0xf] }
  0xbf   : > { %v761_v41 = vsub.f32 1.0, %v8941_v60  ;;  %v5847_v60 = vld [vmem:[%s11523_s5 + $0x100] sm:$0xf] }
  0xc0   : > { %749 = vmatmul.bf16.vlgmr.msra.gmra.mxu3 %v672_v52  ;;  %v8265_v52 = vld [vmem:[%s11523_s5 + $0x18c] sm:$0xf]  ;;  %v5848_v6 = vor.u32 %v8256_v61, %v5847_v60  ;;  %v6129_v60 = vld [vmem:[%s11523_s5 + $0x358] sm:$0xf0] }
 0x143   : > { %v750_v54 = vpop.f32.mrf.mxu3 }
 0x144   : > { %v751_v55 = vadd.f32 %v8745_v53, %v750_v54  ;;  %v5921_v53 = vld [vmem:[%s11523_s5 + $0x1c8] sm:$0xf0]  ;;  %v762_v54 = vmul.f32 %v8938_v59, %v761_v41  ;;  %v6184_v41 = vor.u32 %v8338_v38, %v6183_v36  ;;  %v8258_v36 = vld [vmem:[%s11523_s5 + $0x14c] sm:$0xf0] }
 0x145   : > { %v5924_v63 = vor.u32 %v8265_v52, %v5921_v53  ;;  %v8314_v52 = vld [vmem:[%s11523_s5 + $0x314] sm:$0xf]  ;;  %v5864_v38 = vor.u32 %v8258_v36, %v5863_v35  ;;  %v8324_v35 = vld [vmem:[%s11523_s5 + $0x35c] sm:$0xf0] }
 0x146   : > { %v8935_v56 = vadd.f32 %v751_v55, %v671_v51  ;;  %v8273_v51 = vld [vmem:[%s11523_s5 + $0x1c4] sm:$0xf0]  ;;  %v5912_v55 = vor.u32 %v8272_v46, %v5911_v45  ;;  %v763_v5 = vadd.f32 %v8938_v59, %v762_v54  ;;  %v8331_v45 = vld [vmem:[%s11523_s5 + $0x39c] sm:$0xf]  ;;  %v6192_v46 = vor.u32 %v8339_v44, %v6191_v43  ;;  %v6121_v53 = vld [vmem:[%s11523_s5 + $0x350] sm:$0xf0] }
 0x147   : > { %v5920_v58 = vor.u32 %v8273_v51, %v5919_v50  ;;  %1640 = vmatpush.bf16.msrb.mxu3 %v5924_v63  ;;  %v6127_v54 = vld [vmem:[%s11523_s5 + $0x318] sm:$0xf]  ;;  %v6055_v63 = vld [vmem:[%s11523_s5 + $0x290] sm:$0xf]  ;;  %v8251_v44 = vld [vmem:[%s11523_s5 + $0x11c] sm:$0xf] }
 0x148   : > { %757 = vadd.xlane.f32.xlu0 %v8935_v56  ;;  %1601 = vmatpush.bf16.msra.mxu0 %v5912_v55  ;;  %v9116_v18 = vsel %vm764_vm10, %v8938_v59, %v763_v5  ;;  %v6124_v55 = vor.u32 %v8314_v52, %v6121_v53  ;;  %v6056_v2 = vor.u32 %v8306_v0, %v6055_v63  ;;  %v8307_v5 = vld [vmem:[%s11523_s5 + $0x2d4] sm:$0xf0]  ;;  %v8218_v63 = vld [vmem:[%s11523_s5 + $0x14] sm:$0xf] }
 0x149   : > { %1627 = vmatpush.bf16.msra.mxu2 %v5920_v58  ;;  %v8315_v58 = vld [vmem:[%s11523_s5 + $0x31c] sm:$0xf]  ;;  %v5807_v52 = vld [vmem:[%s11523_s5 + $0x98] sm:$0xf] }
 0x14a   : > { %v6132_v62 = vor.u32 %v8315_v58, %v6129_v60  ;;  %v8243_v53 = vld [vmem:[%s11523_s5 + $0xd4] sm:$0xf0]  ;;  %v5809_v58 = vld [vmem:[%s11523_s5 + $0xd8] sm:$0xf0] }
 0x14b   : > { %v752_v57 = vpop.f32.mrf.mxu3  ;;  %1641 = vmatpush.bf16.msrb.mxu3 %v5860_v12  ;;  %v8290_v12 = vld [vmem:[%s11523_s5 + $0x24c] sm:$0xf0] }
 0x14c   : > { %v5916_v57 = vor.u32 %v8264_v47, %v5913_v49  ;;  %1602 = vmatpush.bf16.msra.mxu0 %v5848_v6  ;;  %v6193_v47 = vld [vmem:[%s11523_s5 + $0x3d8] sm:$0xf0]  ;;  %v8322_v49 = vld [vmem:[%s11523_s5 + $0x34c] sm:$0xf0]  ;;  %v6060_v6 = vor.u32 %v8298_v1, %v6057_v3  ;;  %v5992_v14 = vor.u32 %v8290_v12, %v5991_v11  ;;  %v5737_v1 = vld [vmem:[%s11523_s5 + $0x50] sm:$0xf0] }
 0x14d   : > { %1628 = vmatpush.bf16.msra.mxu2 %v5856_v8  ;;  %v6196_v50 = vor.u32 %v8331_v45, %v6193_v47  ;;  %v6120_v51 = vor.u32 %v8322_v49, %v6119_v48  ;;  %v8299_v8 = vld [vmem:[%s11523_s5 + $0x29c] sm:$0xf]  ;;  %v5799_v47 = vld [vmem:[%s11523_s5 + $0x90] sm:$0xf]  ;;  %v8234_v49 = vld [vmem:[%s11523_s5 + $0x94] sm:$0xf] }
 0x14e   : > { %1614 = vmatpush.bf16.msrb.mxu1 %v5916_v57  ;;  %v8323_v57 = vld [vmem:[%s11523_s5 + $0x354] sm:$0xf0]  ;;  %v6068_v10 = vor.u32 %v8299_v8, %v6065_v9  ;;  %v5873_v45 = vld [vmem:[%s11523_s5 + $0x158] sm:$0xf0]  ;;  %v8242_v48 = vld [vmem:[%s11523_s5 + $0xcc] sm:$0xf0] }
 0x14f   : > { %1642 = vmatpush.bf16.msrb.mxu3 %v5796_v23  ;;  %v6128_v61 = vor.u32 %v8323_v57, %v6127_v54  ;;  %v8235_v57 = vld [vmem:[%s11523_s5 + $0x9c] sm:$0xf]  ;;  %v8227_v3 = vld [vmem:[%s11523_s5 + $0x54] sm:$0xf0] }
 0x150   : > { %1603 = vmatpush.bf16.msra.mxu0 %v5784_v19  ;;  %v5996_v19 = vor.u32 %v8282_v13, %v5993_v15  ;;  %v5812_v60 = vor.u32 %v8235_v57, %v5809_v58 }
 0x151   : > { %1629 = vmatpush.bf16.msra.mxu2 %v5792_v21  ;;  %v8283_v21 = vld [vmem:[%s11523_s5 + $0x21c] sm:$0xf] }
 0x152   : > { %1615 = vmatpush.bf16.msrb.mxu1 %v5852_v7  ;;  %v6064_v7 = vor.u32 %v8307_v5, %v6063_v4  ;;  %v5740_v4 = vor.u32 %v8218_v63, %v5737_v1  ;;  %v6009_v1 = vld [vmem:[%s11523_s5 + $0x260] sm:$0xf0] }
 0x153   : > { %1643 = vmatpush.bf16.msrb.mxu3 %v5732_v37  ;;  %v8250_v37 = vld [vmem:[%s11523_s5 + $0x114] sm:$0xf] }
 0x154   : > { %1604 = vmatpush.bf16.msra.mxu0 %v5720_v28  ;;  %v5935_v28 = vld [vmem:[%s11523_s5 + $0x198] sm:$0xf] }
 0x155   : > { %1630 = vmatpush.bf16.msra.mxu2 %v5728_v33  ;;  %v5937_v33 = vld [vmem:[%s11523_s5 + $0x1d8] sm:$0xf0] }
 0x156   : > { %1616 = vmatpush.bf16.msrb.mxu1 %v5788_v20  ;;  %v6000_v20 = vor.u32 %v8291_v17, %v5999_v16 }
 0x157   : > { %1688 = vmatpush.bf16.msra.mxu3 %v6196_v50  ;;  %v5800_v50 = vor.u32 %v8242_v48, %v5799_v47  ;;  %v8308_v47 = vld [vmem:[%s11523_s5 + $0x2dc] sm:$0xf0] }
 0x158   : > { %1649 = vmatpush.bf16.msrb.mxu0 %v6184_v41  ;;  %v8259_v41 = vld [vmem:[%s11523_s5 + $0x154] sm:$0xf0] }
 0x159   : > { %1675 = vmatpush.bf16.msrb.mxu2 %v6192_v46  ;;  %v5872_v43 = vor.u32 %v8259_v41, %v5871_v40  ;;  %v5876_v46 = vor.u32 %v8251_v44, %v5873_v45  ;;  %v6143_v40 = vld [vmem:[%s11523_s5 + $0x328] sm:$0xf] }
 0x15a   : > { %v8325_v41 = vld [vmem:[%s11523_s5 + $0x364] sm:$0xf0] }
 0x15b   : > { %1689 = vmatpush.bf16.msra.mxu3 %v6132_v62  ;;  %v8226_v62 = vld [vmem:[%s11523_s5 + $0x4c] sm:$0xf0]  ;;  %v6144_v48 = vor.u32 %v8325_v41, %v6143_v40  ;;  %v8245_v40 = vld [vmem:[%s11523_s5 + $0xe4] sm:$0xf0]  ;;  %v8237_v41 = vld [vmem:[%s11523_s5 + $0xac] sm:$0xf] }
 0x15c   : > { %1650 = vmatpush.bf16.msrb.mxu0 %v6120_v51  ;;  %v5801_v51 = vld [vmem:[%s11523_s5 + $0xd0] sm:$0xf0] }
 0x15d   : > { %1676 = vmatpush.bf16.msrb.mxu2 %v6128_v61  ;;  %v5804_v54 = vor.u32 %v8234_v49, %v5801_v51  ;;  %v5735_v61 = vld [vmem:[%s11523_s5 + $0x10] sm:$0xf]  ;;  %v6073_v51 = vld [vmem:[%s11523_s5 + $0x2e0] sm:$0xf0] }
 0x15e   : > { %v5736_v0 = vor.u32 %v8226_v62, %v5735_v61  ;;  %v8292_v61 = vld [vmem:[%s11523_s5 + $0x25c] sm:$0xf0] }
 0x15f   : > { %1690 = vmatpush.bf16.msra.mxu3 %v6068_v10 }
 0x160   : > { %1651 = vmatpush.bf16.msrb.mxu0 %v6056_v2  ;;  %v5743_v2 = vld [vmem:[%s11523_s5 + $0x18] sm:$0xf] }
 0x161   : > { %1677 = vmatpush.bf16.msrb.mxu2 %v6064_v7  ;;  %v5744_v5 = vor.u32 %v8227_v3, %v5743_v2  ;;  %v5745_v7 = vld [vmem:[%s11523_s5 + $0x58] sm:$0xf0]  ;;  %v6015_v2 = vld [vmem:[%s11523_s5 + $0x228] sm:$0xf] }
 0x162   : > { %v8293_v3 = vld [vmem:[%s11523_s5 + $0x264] sm:$0xf0] }
 0x164   : > { %1652 = vmatpush.bf16.msrb.mxu0 %v5992_v14 }
 0x165   : > { %1678 = vmatpush.bf16.msrb.mxu2 %v6000_v20 }
 0x1bb   : > { %v758_v22 = vpop.xlane.xlu0 %757 }
 0x1bc   : > { %v766_v24 = vmul.f32 %v9116_v18, %v758_v22  ;;  %v6001_v22 = vld [vmem:[%s11523_s5 + $0x258] sm:$0xf0] }
 0x1bd   : > { %v6004_v23 = vor.u32 %v8283_v21, %v6001_v22  ;;  %v8747_v21 = vld [vmem:[%s11528_s10] ss:$0 sm:$0xff] }
 0x1be   : > { %v9120_v25 = vsub.f32 %v8935_v56, %v766_v24  ;;  %v8216_v56 = vld [vmem:[%s11523_s5 + $0x4] sm:$0xf]  ;;  %v5927_v24 = vld [vmem:[%s11523_s5 + $0x190] sm:$0xf] }
 0x1bf   : > { %v5724_v32 = vor.u32 %v8216_v56, %v5721_v29  ;;  %v5929_v56 = vld [vmem:[%s11523_s5 + $0x1d0] sm:$0xf0]  ;;  %v8275_v29 = vld [vmem:[%s11523_s5 + $0x1d4] sm:$0xf0]  ;;  %1691 = vmatpush.bf16.msra.mxu3 %v6004_v23 }
 0x1c0   : > { %v768_v59 = vmul.f32 %v9120_v25, %v9120_v25  ;;  %v5932_v30 = vor.u32 %v8266_v26, %v5929_v56  ;;  %v5936_v31 = vor.u32 %v8275_v29, %v5935_v28  ;;  %v8332_v26 = vld [vmem:[%s11523_s5 + $0x3a4] sm:$0xf]  ;;  %v8341_v28 = vld [vmem:[%s11523_s5 + $0x3e4] sm:$0xf0]  ;;  %v8333_v29 = vld [vmem:[%s11523_s5 + $0x3ac] sm:$0xf] }
 0x1c1   : > { %1617 = vmatpush.bf16.msrb.mxu1 %v5724_v32  ;;  %v8267_v32 = vld [vmem:[%s11523_s5 + $0x19c] sm:$0xf] }
 0x1c2   : > { %769 = vadd.xlane.f32.xlu0 %v768_v59  ;;  %v8274_v59 = vld [vmem:[%s11523_s5 + $0x1cc] sm:$0xf0]  ;;  %v5940_v34 = vor.u32 %v8267_v32, %v5937_v33  ;;  %1679 = vmatpush.bf16.msrb.mxu2 %v5936_v31 }
 0x1c3   : > { %v5928_v27 = vor.u32 %v8274_v59, %v5927_v24  ;;  %v6199_v24 = vld [vmem:[%s11523_s5 + $0x3a0] sm:$0xf] }
 0x1c4   : > { %1692 = vmatpush.bf16.msra.mxu3 %v5940_v34  ;;  %v8340_v59 = vld [vmem:[%s11523_s5 + $0x3dc] sm:$0xf0] }
 0x1c5   : > { %1662 = vmatpush.bf16.msra.mxu1 %v6188_v42  ;;  %1653 = vmatpush.bf16.msrb.mxu0 %v5928_v27  ;;  %v5868_v42 = vor.u32 %v8250_v37, %v5865_v39  ;;  %v6201_v27 = vld [vmem:[%s11523_s5 + $0x3e0] sm:$0xf0]  ;;  %v6200_v32 = vor.u32 %v8340_v59, %v6199_v24  ;;  %v6135_v34 = vld [vmem:[%s11523_s5 + $0x320] sm:$0xf] }
 0x1c6   : > { %1680 = vmatpush.bf16.msrb.mxu2 %v5872_v43  ;;  %v6204_v33 = vor.u32 %v8332_v26, %v6201_v27  ;;  %v6137_v39 = vld [vmem:[%s11523_s5 + $0x360] sm:$0xf0]  ;;  %v6145_v43 = vld [vmem:[%s11523_s5 + $0x368] sm:$0xf0]  ;;  %v6136_v44 = vor.u32 %v8324_v35, %v6135_v34  ;;  %v5887_v27 = vld [vmem:[%s11523_s5 + $0x128] sm:$0xf] }
 0x1c7   : > { %v8252_v59 = vld [vmem:[%s11523_s5 + $0x124] sm:$0xf]  ;;  %v8244_v34 = vld [vmem:[%s11523_s5 + $0xdc] sm:$0xf0] }
 0x1c8   : > { %1693 = vmatpush.bf16.msra.mxu3 %v5876_v46  ;;  %v6071_v46 = vld [vmem:[%s11523_s5 + $0x2a0] sm:$0xf]  ;;  %v5881_v26 = vld [vmem:[%s11523_s5 + $0x160] sm:$0xf0] }
 0x1c9   : > { %1663 = vmatpush.bf16.msra.mxu1 %v6124_v55  ;;  %1654 = vmatpush.bf16.msrb.mxu0 %v5864_v38  ;;  %v5808_v55 = vor.u32 %v8243_v53, %v5807_v52  ;;  %v8316_v38 = vld [vmem:[%s11523_s5 + $0x324] sm:$0xf]  ;;  %v6079_v52 = vld [vmem:[%s11523_s5 + $0x2a8] sm:$0xf]  ;;  %v6072_v57 = vor.u32 %v8308_v47, %v6071_v46  ;;  %v8228_v46 = vld [vmem:[%s11523_s5 + $0x5c] sm:$0xf0] }
 0x1ca   : > { %v6140_v45 = vor.u32 %v8316_v38, %v6137_v39  ;;  %v8309_v53 = vld [vmem:[%s11523_s5 + $0x2e4] sm:$0xf0]  ;;  %v5817_v38 = vld [vmem:[%s11523_s5 + $0xe0] sm:$0xf0] }
 0x1cb   : > { %1681 = vmatpush.bf16.msrb.mxu2 %v5808_v55  ;;  %v6081_v55 = vld [vmem:[%s11523_s5 + $0x2e8] sm:$0xf0]  ;;  %v6080_v62 = vor.u32 %v8309_v53, %v6079_v52  ;;  %v5823_v39 = vld [vmem:[%s11523_s5 + $0xa8] sm:$0xf]  ;;  %v8220_v47 = vld [vmem:[%s11523_s5 + $0x24] sm:$0xf] }
 0x1cc   : > { %1694 = vmatpush.bf16.msra.mxu3 %v5812_v60  ;;  %v6007_v60 = vld [vmem:[%s11523_s5 + $0x220] sm:$0xf]  ;;  %v8229_v52 = vld [vmem:[%s11523_s5 + $0x64] sm:$0xf0]  ;;  %v8221_v53 = vld [vmem:[%s11523_s5 + $0x2c] sm:$0xf] }
 0x1cd   : > { %1664 = vmatpush.bf16.msra.mxu1 %v6060_v6  ;;  %1655 = vmatpush.bf16.msrb.mxu0 %v5800_v50  ;;  %v8219_v6 = vld [vmem:[%s11523_s5 + $0x1c] sm:$0xf]  ;;  %v8300_v50 = vld [vmem:[%s11523_s5 + $0x2a4] sm:$0xf] }
 0x1ce   : > { %v5748_v8 = vor.u32 %v8219_v6, %v5745_v7  ;;  %v6076_v58 = vor.u32 %v8300_v50, %v6073_v51  ;;  %v6008_v6 = vor.u32 %v8292_v61, %v6007_v60  ;;  %v5759_v51 = vld [vmem:[%s11523_s5 + $0x28] sm:$0xf]  ;;  %v6217_v60 = vld [vmem:[%s11523_s5 + $0x3f0] sm:$0xf0]  ;;  %v6223_v61 = vld [vmem:[%s11523_s5 + $0x3b8] sm:$0xf] }
 0x1cf   : > { %1682 = vmatpush.bf16.msrb.mxu2 %v5744_v5  ;;  %v6017_v5 = vld [vmem:[%s11523_s5 + $0x268] sm:$0xf0] }
 0x1d0   : > { %1695 = vmatpush.bf16.msra.mxu3 %v5748_v8  ;;  %v5943_v8 = vld [vmem:[%s11523_s5 + $0x1a0] sm:$0xf] }
 0x1d1   : > { %1665 = vmatpush.bf16.msra.mxu1 %v5996_v19  ;;  %1656 = vmatpush.bf16.msrb.mxu0 %v5736_v0  ;;  %v8746_v19 = vld [vmem:[%s11527_s9] ss:$0 sm:$0xff]  ;;  %v8284_v0 = vld [vmem:[%s11523_s5 + $0x224] sm:$0xf] }
 0x1d2   : > { %v6012_v7 = vor.u32 %v8284_v0, %v6009_v1  ;;  %v8343_v0 = vld [vmem:[%s11523_s5 + $0x3f4] sm:$0xf0]  ;;  %v8335_v1 = vld [vmem:[%s11523_s5 + $0x3bc] sm:$0xf] }
 0x1d5   : > { %1666 = vmatpush.bf16.msra.mxu1 %v5932_v30  ;;  %v6209_v30 = vld [vmem:[%s11523_s5 + $0x3e8] sm:$0xf0] }
 0x1d6   : > { %v6212_v37 = vor.u32 %v8333_v29, %v6209_v30  ;;  %v5889_v29 = vld [vmem:[%s11523_s5 + $0x168] sm:$0xf0] }
 0x1d9   : > { %1667 = vmatpush.bf16.msra.mxu1 %v5868_v42  ;;  %v8317_v42 = vld [vmem:[%s11523_s5 + $0x32c] sm:$0xf] }
 0x1da   : > { %v6148_v49 = vor.u32 %v8317_v42, %v6145_v43  ;;  %v5825_v42 = vld [vmem:[%s11523_s5 + $0xe8] sm:$0xf0]  ;;  %v5751_v43 = vld [vmem:[%s11523_s5 + $0x20] sm:$0xf] }
 0x1db   : > { %v5828_v50 = vor.u32 %v8237_v41, %v5825_v42  ;;  %v6033_v41 = vld [vmem:[%s11523_s5 + $0x278] sm:$0xf0] }
 0x1dd   : > { %1668 = vmatpush.bf16.msra.mxu1 %v5804_v54  ;;  %v8301_v54 = vld [vmem:[%s11523_s5 + $0x2ac] sm:$0xf] }
 0x1de   : > { %v6084_v63 = vor.u32 %v8301_v54, %v6081_v55  ;;  %v5761_v54 = vld [vmem:[%s11523_s5 + $0x68] sm:$0xf0]  ;;  %v6215_v55 = vld [vmem:[%s11523_s5 + $0x3b0] sm:$0xf] }
 0x1e1   : > { %1669 = vmatpush.bf16.msra.mxu1 %v5740_v4  ;;  %v8285_v4 = vld [vmem:[%s11523_s5 + $0x22c] sm:$0xf] }
 0x235   : > { %v770_v9 = vpop.xlane.xlu0 %769 }
 0x236   : > { %v771_v10 = vmul.f32 %v770_v9, %v9116_v18  ;;  %v8276_v9 = vld [vmem:[%s11523_s5 + $0x1dc] sm:$0xf0] }
 0x238   : > { %v772_v11 = vadd.f32 1e-05, %v771_v10  ;;  %v6016_v10 = vor.u32 %v8293_v3, %v6015_v2  ;;  %v6225_v2 = vld [vmem:[%s11523_s5 + $0x3f8] sm:$0xf0]  ;;  %v5760_v3 = vor.u32 %v8229_v52, %v5759_v51  ;;  %v8279_v51 = vld [vmem:[%s11523_s5 + $0x1f4] sm:$0xf0] }
 0x239   : > { %v8271_v52 = vld [vmem:[%s11523_s5 + $0x1bc] sm:$0xf] }
 0x23a   : > { %8773 = vrsqrt.f32 %v772_v11  ;;  %vm779_vm12 = vweird.f32 %v772_v11 }
 0x240   : > { %v8774_v12 = vpop.eup %8773 }
 0x241   : > { %v774_v13 = vmul.f32 %v8774_v12, %v772_v11  ;;  %vm780_vm11 = vweird.f32 %v8774_v12  ;;  %v6020_v11 = vor.u32 %v8285_v4, %v6017_v5  ;;  %v5764_v4 = vor.u32 %v8221_v53, %v5761_v54  ;;  %v5969_v53 = vld [vmem:[%s11523_s5 + $0x1f8] sm:$0xf0] }
 0x242   : > { %vm781_vm13 = vmor %vm779_vm12, %vm780_vm11 }
 0x243   : > { %v775_v14 = vmul.f32 %v8774_v12, %v774_v13  ;;  %v5945_v13 = vld [vmem:[%s11523_s5 + $0x1e0] sm:$0xf0] }
 0x245   : > { %v776_v15 = vmul.f32 0.5, %v775_v14  ;;  %v5951_v14 = vld [vmem:[%s11523_s5 + $0x1a8] sm:$0xf] }
 0x247   : > { %v777_v16 = vsub.f32 1.5, %v776_v15  ;;  %v8277_v15 = vld [vmem:[%s11523_s5 + $0x1e4] sm:$0xf0] }
 0x249   : > { %v778_v17 = vmul.f32 %v8774_v12, %v777_v16  ;;  %v8269_v16 = vld [vmem:[%s11523_s5 + $0x1ac] sm:$0xf] }
 0x24b   : > { %v782_v20 = vsel %vm781_vm13, %v8774_v12, %v778_v17  ;;  %v8268_v12 = vld [vmem:[%s11523_s5 + $0x1a4] sm:$0xf]  ;;  %v5953_v17 = vld [vmem:[%s11523_s5 + $0x1e8] sm:$0xf0] }
 0x24c   : > { %v783_v22 = vmul.f32 %v782_v20, %v9120_v25  ;;  %v6207_v25 = vld [vmem:[%s11523_s5 + $0x3a8] sm:$0xf]  ;;  %v5948_v20 = vor.u32 %v8268_v12, %v5945_v13  ;;  %v5956_v24 = vor.u32 %v8269_v16, %v5953_v17  ;;  %v6153_v12 = vld [vmem:[%s11523_s5 + $0x370] sm:$0xf0]  ;;  %v6159_v13 = vld [vmem:[%s11523_s5 + $0x338] sm:$0xf] }
 0x24d   : > { %v6208_v36 = vor.u32 %v8341_v28, %v6207_v25  ;;  %v8261_v25 = vld [vmem:[%s11523_s5 + $0x164] sm:$0xf0]  ;;  %v8253_v28 = vld [vmem:[%s11523_s5 + $0x12c] sm:$0xf]  ;;  %v6161_v16 = vld [vmem:[%s11523_s5 + $0x378] sm:$0xf0] }
 0x24e   : > { %v787_v23 = vmul.f32 %v8746_v19, %v783_v22  ;;  %v5944_v19 = vor.u32 %v8276_v9, %v5943_v8  ;;  %v8260_v22 = vld [vmem:[%s11523_s5 + $0x15c] sm:$0xf0]  ;;  %v5888_v35 = vor.u32 %v8261_v25, %v5887_v27  ;;  %v8326_v8 = vld [vmem:[%s11523_s5 + $0x36c] sm:$0xf0]  ;;  %v6224_v9 = vor.u32 %v8343_v0, %v6223_v61  ;;  %v8311_v27 = vld [vmem:[%s11523_s5 + $0x2f4] sm:$0xf0] }
 0x24f   : > { %v8303_v25 = vld [vmem:[%s11523_s5 + $0x2bc] sm:$0xf]  ;;  %v5972_v61 = vor.u32 %v8271_v52, %v5969_v53  ;;  %v5903_v0 = vld [vmem:[%s11523_s5 + $0x138] sm:$0xf]  ;;  %v8346_v52 = vld [vmem:[%s11525_s7 + $0x10] sm:$0xff] }
 0x250   : > { %v9363_v56 = vadd.f32 %v8747_v21, %v787_v23  ;;  %v5879_v21 = vld [vmem:[%s11523_s5 + $0x120] sm:$0xf]  ;;  %v5952_v23 = vor.u32 %v8277_v15, %v5951_v14  ;;  %v8327_v14 = vld [vmem:[%s11523_s5 + $0x374] sm:$0xf0]  ;;  %v8319_v15 = vld [vmem:[%s11523_s5 + $0x33c] sm:$0xf] }
 0x251   : > { %v5880_v30 = vor.u32 %v8260_v22, %v5879_v21  ;;  %v8310_v21 = vld [vmem:[%s11523_s5 + $0x2ec] sm:$0xf0]  ;;  %v6160_v22 = vor.u32 %v8327_v14, %v6159_v13  ;;  %v8247_v13 = vld [vmem:[%s11523_s5 + $0xf4] sm:$0xf0]  ;;  %v8239_v14 = vld [vmem:[%s11523_s5 + $0xbc] sm:$0xf] }
 0x252   : > { %v9376_v31 = vpack.c.bf16 %v9363_v56, %v9363_v56  ;;  %v8354_v53 = vld [vmem:[%s11525_s7 + $0x50] sm:$0xff] }
 0x254   : > { %1605 = vmatmul.bf16.vlgmr.msra.gmra.mxu0 %v9376_v31  ;;  %1618 = vmatmul.bf16.vlgmr.msrb.gmra.mxu1 %v9376_v31 }
 0x255   : > { %1631 = vmatmul.bf16.vlgmr.msra.gmra.mxu2 %v9376_v31  ;;  %1644 = vmatmul.bf16.vlgmr.msrb.gmra.mxu3 %v9376_v31 }
 0x256   : > { %1701 = vmatpush.bf16.msra.mxu0 %v6200_v32  ;;  %1714 = vmatpush.bf16.msrb.mxu1 %v6204_v33  ;;  %v5884_v32 = vor.u32 %v8252_v59, %v5881_v26  ;;  %v5815_v33 = vld [vmem:[%s11523_s5 + $0xa0] sm:$0xf]  ;;  %v6089_v59 = vld [vmem:[%s11523_s5 + $0x2f0] sm:$0xf0]  ;;  %v6095_v26 = vld [vmem:[%s11523_s5 + $0x2b8] sm:$0xf] }
 0x257   : > { %1727 = vmatpush.bf16.msra.mxu2 %v6208_v36  ;;  %1740 = vmatpush.bf16.msrb.mxu3 %v6212_v37  ;;  %v5892_v36 = vor.u32 %v8253_v28, %v5889_v29  ;;  %v8236_v37 = vld [vmem:[%s11523_s5 + $0xa4] sm:$0xf]  ;;  %v6097_v28 = vld [vmem:[%s11523_s5 + $0x2f8] sm:$0xf0] }
 0x25a   : > { %1702 = vmatpush.bf16.msra.mxu0 %v6136_v44  ;;  %1715 = vmatpush.bf16.msrb.mxu1 %v6140_v45  ;;  %v5816_v44 = vor.u32 %v8244_v34, %v5815_v33  ;;  %v5820_v45 = vor.u32 %v8236_v37, %v5817_v38  ;;  %v8294_v33 = vld [vmem:[%s11523_s5 + $0x26c] sm:$0xf0]  ;;  %v6096_v34 = vor.u32 %v8311_v27, %v6095_v26  ;;  %v6025_v37 = vld [vmem:[%s11523_s5 + $0x270] sm:$0xf0]  ;;  %v6031_v38 = vld [vmem:[%s11523_s5 + $0x238] sm:$0xf] }
 0x25b   : > { %1728 = vmatpush.bf16.msra.mxu2 %v6144_v48  ;;  %1741 = vmatpush.bf16.msrb.mxu3 %v6148_v49  ;;  %v5753_v48 = vld [vmem:[%s11523_s5 + $0x60] sm:$0xf0]  ;;  %v5824_v49 = vor.u32 %v8245_v40, %v5823_v39  ;;  %v8295_v39 = vld [vmem:[%s11523_s5 + $0x274] sm:$0xf0]  ;;  %v8287_v40 = vld [vmem:[%s11523_s5 + $0x23c] sm:$0xf] }
 0x25c   : > { %v8231_v26 = vld [vmem:[%s11523_s5 + $0x74] sm:$0xf0]  ;;  %v8223_v27 = vld [vmem:[%s11523_s5 + $0x3c] sm:$0xf] }
 0x25e   : > { %1703 = vmatpush.bf16.msra.mxu0 %v6072_v57  ;;  %1716 = vmatpush.bf16.msrb.mxu1 %v6076_v58  ;;  %v8342_v57 = vld [vmem:[%s11523_s5 + $0x3ec] sm:$0xf0]  ;;  %v8334_v58 = vld [vmem:[%s11523_s5 + $0x3b4] sm:$0xf] }
 0x25f   : > { %1729 = vmatpush.bf16.msra.mxu2 %v6080_v62  ;;  %1742 = vmatpush.bf16.msrb.mxu3 %v6084_v63  ;;  %v5752_v62 = vor.u32 %v8228_v46, %v5751_v43  ;;  %v5756_v63 = vor.u32 %v8220_v47, %v5753_v48  ;;  %v6216_v5 = vor.u32 %v8342_v57, %v6215_v55  ;;  %v8270_v48 = vld [vmem:[%s11523_s5 + $0x1b4] sm:$0xf]  ;;  %v5895_v57 = vld [vmem:[%s11523_s5 + $0x130] sm:$0xf] }
 0x260   : > { %v6032_v46 = vor.u32 %v8295_v39, %v6031_v38  ;;  %v6036_v47 = vor.u32 %v8287_v40, %v6033_v41  ;;  %v8358_v38 = vld [vmem:[%s11525_s7 + $0x70] sm:$0xff]  ;;  %v8349_v41 = vld [vmem:[%s11525_s7 + $0x28] sm:$0xff] }
 0x261   : > { %v8366_v39 = vld [vmem:[%s11525_s7 + $0xb0] sm:$0xff] }
 0x262   : > { %1704 = vmatpush.bf16.msra.mxu0 %v6008_v6  ;;  %1717 = vmatpush.bf16.msrb.mxu1 %v6012_v7  ;;  %v6220_v6 = vor.u32 %v8334_v58, %v6217_v60  ;;  %v6151_v7 = vld [vmem:[%s11523_s5 + $0x330] sm:$0xf] }
 0x263   : > { %1730 = vmatpush.bf16.msra.mxu2 %v6016_v10  ;;  %1743 = vmatpush.bf16.msrb.mxu3 %v6020_v11  ;;  %v6228_v10 = vor.u32 %v8335_v1, %v6225_v2  ;;  %v8318_v11 = vld [vmem:[%s11523_s5 + $0x334] sm:$0xf]  ;;  %v6152_v17 = vor.u32 %v8326_v8, %v6151_v7  ;;  %v8262_v58 = vld [vmem:[%s11523_s5 + $0x16c] sm:$0xf0]  ;;  %v8263_v1 = vld [vmem:[%s11523_s5 + $0x174] sm:$0xf0] }
 0x264   : > { %1657 = vmatmul.bf16.vlgmr.msrb.gmra.mxu0 %v9376_v31  ;;  %1670 = vmatmul.bf16.vlgmr.msra.gmra.mxu1 %v9376_v31  ;;  %v8255_v2 = vld [vmem:[%s11523_s5 + $0x13c] sm:$0xf]  ;;  %v8246_v7 = vld [vmem:[%s11523_s5 + $0xec] sm:$0xf0]  ;;  %v5904_v8 = vor.u32 %v8263_v1, %v5903_v0 }
 0x265   : > { %1683 = vmatmul.bf16.vlgmr.msrb.gmra.mxu2 %v9376_v31  ;;  %1696 = vmatmul.bf16.vlgmr.msra.gmra.mxu3 %v9376_v31  ;;  %v8374_v40 = vld [vmem:[%s11525_s7 + $0xf0] sm:$0xff]  ;;  %v8383_v0 = vld [vmem:[%s11525_s7 + $0x138] sm:$0xff] }
 0x266   : > { %1705 = vmatpush.bf16.msra.mxu0 %v5944_v19  ;;  %1718 = vmatpush.bf16.msrb.mxu1 %v5948_v20  ;;  %v6156_v19 = vor.u32 %v8318_v11, %v6153_v12  ;;  %v6087_v20 = vld [vmem:[%s11523_s5 + $0x2b0] sm:$0xf]  ;;  %v5833_v11 = vld [vmem:[%s11523_s5 + $0xf0] sm:$0xf0]  ;;  %v5839_v12 = vld [vmem:[%s11523_s5 + $0xb8] sm:$0xf] }
 0x267   : > { %1731 = vmatpush.bf16.msra.mxu2 %v5952_v23  ;;  %1744 = vmatpush.bf16.msrb.mxu3 %v5956_v24  ;;  %v6164_v23 = vor.u32 %v8319_v15, %v6161_v16  ;;  %v8302_v24 = vld [vmem:[%s11523_s5 + $0x2b4] sm:$0xf]  ;;  %v6088_v29 = vor.u32 %v8310_v21, %v6087_v20  ;;  %v5841_v15 = vld [vmem:[%s11523_s5 + $0xf8] sm:$0xf0]  ;;  %v8230_v20 = vld [vmem:[%s11523_s5 + $0x6c] sm:$0xf0]  ;;  %v5840_v21 = vor.u32 %v8247_v13, %v5839_v12 }
 0x268   : > { %v8391_v1 = vld [vmem:[%s11525_s7 + $0x178] sm:$0xff]  ;;  %v8397_v12 = vld [vmem:[%s11525_s7 + $0x1a8] sm:$0xff] }
 0x269   : > { %v8405_v13 = vld [vmem:[%s11525_s7 + $0x1e8] sm:$0xff] }
 0x26a   : > { %1706 = vmatpush.bf16.msra.mxu0 %v5880_v30  ;;  %1719 = vmatpush.bf16.msrb.mxu1 %v5884_v32  ;;  %v6092_v30 = vor.u32 %v8302_v24, %v6089_v59  ;;  %v6023_v32 = vld [vmem:[%s11523_s5 + $0x230] sm:$0xf]  ;;  %v5769_v24 = vld [vmem:[%s11523_s5 + $0x70] sm:$0xf0]  ;;  %v5775_v59 = vld [vmem:[%s11523_s5 + $0x38] sm:$0xf] }
 0x26b   : > { %1732 = vmatpush.bf16.msra.mxu2 %v5888_v35  ;;  %1745 = vmatpush.bf16.msrb.mxu3 %v5892_v36  ;;  %v6100_v35 = vor.u32 %v8303_v25, %v6097_v28  ;;  %v8286_v36 = vld [vmem:[%s11523_s5 + $0x234] sm:$0xf]  ;;  %v6024_v42 = vor.u32 %v8294_v33, %v6023_v32  ;;  %v5777_v25 = vld [vmem:[%s11523_s5 + $0x78] sm:$0xf0] }
 0x26c   : > { %v6028_v43 = vor.u32 %v8286_v36, %v6025_v37  ;;  %v5780_v32 = vor.u32 %v8223_v27, %v5777_v25  ;;  %v8351_v33 = vld [vmem:[%s11525_s7 + $0x38] sm:$0xff]  ;;  %v8350_v37 = vld [vmem:[%s11525_s7 + $0x30] sm:$0xff]  ;;  %v8377_v27 = vld [vmem:[%s11525_s7 + $0x108] sm:$0xff] }
 0x26d   : > { %v8375_v36 = vld [vmem:[%s11525_s7 + $0xf8] sm:$0xff]  ;;  %v8385_v25 = vld [vmem:[%s11525_s7 + $0x148] sm:$0xff] }
 0x26e   : > { %1707 = vmatpush.bf16.msra.mxu0 %v5816_v44  ;;  %1720 = vmatpush.bf16.msrb.mxu1 %v5820_v45  ;;  %v5959_v44 = vld [vmem:[%s11523_s5 + $0x1b0] sm:$0xf] }
 0x26f   : > { %1733 = vmatpush.bf16.msra.mxu2 %v5824_v49  ;;  %1746 = vmatpush.bf16.msrb.mxu3 %v5828_v50  ;;  %v8278_v45 = vld [vmem:[%s11523_s5 + $0x1ec] sm:$0xf0]  ;;  %v5961_v49 = vld [vmem:[%s11523_s5 + $0x1f0] sm:$0xf0]  ;;  %v5967_v50 = vld [vmem:[%s11523_s5 + $0x1b8] sm:$0xf] }
 0x270   : > { %v5960_v54 = vor.u32 %v8278_v45, %v5959_v44  ;;  %v5964_v55 = vor.u32 %v8270_v48, %v5961_v49  ;;  %v5968_v60 = vor.u32 %v8279_v51, %v5967_v50  ;;  %v8348_v44 = vld [vmem:[%s11525_s7 + $0x20] sm:$0xff]  ;;  %v8347_v48 = vld [vmem:[%s11525_s7 + $0x18] sm:$0xff] }
 0x271   : > { %v8356_v45 = vld [vmem:[%s11525_s7 + $0x60] sm:$0xff]  ;;  %v8355_v49 = vld [vmem:[%s11525_s7 + $0x58] sm:$0xff] }
 0x272   : > { %1708 = vmatpush.bf16.msra.mxu0 %v5752_v62  ;;  %1721 = vmatpush.bf16.msrb.mxu1 %v5756_v63  ;;  %v8254_v62 = vld [vmem:[%s11523_s5 + $0x134] sm:$0xf]  ;;  %v8363_v50 = vld [vmem:[%s11525_s7 + $0x98] sm:$0xff] }
 0x273   : > { %1734 = vmatpush.bf16.msra.mxu2 %v5760_v3  ;;  %1747 = vmatpush.bf16.msrb.mxu3 %v5764_v4  ;;  %v5897_v63 = vld [vmem:[%s11523_s5 + $0x170] sm:$0xf0]  ;;  %v5905_v3 = vld [vmem:[%s11523_s5 + $0x178] sm:$0xf0]  ;;  %v5896_v4 = vor.u32 %v8262_v58, %v5895_v57  ;;  %v8345_v57 = vld [vmem:[%s11525_s7 + $0x8] sm:$0xff] }
 0x274   : > { %v8371_v51 = vld [vmem:[%s11525_s7 + $0xd8] sm:$0xff]  ;;  %v8353_v58 = vld [vmem:[%s11525_s7 + $0x48] sm:$0xff] }
 0x275   : > { %1709 = vmatmul.bf16.vlgmr.msra.gmra.mxu0 %v9376_v31  ;;  %1722 = vmatmul.bf16.vlgmr.msrb.gmra.mxu1 %v9376_v31 }
 0x276   : > { %1753 = vmatpush.bf16.msrb.mxu0 %v6216_v5  ;;  %1766 = vmatpush.bf16.msra.mxu1 %v6220_v6  ;;  %v5900_v5 = vor.u32 %v8254_v62, %v5897_v63  ;;  %v5831_v6 = vld [vmem:[%s11523_s5 + $0xb0] sm:$0xf]  ;;  %v8344_v62 = vld [vmem:[%s11525_s7] sm:$0xff] }
 0x277   : > { %1779 = vmatpush.bf16.msrb.mxu2 %v6224_v9  ;;  %1792 = vmatpush.bf16.msra.mxu3 %v6228_v10  ;;  %v5908_v9 = vor.u32 %v8255_v2, %v5905_v3  ;;  %v8238_v10 = vld [vmem:[%s11523_s5 + $0xb4] sm:$0xf]  ;;  %v5832_v16 = vor.u32 %v8246_v7, %v5831_v6  ;;  %v8352_v63 = vld [vmem:[%s11525_s7 + $0x40] sm:$0xff] }
 0x278   : > { %1735 = vmatmul.bf16.vlgmr.msra.gmra.mxu2 %v9376_v31  ;;  %1748 = vmatmul.bf16.vlgmr.msrb.gmra.mxu3 %v9376_v31  ;;  %v8360_v2 = vld [vmem:[%s11525_s7 + $0x80] sm:$0xff]  ;;  %v8382_v6 = vld [vmem:[%s11525_s7 + $0x130] sm:$0xff] }
 0x279   : > { %v8368_v3 = vld [vmem:[%s11525_s7 + $0xc0] sm:$0xff]  ;;  %v8390_v7 = vld [vmem:[%s11525_s7 + $0x170] sm:$0xff] }
 0x27a   : > { %1754 = vmatpush.bf16.msrb.mxu0 %v6152_v17  ;;  %1767 = vmatpush.bf16.msra.mxu1 %v6156_v19  ;;  %v5836_v17 = vor.u32 %v8238_v10, %v5833_v11  ;;  %v5767_v19 = vld [vmem:[%s11523_s5 + $0x30] sm:$0xf]  ;;  %v8381_v10 = vld [vmem:[%s11525_s7 + $0x128] sm:$0xff] }
 0x27b   : > { %1780 = vmatpush.bf16.msrb.mxu2 %v6160_v22  ;;  %1793 = vmatpush.bf16.msra.mxu3 %v6164_v23  ;;  %v5844_v22 = vor.u32 %v8239_v14, %v5841_v15  ;;  %v8222_v23 = vld [vmem:[%s11523_s5 + $0x34] sm:$0xf]  ;;  %v5768_v28 = vor.u32 %v8230_v20, %v5767_v19  ;;  %v8389_v11 = vld [vmem:[%s11525_s7 + $0x168] sm:$0xff]  ;;  %v8380_v14 = vld [vmem:[%s11525_s7 + $0x120] sm:$0xff] }
 0x27c   : > { %v8388_v15 = vld [vmem:[%s11525_s7 + $0x160] sm:$0xff]  ;;  %v8379_v19 = vld [vmem:[%s11525_s7 + $0x118] sm:$0xff] }
 0x27d   : > { %v8387_v20 = vld [vmem:[%s11525_s7 + $0x158] sm:$0xff] }
 0x27e   : > { %1755 = vmatpush.bf16.msrb.mxu0 %v6088_v29  ;;  %1768 = vmatpush.bf16.msra.mxu1 %v6092_v30  ;;  %v5772_v29 = vor.u32 %v8222_v23, %v5769_v24  ;;  %v5776_v30 = vor.u32 %v8231_v26, %v5775_v59  ;;  %v8378_v23 = vld [vmem:[%s11525_s7 + $0x110] sm:$0xff] }
 0x27f   : > { %1781 = vmatpush.bf16.msrb.mxu2 %v6096_v34  ;;  %1794 = vmatpush.bf16.msra.mxu3 %v6100_v35  ;;  %v8359_v34 = vld [vmem:[%s11525_s7 + $0x78] sm:$0xff]  ;;  %v8386_v24 = vld [vmem:[%s11525_s7 + $0x150] sm:$0xff] }
 0x280   : > { %v8367_v35 = vld [vmem:[%s11525_s7 + $0xb8] sm:$0xff]  ;;  %v8394_v59 = vld [vmem:[%s11525_s7 + $0x190] sm:$0xff] }
 0x281   : > { %v8402_v26 = vld [vmem:[%s11525_s7 + $0x1d0] sm:$0xff] }
 0x282   : > { %1756 = vmatpush.bf16.msrb.mxu0 %v6024_v42  ;;  %1769 = vmatpush.bf16.msra.mxu1 %v6028_v43  ;;  %v8365_v42 = vld [vmem:[%s11525_s7 + $0xa8] sm:$0xff] }
 0x283   : > { %1782 = vmatpush.bf16.msrb.mxu2 %v6032_v46  ;;  %1795 = vmatpush.bf16.msra.mxu3 %v6036_v47  ;;  %v8373_v43 = vld [vmem:[%s11525_s7 + $0xe8] sm:$0xff]  ;;  %v8364_v46 = vld [vmem:[%s11525_s7 + $0xa0] sm:$0xff] }
 0x284   : > { %v8372_v47 = vld [vmem:[%s11525_s7 + $0xe0] sm:$0xff] }
 0x286   : > { %1757 = vmatpush.bf16.msrb.mxu0 %v5960_v54  ;;  %1770 = vmatpush.bf16.msra.mxu1 %v5964_v55  ;;  %v8362_v54 = vld [vmem:[%s11525_s7 + $0x90] sm:$0xff] }
 0x287   : > { %1783 = vmatpush.bf16.msrb.mxu2 %v5968_v60  ;;  %1796 = vmatpush.bf16.msra.mxu3 %v5972_v61  ;;  %v8370_v55 = vld [vmem:[%s11525_s7 + $0xd0] sm:$0xff]  ;;  %v8361_v60 = vld [vmem:[%s11525_s7 + $0x88] sm:$0xff] }
 0x288   : > { %v8369_v61 = vld [vmem:[%s11525_s7 + $0xc8] sm:$0xff] }
 0x28a   : > { %1758 = vmatpush.bf16.msrb.mxu0 %v5896_v4  ;;  %1771 = vmatpush.bf16.msra.mxu1 %v5900_v5  ;;  %v8399_v4 = vld [vmem:[%s11525_s7 + $0x1b8] sm:$0xff] }
 0x28b   : > { %1784 = vmatpush.bf16.msrb.mxu2 %v5904_v8  ;;  %1797 = vmatpush.bf16.msra.mxu3 %v5908_v9  ;;  %v8407_v5 = vld [vmem:[%s11525_s7 + $0x1f8] sm:$0xff]  ;;  %v8398_v8 = vld [vmem:[%s11525_s7 + $0x1b0] sm:$0xff] }
 0x28c   : > { %v8406_v9 = vld [vmem:[%s11525_s7 + $0x1f0] sm:$0xff] }
 0x28e   : > { %1759 = vmatpush.bf16.msrb.mxu0 %v5832_v16  ;;  %1772 = vmatpush.bf16.msra.mxu1 %v5836_v17  ;;  %v8396_v16 = vld [vmem:[%s11525_s7 + $0x1a0] sm:$0xff] }
 0x28f   : > { %1785 = vmatpush.bf16.msrb.mxu2 %v5840_v21  ;;  %1798 = vmatpush.bf16.msra.mxu3 %v5844_v22  ;;  %v8404_v17 = vld [vmem:[%s11525_s7 + $0x1e0] sm:$0xff]  ;;  %v8395_v21 = vld [vmem:[%s11525_s7 + $0x198] sm:$0xff] }
 0x290   : > { %v8403_v22 = vld [vmem:[%s11525_s7 + $0x1d8] sm:$0xff] }
 0x292   : > { %1760 = vmatpush.bf16.msrb.mxu0 %v5768_v28  ;;  %1773 = vmatpush.bf16.msra.mxu1 %v5772_v29  ;;  %v8393_v28 = vld [vmem:[%s11525_s7 + $0x188] sm:$0xff] }
 0x293   : > { %1786 = vmatpush.bf16.msrb.mxu2 %v5776_v30  ;;  %1799 = vmatpush.bf16.msra.mxu3 %v5780_v32  ;;  %v8401_v29 = vld [vmem:[%s11525_s7 + $0x1c8] sm:$0xff]  ;;  %v8376_v30 = vld [vmem:[%s11525_s7 + $0x100] sm:$0xff] }
 0x294   : > { %v8384_v32 = vld [vmem:[%s11525_s7 + $0x140] sm:$0xff] }
 0x295   : > { %1761 = vmatmul.bf16.vlgmr.msrb.gmra.mxu0 %v9376_v31  ;;  %1774 = vmatmul.bf16.vlgmr.msra.gmra.mxu1 %v9376_v31 }
 0x296   : > { %2865 = vmatpush.bf16.msra.mxu0 %v8351_v33  ;;  %2878 = vmatpush.bf16.msrb.mxu1 %v8359_v34  ;;  %v8392_v33 = vld [vmem:[%s11525_s7 + $0x180] sm:$0xff] }
 0x297   : > { %1787 = vmatmul.bf16.vlgmr.msrb.gmra.mxu2 %v9376_v31  ;;  %1800 = vmatmul.bf16.vlgmr.msra.gmra.mxu3 %v9376_v31  ;;  %v8357_v31 = vld [vmem:[%s11525_s7 + $0x68] sm:$0xff]  ;;  %v8400_v34 = vld [vmem:[%s11525_s7 + $0x1c0] sm:$0xff] }
 0x298   : > { %2891 = vmatpush.bf16.msra.mxu2 %v8367_v35  ;;  %2904 = vmatpush.bf16.msrb.mxu3 %v8375_v36  ;;  %v9949_v35 = vld [vmem:[%s11524_s6] sm:$0xff] }
 0x299   : > { %v925_v36 = vperm.slane %v9949_v35, 0 }
 0x29a   : > { %2866 = vmatpush.bf16.msra.mxu0 %v8350_v37  ;;  %2879 = vmatpush.bf16.msrb.mxu1 %v8358_v38  ;;  %v926_v37 = vperm.slane %v9949_v35, 1 }
 0x29c   : > { %2892 = vmatpush.bf16.msra.mxu2 %v8366_v39  ;;  %2905 = vmatpush.bf16.msrb.mxu3 %v8374_v40 }
 0x29e   : > { %2867 = vmatpush.bf16.msra.mxu0 %v8349_v41  ;;  %2880 = vmatpush.bf16.msrb.mxu1 %v8357_v31 }
 0x2a0   : > { %2893 = vmatpush.bf16.msra.mxu2 %v8365_v42  ;;  %2906 = vmatpush.bf16.msrb.mxu3 %v8373_v43  ;;  %v927_v43 = vperm.slane %v9949_v35, 2 }
 0x2a2   : > { %2868 = vmatpush.bf16.msra.mxu0 %v8348_v44  ;;  %2881 = vmatpush.bf16.msrb.mxu1 %v8356_v45  ;;  %v928_v44 = vperm.slane %v9949_v35, 3  ;;  %v8415_v45 = vld [vmem:[%s11525_s7 + $0x238] sm:$0xff] }
 0x2a4   : > { %2894 = vmatpush.bf16.msra.mxu2 %v8364_v46  ;;  %2907 = vmatpush.bf16.msrb.mxu3 %v8372_v47  ;;  %v8423_v46 = vld [vmem:[%s11525_s7 + $0x278] sm:$0xff] }
 0x2a6   : > { %2869 = vmatpush.bf16.msra.mxu0 %v8347_v48  ;;  %2882 = vmatpush.bf16.msrb.mxu1 %v8355_v49 }
 0x2a8   : > { %2895 = vmatpush.bf16.msra.mxu2 %v8363_v50  ;;  %2908 = vmatpush.bf16.msrb.mxu3 %v8371_v51 }
 0x2aa   : > { %2870 = vmatpush.bf16.msra.mxu0 %v8346_v52  ;;  %2883 = vmatpush.bf16.msrb.mxu1 %v8354_v53 }
 0x2ac   : > { %2896 = vmatpush.bf16.msra.mxu2 %v8362_v54  ;;  %2909 = vmatpush.bf16.msrb.mxu3 %v8370_v55  ;;  %v8414_v55 = vld [vmem:[%s11525_s7 + $0x230] sm:$0xff] }
 0x2ae   : > { %2871 = vmatpush.bf16.msra.mxu0 %v8345_v57  ;;  %2884 = vmatpush.bf16.msrb.mxu1 %v8353_v58  ;;  %v8422_v57 = vld [vmem:[%s11525_s7 + $0x270] sm:$0xff] }
 0x2b0   : > { %2897 = vmatpush.bf16.msra.mxu2 %v8361_v60  ;;  %2910 = vmatpush.bf16.msrb.mxu3 %v8369_v61  ;;  %v8431_v61 = vld [vmem:[%s11525_s7 + $0x2b8] sm:$0xff] }
 0x2b2   : > { %2872 = vmatpush.bf16.msra.mxu0 %v8344_v62  ;;  %2885 = vmatpush.bf16.msrb.mxu1 %v8352_v63  ;;  %v8439_v62 = vld [vmem:[%s11525_s7 + $0x2f8] sm:$0xff] }
 0x2b4   : > { %2898 = vmatpush.bf16.msra.mxu2 %v8360_v2  ;;  %2911 = vmatpush.bf16.msrb.mxu3 %v8368_v3  ;;  %v8421_v2 = vld [vmem:[%s11525_s7 + $0x268] sm:$0xff]  ;;  %v929_v3 = vperm.slane %v9949_v35, 4 }
 0x2b6   : > { %2917 = vmatpush.bf16.msrb.mxu0 %v8383_v0  ;;  %2930 = vmatpush.bf16.msra.mxu1 %v8391_v1  ;;  %v8413_v1 = vld [vmem:[%s11525_s7 + $0x228] sm:$0xff] }
 0x2b8   : > { %2943 = vmatpush.bf16.msrb.mxu2 %v8399_v4  ;;  %2956 = vmatpush.bf16.msra.mxu3 %v8407_v5  ;;  %v930_v4 = vperm.slane %v9949_v35, 5 }
 0x2ba   : > { %2918 = vmatpush.bf16.msrb.mxu0 %v8382_v6  ;;  %2931 = vmatpush.bf16.msra.mxu1 %v8390_v7  ;;  %v8430_v7 = vld [vmem:[%s11525_s7 + $0x2b0] sm:$0xff] }
 0x2bc   : > { %2944 = vmatpush.bf16.msrb.mxu2 %v8398_v8  ;;  %2957 = vmatpush.bf16.msra.mxu3 %v8406_v9  ;;  %v8438_v8 = vld [vmem:[%s11525_s7 + $0x2f0] sm:$0xff] }
 0x2be   : > { %2919 = vmatpush.bf16.msrb.mxu0 %v8381_v10  ;;  %2932 = vmatpush.bf16.msra.mxu1 %v8389_v11  ;;  %v8412_v11 = vld [vmem:[%s11525_s7 + $0x220] sm:$0xff] }
 0x2c0   : > { %2945 = vmatpush.bf16.msrb.mxu2 %v8397_v12  ;;  %2958 = vmatpush.bf16.msra.mxu3 %v8405_v13  ;;  %v8420_v12 = vld [vmem:[%s11525_s7 + $0x260] sm:$0xff] }
 0x2c2   : > { %2920 = vmatpush.bf16.msrb.mxu0 %v8380_v14  ;;  %2933 = vmatpush.bf16.msra.mxu1 %v8388_v15 }
 0x2c4   : > { %2946 = vmatpush.bf16.msrb.mxu2 %v8396_v16  ;;  %2959 = vmatpush.bf16.msra.mxu3 %v8404_v17  ;;  %v8429_v17 = vld [vmem:[%s11525_s7 + $0x2a8] sm:$0xff] }
 0x2c6   : > { %2921 = vmatpush.bf16.msrb.mxu0 %v8379_v19  ;;  %2934 = vmatpush.bf16.msra.mxu1 %v8387_v20  ;;  %v8437_v19 = vld [vmem:[%s11525_s7 + $0x2e8] sm:$0xff]  ;;  %v931_v20 = vperm.slane %v9949_v35, 6 }
 0x2c8   : > { %2947 = vmatpush.bf16.msrb.mxu2 %v8395_v21  ;;  %2960 = vmatpush.bf16.msra.mxu3 %v8403_v22  ;;  %v932_v21 = vperm.slane %v9949_v35, 7  ;;  %v8418_v35 = vld [vmem:[%s11525_s7 + $0x250] sm:$0xff] }
 0x2ca   : > { %2922 = vmatpush.bf16.msrb.mxu0 %v8378_v23  ;;  %2935 = vmatpush.bf16.msra.mxu1 %v8386_v24  ;;  %v8411_v24 = vld [vmem:[%s11525_s7 + $0x218] sm:$0xff] }
 0x2cc   : > { %2948 = vmatpush.bf16.msrb.mxu2 %v8394_v59  ;;  %2961 = vmatpush.bf16.msra.mxu3 %v8402_v26  ;;  %v8419_v59 = vld [vmem:[%s11525_s7 + $0x258] sm:$0xff] }
 0x2ce   : > { %2923 = vmatpush.bf16.msrb.mxu0 %v8377_v27  ;;  %2936 = vmatpush.bf16.msra.mxu1 %v8385_v25  ;;  %v8428_v25 = vld [vmem:[%s11525_s7 + $0x2a0] sm:$0xff] }
 0x2d0   : > { %2949 = vmatpush.bf16.msrb.mxu2 %v8393_v28  ;;  %2962 = vmatpush.bf16.msra.mxu3 %v8401_v29  ;;  %v8436_v28 = vld [vmem:[%s11525_s7 + $0x2e0] sm:$0xff] }
 0x2d1   : > { %v1606_v38 = vpop.f32.mrf.mxu0  ;;  %v1619_v39 = vpop.f32.mrf.mxu1 }
 0x2d2   : > { %2924 = vmatpush.bf16.msrb.mxu0 %v8376_v30  ;;  %2937 = vmatpush.bf16.msra.mxu1 %v8384_v32  ;;  %v1607_v40 = vadd.f32 %v1606_v38, %v925_v36  ;;  %v1620_v41 = vadd.f32 %v1619_v39, %v926_v37  ;;  %v8427_v38 = vld [vmem:[%s11525_s7 + $0x298] sm:$0xff] }
 0x2d3   : > { %v8435_v39 = vld [vmem:[%s11525_s7 + $0x2d8] sm:$0xff] }
 0x2d4   : > { %2950 = vmatpush.bf16.msrb.mxu2 %v8392_v33  ;;  %2963 = vmatpush.bf16.msra.mxu3 %v8400_v34  ;;  %v1805_v31 = vmax.f32 %v1607_v40, 0.0  ;;  %v1806_v42 = vmax.f32 %v1620_v41, 0.0  ;;  %v8410_v34 = vld [vmem:[%s11525_s7 + $0x210] sm:$0xff] }
 0x2d6   : > { %v1821_v47 = vpack.c.bf16 %v1805_v31, %v1805_v31  ;;  %v1822_v48 = vpack.c.bf16 %v1806_v42, %v1806_v42  ;;  %v10028_v31 = vld [vmem:[%s11524_s6 + $0x8] sm:$0xff] }
 0x2d7   : > { %v8409_v42 = vld [vmem:[%s11525_s7 + $0x208] sm:$0xff] }
 0x2d8   : > { %v1632_v49 = vpop.f32.mrf.mxu2  ;;  %v1645_v50 = vpop.f32.mrf.mxu3  ;;  %2873 = vmatmul.bf16.vlgmr.msra.gmra.mxu0 %v1821_v47  ;;  %2886 = vmatmul.bf16.vlgmr.msrb.gmra.mxu1 %v1822_v48  ;;  %v934_v47 = vperm.slane %v10028_v31, 1  ;;  %v8426_v48 = vld [vmem:[%s11525_s7 + $0x290] sm:$0xff] }
 0x2d9   : > { %v1633_v51 = vadd.f32 %v1632_v49, %v927_v43  ;;  %v1646_v52 = vadd.f32 %v1645_v50, %v928_v44  ;;  %2969 = vmatpush.bf16.msra.mxu0 %v8415_v45  ;;  %2982 = vmatpush.bf16.msrb.mxu1 %v8423_v46  ;;  %v1608_v53 = vpop.f32.mrf.mxu0  ;;  %v1621_v54 = vpop.f32.mrf.mxu1  ;;  %v8417_v43 = vld [vmem:[%s11525_s7 + $0x248] sm:$0xff]  ;;  %v933_v46 = vperm.slane %v10028_v31, 0  ;;  %v8434_v49 = vld [vmem:[%s11525_s7 + $0x2d0] sm:$0xff]  ;;  %v8408_v50 = vld [vmem:[%s11525_s7 + $0x200] sm:$0xff] }
 0x2da   : > { %v8447_v54 = vld [vmem:[%s11525_s7 + $0x338] sm:$0xff] }
 0x2db   : > { %v1807_v58 = vmax.f32 %v1633_v51, 0.0  ;;  %v1808_v60 = vmax.f32 %v1646_v52, 0.0  ;;  %v8416_v51 = vld [vmem:[%s11525_s7 + $0x240] sm:$0xff] }
 0x2dd   : > { %v1823_v63 = vpack.c.bf16 %v1807_v58, %v1807_v58  ;;  %v1824_v0 = vpack.c.bf16 %v1808_v60, %v1808_v60  ;;  %2970 = vmatpush.bf16.msra.mxu0 %v8414_v55  ;;  %2983 = vmatpush.bf16.msrb.mxu1 %v8422_v57  ;;  %v8455_v55 = vld [vmem:[%s11525_s7 + $0x378] sm:$0xff]  ;;  %v8425_v60 = vld [vmem:[%s11525_s7 + $0x288] sm:$0xff] }
 0x2df   : > { %2899 = vmatmul.bf16.vlgmr.msra.gmra.mxu2 %v1823_v63  ;;  %2912 = vmatmul.bf16.vlgmr.msrb.gmra.mxu3 %v1824_v0  ;;  %v935_v0 = vperm.slane %v10028_v31, 2 }
 0x2e0   : > { %2995 = vmatpush.bf16.msra.mxu2 %v8431_v61  ;;  %3008 = vmatpush.bf16.msrb.mxu3 %v8439_v62  ;;  %v1634_v5 = vpop.f32.mrf.mxu2  ;;  %v1647_v6 = vpop.f32.mrf.mxu3  ;;  %v8433_v61 = vld [vmem:[%s11525_s7 + $0x2c8] sm:$0xff] }
 0x2e1   : > { %2971 = vmatpush.bf16.msra.mxu0 %v8413_v1  ;;  %2984 = vmatpush.bf16.msrb.mxu1 %v8421_v2  ;;  %v1658_v9 = vpop.f32.mrf.mxu0  ;;  %v1671_v10 = vpop.f32.mrf.mxu1  ;;  %v936_v1 = vperm.slane %v10028_v31, 3  ;;  %v8446_v2 = vld [vmem:[%s11525_s7 + $0x330] sm:$0xff]  ;;  %v8424_v6 = vld [vmem:[%s11525_s7 + $0x280] sm:$0xff] }
 0x2e2   : > { %v1659_v13 = vadd.f32 %v1658_v9, %v929_v3  ;;  %v1672_v14 = vadd.f32 %v1671_v10, %v930_v4  ;;  %v8454_v3 = vld [vmem:[%s11525_s7 + $0x370] sm:$0xff]  ;;  %v8471_v9 = vld [vmem:[%s11525_s7 + $0x3f8] sm:$0xff] }
 0x2e4   : > { %v1809_v15 = vmax.f32 %v1659_v13, 0.0  ;;  %v1810_v16 = vmax.f32 %v1672_v14, 0.0  ;;  %2996 = vmatpush.bf16.msra.mxu2 %v8430_v7  ;;  %3009 = vmatpush.bf16.msrb.mxu3 %v8438_v8  ;;  %v8432_v7 = vld [vmem:[%s11525_s7 + $0x2c0] sm:$0xff]  ;;  %v8463_v8 = vld [vmem:[%s11525_s7 + $0x3b8] sm:$0xff] }
 0x2e5   : > { %2972 = vmatpush.bf16.msra.mxu0 %v8412_v11  ;;  %2985 = vmatpush.bf16.msrb.mxu1 %v8420_v12 }
 0x2e6   : > { %v1825_v22 = vpack.c.bf16 %v1809_v15, %v1809_v15  ;;  %v1826_v23 = vpack.c.bf16 %v1810_v16, %v1810_v16  ;;  %v8445_v16 = vld [vmem:[%s11525_s7 + $0x328] sm:$0xff] }
 0x2e8   : > { %2997 = vmatpush.bf16.msra.mxu2 %v8429_v17  ;;  %3010 = vmatpush.bf16.msrb.mxu3 %v8437_v19  ;;  %v1684_v26 = vpop.f32.mrf.mxu2  ;;  %v1697_v27 = vpop.f32.mrf.mxu3  ;;  %v8453_v17 = vld [vmem:[%s11525_s7 + $0x368] sm:$0xff] }
 0x2e9   : > { %v1685_v29 = vadd.f32 %v1684_v26, %v931_v20  ;;  %v1698_v30 = vadd.f32 %v1697_v27, %v932_v21  ;;  %2925 = vmatmul.bf16.vlgmr.msrb.gmra.mxu0 %v1825_v22  ;;  %2938 = vmatmul.bf16.vlgmr.msra.gmra.mxu1 %v1826_v23  ;;  %v1660_v32 = vpop.f32.mrf.mxu0  ;;  %v1673_v33 = vpop.f32.mrf.mxu1  ;;  %v8462_v21 = vld [vmem:[%s11525_s7 + $0x3b0] sm:$0xff]  ;;  %v8452_v26 = vld [vmem:[%s11525_s7 + $0x360] sm:$0xff] }
 0x2ea   : > { %2973 = vmatpush.bf16.msra.mxu0 %v8411_v24  ;;  %2986 = vmatpush.bf16.msrb.mxu1 %v8419_v59  ;;  %v8470_v22 = vld [vmem:[%s11525_s7 + $0x3f0] sm:$0xff]  ;;  %v8444_v59 = vld [vmem:[%s11525_s7 + $0x320] sm:$0xff]  ;;  %v8451_v32 = vld [vmem:[%s11525_s7 + $0x358] sm:$0xff] }
 0x2eb   : > { %v1811_v36 = vmax.f32 %v1685_v29, 0.0  ;;  %v1812_v37 = vmax.f32 %v1698_v30, 0.0  ;;  %v8469_v29 = vld [vmem:[%s11525_s7 + $0x3e8] sm:$0xff]  ;;  %v8443_v30 = vld [vmem:[%s11525_s7 + $0x318] sm:$0xff]  ;;  %v8460_v33 = vld [vmem:[%s11525_s7 + $0x3a0] sm:$0xff] }
 0x2ec   : > { %2998 = vmatpush.bf16.msra.mxu2 %v8428_v25  ;;  %3011 = vmatpush.bf16.msrb.mxu3 %v8436_v28  ;;  %v8461_v28 = vld [vmem:[%s11525_s7 + $0x3a8] sm:$0xff] }
 0x2ed   : > { %v1827_v40 = vpack.c.bf16 %v1811_v36, %v1811_v36  ;;  %v1828_v41 = vpack.c.bf16 %v1812_v37, %v1812_v37  ;;  %v8450_v36 = vld [vmem:[%s11525_s7 + $0x350] sm:$0xff]  ;;  %v8459_v37 = vld [vmem:[%s11525_s7 + $0x398] sm:$0xff] }
 0x2ee   : > { %2974 = vmatpush.bf16.msra.mxu0 %v8410_v34  ;;  %2987 = vmatpush.bf16.msrb.mxu1 %v8418_v35  ;;  %v8468_v34 = vld [vmem:[%s11525_s7 + $0x3e0] sm:$0xff]  ;;  %v8442_v35 = vld [vmem:[%s11525_s7 + $0x310] sm:$0xff] }
 0x2ef   : > { %2951 = vmatmul.bf16.vlgmr.msrb.gmra.mxu2 %v1827_v40  ;;  %2964 = vmatmul.bf16.vlgmr.msra.gmra.mxu3 %v1828_v41  ;;  %v8449_v40 = vld [vmem:[%s11525_s7 + $0x348] sm:$0xff]  ;;  %v937_v41 = vperm.slane %v10028_v31, 4 }
 0x2f0   : > { %2999 = vmatpush.bf16.msra.mxu2 %v8427_v38  ;;  %3012 = vmatpush.bf16.msrb.mxu3 %v8435_v39  ;;  %v1686_v44 = vpop.f32.mrf.mxu2  ;;  %v1699_v45 = vpop.f32.mrf.mxu3  ;;  %v8467_v38 = vld [vmem:[%s11525_s7 + $0x3d8] sm:$0xff]  ;;  %v8441_v39 = vld [vmem:[%s11525_s7 + $0x308] sm:$0xff] }
 0x2f1   : > { %v8466_v44 = vld [vmem:[%s11525_s7 + $0x3d0] sm:$0xff]  ;;  %v8440_v45 = vld [vmem:[%s11525_s7 + $0x300] sm:$0xff] }
 0x2f2   : > { %2975 = vmatpush.bf16.msra.mxu0 %v8409_v42  ;;  %2988 = vmatpush.bf16.msrb.mxu1 %v8417_v43  ;;  %v1710_v52 = vpop.f32.mrf.mxu0  ;;  %v1723_v53 = vpop.f32.mrf.mxu1  ;;  %v938_v42 = vperm.slane %v10028_v31, 5  ;;  %v8458_v43 = vld [vmem:[%s11525_s7 + $0x390] sm:$0xff] }
 0x2f3   : > { %v1711_v57 = vadd.f32 %v1710_v52, %v933_v46  ;;  %v1724_v58 = vadd.f32 %v1723_v53, %v934_v47  ;;  %v8448_v46 = vld [vmem:[%s11525_s7 + $0x340] sm:$0xff]  ;;  %v8465_v52 = vld [vmem:[%s11525_s7 + $0x3c8] sm:$0xff] }
 0x2f4   : > { %3000 = vmatpush.bf16.msra.mxu2 %v8426_v48  ;;  %3013 = vmatpush.bf16.msrb.mxu3 %v8434_v49 }
 0x2f5   : > { %v1813_v62 = vmax.f32 %v1711_v57, 0.0  ;;  %v1814_v63 = vmax.f32 %v1724_v58, 0.0  ;;  %v940_v57 = vperm.slane %v10028_v31, 7 }
 0x2f6   : > { %2976 = vmatpush.bf16.msra.mxu0 %v8408_v50  ;;  %2989 = vmatpush.bf16.msrb.mxu1 %v8416_v51  ;;  %v8457_v51 = vld [vmem:[%s11525_s7 + $0x388] sm:$0xff] }
 0x2f7   : > { %v1829_v4 = vpack.c.bf16 %v1813_v62, %v1813_v62  ;;  %v1830_v5 = vpack.c.bf16 %v1814_v63, %v1814_v63  ;;  %v8464_v62 = vld [vmem:[%s11525_s7 + $0x3c0] sm:$0xff] }
 0x2f8   : > { %3001 = vmatpush.bf16.msra.mxu2 %v8425_v60  ;;  %3014 = vmatpush.bf16.msrb.mxu3 %v8433_v61  ;;  %v8456_v61 = vld [vmem:[%s11525_s7 + $0x380] sm:$0xff] }
 0x2f9   : > { %2977 = vmatmul.bf16.vlgmr.msra.gmra.mxu0 %v1829_v4  ;;  %2990 = vmatmul.bf16.vlgmr.msrb.gmra.mxu1 %v1830_v5 }
 0x2fa   : > { %3021 = vmatpush.bf16.msrb.mxu0 %v8447_v54  ;;  %3034 = vmatpush.bf16.msra.mxu1 %v8455_v55  ;;  %v1712_v14 = vpop.f32.mrf.mxu0  ;;  %v1725_v15 = vpop.f32.mrf.mxu1  ;;  %v939_v55 = vperm.slane %v10028_v31, 6 }
 0x2fb   : > { %v1736_v10 = vpop.f32.mrf.mxu2  ;;  %v1749_v11 = vpop.f32.mrf.mxu3 }
 0x2fc   : > { %v1737_v12 = vadd.f32 %v1736_v10, %v935_v0  ;;  %v1750_v13 = vadd.f32 %v1749_v11, %v936_v1  ;;  %3002 = vmatpush.bf16.msra.mxu2 %v8424_v6  ;;  %3015 = vmatpush.bf16.msrb.mxu3 %v8432_v7 }
 0x2fe   : > { %3022 = vmatpush.bf16.msrb.mxu0 %v8446_v2  ;;  %3035 = vmatpush.bf16.msra.mxu1 %v8454_v3  ;;  %v1815_v19 = vmax.f32 %v1737_v12, 0.0  ;;  %v1816_v20 = vmax.f32 %v1750_v13, 0.0 }
 0x300   : > { %3047 = vmatpush.bf16.msrb.mxu2 %v8463_v8  ;;  %3060 = vmatpush.bf16.msra.mxu3 %v8471_v9  ;;  %v1831_v23 = vpack.c.bf16 %v1815_v19, %v1815_v19  ;;  %v1832_v24 = vpack.c.bf16 %v1816_v20, %v1816_v20 }
 0x302   : > { %3023 = vmatpush.bf16.msrb.mxu0 %v8445_v16  ;;  %3036 = vmatpush.bf16.msra.mxu1 %v8453_v17 }
 0x303   : > { %3003 = vmatmul.bf16.vlgmr.msra.gmra.mxu2 %v1831_v23  ;;  %3016 = vmatmul.bf16.vlgmr.msrb.gmra.mxu3 %v1832_v24  ;;  %v1738_v27 = vpop.f32.mrf.mxu2  ;;  %v1751_v25 = vpop.f32.mrf.mxu3  ;;  %v8748_v23 = vld [vmem:[%s11526_s8] ss:$0 sm:$0xff] }
 0x304   : > { %3048 = vmatpush.bf16.msrb.mxu2 %v8462_v21  ;;  %3061 = vmatpush.bf16.msra.mxu3 %v8470_v22 }
 0x306   : > { %3024 = vmatpush.bf16.msrb.mxu0 %v8444_v59  ;;  %3037 = vmatpush.bf16.msra.mxu1 %v8452_v26 }
 0x308   : > { %3049 = vmatpush.bf16.msrb.mxu2 %v8461_v28  ;;  %3062 = vmatpush.bf16.msra.mxu3 %v8469_v29 }
 0x30a   : > { %3025 = vmatpush.bf16.msrb.mxu0 %v8443_v30  ;;  %3038 = vmatpush.bf16.msra.mxu1 %v8451_v32 }
 0x30c   : > { %3050 = vmatpush.bf16.msrb.mxu2 %v8460_v33  ;;  %3063 = vmatpush.bf16.msra.mxu3 %v8468_v34 }
 0x30e   : > { %3026 = vmatpush.bf16.msrb.mxu0 %v8442_v35  ;;  %3039 = vmatpush.bf16.msra.mxu1 %v8450_v36 }
 0x310   : > { %3051 = vmatpush.bf16.msrb.mxu2 %v8459_v37  ;;  %3064 = vmatpush.bf16.msra.mxu3 %v8467_v38 }
 0x312   : > { %3027 = vmatpush.bf16.msrb.mxu0 %v8441_v39  ;;  %3040 = vmatpush.bf16.msra.mxu1 %v8449_v40  ;;  %v1762_v47 = vpop.f32.mrf.mxu0  ;;  %v1775_v48 = vpop.f32.mrf.mxu1 }
 0x313   : > { %v1763_v49 = vadd.f32 %v1762_v47, %v937_v41  ;;  %v1776_v50 = vadd.f32 %v1775_v48, %v938_v42 }
 0x314   : > { %3052 = vmatpush.bf16.msrb.mxu2 %v8458_v43  ;;  %3065 = vmatpush.bf16.msra.mxu3 %v8466_v44 }
 0x315   : > { %v1817_v53 = vmax.f32 %v1763_v49, 0.0  ;;  %v1818_v54 = vmax.f32 %v1776_v50, 0.0 }
 0x316   : > { %3028 = vmatpush.bf16.msrb.mxu0 %v8440_v45  ;;  %3041 = vmatpush.bf16.msra.mxu1 %v8448_v46 }
 0x317   : > { %v1833_v58 = vpack.c.bf16 %v1817_v53, %v1817_v53  ;;  %v1834_v60 = vpack.c.bf16 %v1818_v54, %v1818_v54 }
 0x318   : > { %3053 = vmatpush.bf16.msrb.mxu2 %v8457_v51  ;;  %3066 = vmatpush.bf16.msra.mxu3 %v8465_v52 }
 0x319   : > { %3029 = vmatmul.bf16.vlgmr.msrb.gmra.mxu0 %v1833_v58  ;;  %3042 = vmatmul.bf16.vlgmr.msra.gmra.mxu1 %v1834_v60 }
 0x31a   : > { %v1788_v63 = vpop.f32.mrf.mxu2  ;;  %v1801_v0 = vpop.f32.mrf.mxu3 }
 0x31b   : > { %v1789_v1 = vadd.f32 %v1788_v63, %v939_v55  ;;  %v1802_v2 = vadd.f32 %v1801_v0, %v940_v57  ;;  %v1764_v3 = vpop.f32.mrf.mxu0  ;;  %v1777_v31 = vpop.f32.mrf.mxu1  ;;  %v8479_v63 = vld [vmem:[%s11521_s3 + $0x78] sm:$0xff] }
 0x31c   : > { %3054 = vmatpush.bf16.msrb.mxu2 %v8456_v61  ;;  %3067 = vmatpush.bf16.msra.mxu3 %v8464_v62  ;;  %v8478_v31 = vld [vmem:[%s11521_s3 + $0x70] sm:$0xff] }
 0x31d   : > { %v1819_v4 = vmax.f32 %v1789_v1, 0.0  ;;  %v1820_v5 = vmax.f32 %v1802_v2, 0.0  ;;  %3175 = vmatpush.bf16.msra.mxu0 %v8479_v63  ;;  %v8569_v63 = vld [vmem:[%s11523_s5 + $0x6c4] sm:$0xf0] }
 0x31f   : > { %v1835_v6 = vpack.c.bf16 %v1819_v4, %v1819_v4  ;;  %v1836_v7 = vpack.c.bf16 %v1820_v5, %v1820_v5  ;;  %v8476_v4 = vld [vmem:[%s11521_s3 + $0x60] sm:$0xff]  ;;  %v8475_v5 = vld [vmem:[%s11521_s3 + $0x58] sm:$0xff] }
 0x321   : > { %3055 = vmatmul.bf16.vlgmr.msrb.gmra.mxu2 %v1835_v6  ;;  %3068 = vmatmul.bf16.vlgmr.msra.gmra.mxu3 %v1836_v7  ;;  %v8474_v6 = vld [vmem:[%s11521_s3 + $0x50] sm:$0xff]  ;;  %v8473_v7 = vld [vmem:[%s11521_s3 + $0x48] sm:$0xff] }
 0x322   : > { %v1790_v8 = vpop.f32.mrf.mxu2  ;;  %v1803_v9 = vpop.f32.mrf.mxu3  ;;  %3176 = vmatpush.bf16.msra.mxu0 %v8478_v31  ;;  %v7180_v31 = vld [vmem:[%s11523_s5 + $0x600] sm:$0xf] }
 0x323   : > { %v8472_v8 = vld [vmem:[%s11521_s3 + $0x40] sm:$0xff] }
 0x355   : > { %v2874_v10 = vpop.f32.mrf.mxu0  ;;  %v2887_v11 = vpop.f32.mrf.mxu1 }
 0x356   : > { %v2875_v26 = vadd.f32 %v8748_v23, %v2874_v10 }
 0x358   : > { %v2888_v28 = vadd.f32 %v2887_v11, %v2875_v26  ;;  %v8751_v26 = vld [vmem:[%s11522_s4 + $0x1] ss:$0 sm:$0xff] }
 0x35d   : > { %v2876_v12 = vpop.f32.mrf.mxu0  ;;  %v2889_v13 = vpop.f32.mrf.mxu1 }
 0x362   : > { %v2900_v14 = vpop.f32.mrf.mxu2  ;;  %v2913_v15 = vpop.f32.mrf.mxu3 }
 0x363   : > { %v2901_v29 = vadd.f32 %v2900_v14, %v2888_v28 }
 0x365   : > { %v2914_v33 = vadd.f32 %v2913_v15, %v2901_v29 }
 0x366   : > { %v2926_v16 = vpop.f32.mrf.mxu0  ;;  %v2939_v17 = vpop.f32.mrf.mxu1 }
 0x367   : > { %v2927_v36 = vadd.f32 %v2926_v16, %v2914_v33  ;;  %v8592_v33 = vld [vmem:[%s11523_s5 + $0x784] sm:$0xf] }
 0x369   : > { %v2940_v39 = vadd.f32 %v2939_v17, %v2927_v36  ;;  %v7380_v36 = vld [vmem:[%s11523_s5 + $0x788] sm:$0xf] }
 0x36a   : > { %v2902_v19 = vpop.f32.mrf.mxu2  ;;  %v2915_v20 = vpop.f32.mrf.mxu3 }
 0x36b   : > { %v8749_v19 = vld [vmem:[%s11529_s11] ss:$0 sm:$0xff] }
 0x36e   : > { %v2928_v21 = vpop.f32.mrf.mxu0  ;;  %v2941_v22 = vpop.f32.mrf.mxu1 }
 0x36f   : > { %v8750_v22 = vld [vmem:[%s11530_s12] ss:$0 sm:$0xff] }
 0x372   : > { %v2952_v24 = vpop.f32.mrf.mxu2  ;;  %v2965_v59 = vpop.f32.mrf.mxu3 }
 0x373   : > { %v2953_v40 = vadd.f32 %v2952_v24, %v2940_v39 }
 0x375   : > { %v2966_v41 = vadd.f32 %v2965_v59, %v2953_v40  ;;  %v8593_v40 = vld [vmem:[%s11523_s5 + $0x78c] sm:$0xf] }
 0x376   : > { %v2978_v27 = vpop.f32.mrf.mxu0  ;;  %v2991_v25 = vpop.f32.mrf.mxu1 }
 0x377   : > { %v2979_v44 = vadd.f32 %v2978_v27, %v2966_v41  ;;  %v7382_v41 = vld [vmem:[%s11523_s5 + $0x7c8] sm:$0xf0] }
 0x379   : > { %v2992_v45 = vadd.f32 %v2991_v25, %v2979_v44  ;;  %v8584_v44 = vld [vmem:[%s11523_s5 + $0x73c] sm:$0xf0] }
 0x37a   : > { %v2954_v30 = vpop.f32.mrf.mxu2  ;;  %v2967_v32 = vpop.f32.mrf.mxu3 }
 0x37b   : > { %v7372_v30 = vld [vmem:[%s11523_s5 + $0x780] sm:$0xf] }
 0x37c   : > { %v8600_v32 = vld [vmem:[%s11523_s5 + $0x7bc] sm:$0xf0] }
 0x37e   : > { %v2980_v34 = vpop.f32.mrf.mxu0  ;;  %v2993_v35 = vpop.f32.mrf.mxu1 }
 0x37f   : > { %v7373_v34 = vor.u32 %v8600_v32, %v7372_v30  ;;  %v7374_v35 = vld [vmem:[%s11523_s5 + $0x7c0] sm:$0xf0] }
 0x380   : > { %v7054_v32 = vld [vmem:[%s11523_s5 + $0x540] sm:$0xf0] }
 0x381   : > { %4028 = vmatpush.bf16.msrb.mxu1 %v7373_v34  ;;  %v8521_v34 = vld [vmem:[%s11523_s5 + $0x544] sm:$0xf0] }
 0x386   : > { %v3004_v37 = vpop.f32.mrf.mxu2  ;;  %v3017_v38 = vpop.f32.mrf.mxu3 }
 0x387   : > { %v3005_v48 = vadd.f32 %v3004_v37, %v2992_v45  ;;  %v8601_v37 = vld [vmem:[%s11523_s5 + $0x7c4] sm:$0xf0]  ;;  %v8576_v45 = vld [vmem:[%s11523_s5 + $0x704] sm:$0xf] }
 0x388   : > { %v7381_v39 = vor.u32 %v8601_v37, %v7380_v36  ;;  %v7062_v36 = vld [vmem:[%s11523_s5 + $0x548] sm:$0xf0] }
 0x389   : > { %v3018_v49 = vadd.f32 %v3017_v38, %v3005_v48  ;;  %v7377_v38 = vor.u32 %v8592_v33, %v7374_v35  ;;  %v7060_v33 = vld [vmem:[%s11523_s5 + $0x508] sm:$0xf]  ;;  %v8513_v35 = vld [vmem:[%s11523_s5 + $0x50c] sm:$0xf] }
 0x38a   : > { %4054 = vmatpush.bf16.msrb.mxu3 %v7381_v39  ;;  %v7061_v39 = vor.u32 %v8521_v34, %v7060_v33  ;;  %v7262_v34 = vld [vmem:[%s11523_s5 + $0x6d0] sm:$0xf0] }
 0x38b   : > { %4041 = vmatpush.bf16.msra.mxu2 %v7377_v38 }
 0x38e   : > { %v3006_v42 = vpop.f32.mrf.mxu2  ;;  %v3019_v43 = vpop.f32.mrf.mxu3 }
 0x38f   : > { %v7308_v42 = vld [vmem:[%s11523_s5 + $0x700] sm:$0xf]  ;;  %v7385_v43 = vor.u32 %v8593_v40, %v7382_v41 }
 0x390   : > { %v6988_v40 = vld [vmem:[%s11523_s5 + $0x480] sm:$0xf] }
 0x391   : > { %v8504_v41 = vld [vmem:[%s11523_s5 + $0x4bc] sm:$0xf0] }
 0x396   : > { %v3030_v46 = vpop.f32.mrf.mxu0  ;;  %v3043_v47 = vpop.f32.mrf.mxu1 }
 0x397   : > { %v3031_v50 = vadd.f32 %v3030_v46, %v3018_v49  ;;  %v7310_v46 = vld [vmem:[%s11523_s5 + $0x740] sm:$0xf0]  ;;  %v7316_v49 = vld [vmem:[%s11523_s5 + $0x708] sm:$0xf] }
 0x398   : > { %v7313_v48 = vor.u32 %v8576_v45, %v7310_v46  ;;  %v6996_v45 = vld [vmem:[%s11523_s5 + $0x488] sm:$0xf] }
 0x399   : > { %v3044_v53 = vadd.f32 %v3043_v47, %v3031_v50  ;;  %v7309_v47 = vor.u32 %v8584_v44, %v7308_v42  ;;  %v8585_v50 = vld [vmem:[%s11523_s5 + $0x744] sm:$0xf0]  ;;  %v8496_v42 = vld [vmem:[%s11523_s5 + $0x484] sm:$0xf] }
 0x39a   : > { %4042 = vmatpush.bf16.msra.mxu2 %v7313_v48  ;;  %v6990_v44 = vld [vmem:[%s11523_s5 + $0x4c0] sm:$0xf0]  ;;  %v8505_v46 = vld [vmem:[%s11523_s5 + $0x4c4] sm:$0xf0]  ;;  %v6998_v48 = vld [vmem:[%s11523_s5 + $0x4c8] sm:$0xf0] }
 0x39b   : > { %4029 = vmatpush.bf16.msrb.mxu1 %v7309_v47  ;;  %v8497_v47 = vld [vmem:[%s11523_s5 + $0x48c] sm:$0xf] }
 0x39e   : > { %v3032_v51 = vpop.f32.mrf.mxu0  ;;  %v3045_v52 = vpop.f32.mrf.mxu1 }
 0x39f   : > { %v8577_v51 = vld [vmem:[%s11523_s5 + $0x70c] sm:$0xf]  ;;  %v7317_v52 = vor.u32 %v8585_v50, %v7316_v49  ;;  %v6989_v49 = vor.u32 %v8504_v41, %v6988_v40  ;;  %v6993_v50 = vor.u32 %v8496_v42, %v6990_v44  ;;  %v7270_v40 = vld [vmem:[%s11523_s5 + $0x6d8] sm:$0xf0]  ;;  %v7196_v42 = vld [vmem:[%s11523_s5 + $0x610] sm:$0xf] }
 0x3a0   : > { %v8546_v44 = vld [vmem:[%s11523_s5 + $0x614] sm:$0xf] }
 0x3a1   : > { %4055 = vmatpush.bf16.msrb.mxu3 %v7317_v52 }
 0x3a4   : > { %v3056_v54 = vpop.f32.mrf.mxu2  ;;  %v3069_v55 = vpop.f32.mrf.mxu3 }
 0x3a5   : > { %v3057_v57 = vadd.f32 %v3056_v54, %v3044_v53  ;;  %v7318_v53 = vld [vmem:[%s11523_s5 + $0x748] sm:$0xf0]  ;;  %v7244_v54 = vld [vmem:[%s11523_s5 + $0x680] sm:$0xf] }
 0x3a7   : > { %v3070_v58 = vadd.f32 %v3069_v55, %v3057_v57  ;;  %v8568_v55 = vld [vmem:[%s11523_s5 + $0x6bc] sm:$0xf0]  ;;  %v7321_v57 = vor.u32 %v8577_v51, %v7318_v53  ;;  %v6997_v51 = vor.u32 %v8505_v46, %v6996_v45  ;;  %v7001_v53 = vor.u32 %v8497_v47, %v6998_v48  ;;  %v7198_v46 = vld [vmem:[%s11523_s5 + $0x650] sm:$0xf0]  ;;  %v7204_v47 = vld [vmem:[%s11523_s5 + $0x618] sm:$0xf] }
 0x3a8   : > { %v8555_v48 = vld [vmem:[%s11523_s5 + $0x654] sm:$0xf0] }
 0x3a9   : > { %v3073_v60 = vadd.f32 %v3070_v58, %v9363_v56  ;;  %v8477_v56 = vld [vmem:[%s11521_s3 + $0x68] sm:$0xff]  ;;  %v8560_v58 = vld [vmem:[%s11523_s5 + $0x684] sm:$0xf] }
 0x3aa   : > { %3177 = vmatpush.bf16.msra.mxu0 %v8477_v56  ;;  %v8552_v56 = vld [vmem:[%s11523_s5 + $0x63c] sm:$0xf0] }
 0x3ab   : > { %3076 = vadd.xlane.f32.xlu1 %v3073_v60 }
 0x3ac   : > { %v3058_v61 = vpop.f32.mrf.mxu2  ;;  %v3071_v62 = vpop.f32.mrf.mxu3 }
 0x3ad   : > { %v7252_v61 = vld [vmem:[%s11523_s5 + $0x688] sm:$0xf]  ;;  %v7245_v62 = vor.u32 %v8568_v55, %v7244_v54 }
 0x3ae   : > { %3178 = vmatpush.bf16.msra.mxu0 %v8476_v4  ;;  %v8544_v4 = vld [vmem:[%s11523_s5 + $0x604] sm:$0xf] }
 0x3af   : > { %4030 = vmatpush.bf16.msrb.mxu1 %v7245_v62  ;;  %v6926_v62 = vld [vmem:[%s11523_s5 + $0x440] sm:$0xf0] }
 0x3b2   : > { %3179 = vmatpush.bf16.msra.mxu0 %v8475_v5 }
 0x3b6   : > { %3180 = vmatpush.bf16.msra.mxu0 %v8474_v6  ;;  %v7182_v6 = vld [vmem:[%s11523_s5 + $0x640] sm:$0xf0] }
 0x3ba   : > { %3181 = vmatpush.bf16.msra.mxu0 %v8473_v7  ;;  %v7188_v7 = vld [vmem:[%s11523_s5 + $0x608] sm:$0xf] }
 0x3be   : > { %3182 = vmatpush.bf16.msra.mxu0 %v8472_v8  ;;  %v8553_v8 = vld [vmem:[%s11523_s5 + $0x644] sm:$0xf0] }
 0x3c2   : > { %4067 = vmatpush.bf16.msrb.mxu0 %v7385_v43  ;;  %v7065_v43 = vor.u32 %v8513_v35, %v7062_v36  ;;  %v7268_v35 = vld [vmem:[%s11523_s5 + $0x698] sm:$0xf] }
 0x3c3   : > { %v8571_v36 = vld [vmem:[%s11523_s5 + $0x6d4] sm:$0xf0] }
 0x3c6   : > { %4068 = vmatpush.bf16.msrb.mxu0 %v7321_v57 }
 0x41e   : > { %v3077_v0 = vpop.xlane.xlu1 %3076 }
 0x41f   : > { %v3078_v1 = vmul.f32 %v3077_v0, %v9116_v18  ;;  %v8561_v0 = vld [vmem:[%s11523_s5 + $0x68c] sm:$0xf] }
 0x421   : > { %v3079_v2 = vsub.f32 %v3073_v60, %v3078_v1  ;;  %v7246_v60 = vld [vmem:[%s11523_s5 + $0x6c0] sm:$0xf0]  ;;  %v7254_v1 = vld [vmem:[%s11523_s5 + $0x6c8] sm:$0xf0] }
 0x422   : > { %v7257_v5 = vor.u32 %v8561_v0, %v7254_v1  ;;  %v8489_v0 = vld [vmem:[%s11523_s5 + $0x444] sm:$0xf0] }
 0x423   : > { %v3080_v3 = vmul.f32 %v3079_v2, %v3079_v2 }
 0x424   : > { %4069 = vmatpush.bf16.msrb.mxu0 %v7257_v5  ;;  %v8602_v5 = vld [vmem:[%s11523_s5 + $0x7cc] sm:$0xf0] }
 0x425   : > { %3081 = vadd.xlane.f32.xlu1 %v3080_v3  ;;  %v7253_v3 = vor.u32 %v8569_v63, %v7252_v61  ;;  %v6932_v63 = vld [vmem:[%s11523_s5 + $0x408] sm:$0xf] }
 0x427   : > { %4056 = vmatpush.bf16.msrb.mxu3 %v7253_v3  ;;  %v8481_v3 = vld [vmem:[%s11523_s5 + $0x40c] sm:$0xf] }
 0x498   : > { %v3082_v9 = vpop.xlane.xlu1 %3081 }
 0x499   : > { %v3083_v10 = vmul.f32 %v3082_v9, %v9116_v18  ;;  %v8545_v9 = vld [vmem:[%s11523_s5 + $0x60c] sm:$0xf] }
 0x49b   : > { %v3084_v11 = vadd.f32 1e-05, %v3083_v10  ;;  %v7190_v10 = vld [vmem:[%s11523_s5 + $0x648] sm:$0xf0] }
 0x49d   : > { %8775 = vrsqrt.f32 %v3084_v11  ;;  %vm3091_vm15 = vweird.f32 %v3084_v11 }
 0x4a3   : > { %v8776_v12 = vpop.eup %8775 }
 0x4a4   : > { %v3086_v13 = vmul.f32 %v8776_v12, %v3084_v11  ;;  %vm3092_vm14 = vweird.f32 %v8776_v12  ;;  %v7181_v11 = vor.u32 %v8552_v56, %v7180_v31  ;;  %v6934_v31 = vld [vmem:[%s11523_s5 + $0x448] sm:$0xf0]  ;;  %v7388_v56 = vld [vmem:[%s11523_s5 + $0x790] sm:$0xf] }
 0x4a5   : > { %vm3093_vm0 = vmor %vm3091_vm15, %vm3092_vm14 }
 0x4a6   : > { %v3087_v14 = vmul.f32 %v8776_v12, %v3086_v13  ;;  %v7189_v13 = vor.u32 %v8553_v8, %v7188_v7  ;;  %4031 = vmatpush.bf16.msrb.mxu1 %v7181_v11  ;;  %v7390_v7 = vld [vmem:[%s11523_s5 + $0x7d0] sm:$0xf0]  ;;  %v7389_v8 = vor.u32 %v8602_v5, %v7388_v56  ;;  %v8603_v11 = vld [vmem:[%s11523_s5 + $0x7d4] sm:$0xf0]  ;;  %v8522_v56 = vld [vmem:[%s11523_s5 + $0x54c] sm:$0xf0] }
 0x4a8   : > { %v3088_v15 = vmul.f32 0.5, %v3087_v14  ;;  %v7116_v14 = vld [vmem:[%s11523_s5 + $0x580] sm:$0xf]  ;;  %4057 = vmatpush.bf16.msrb.mxu3 %v7189_v13 }
 0x4aa   : > { %v3089_v16 = vsub.f32 1.5, %v3088_v15  ;;  %v8536_v15 = vld [vmem:[%s11523_s5 + $0x5bc] sm:$0xf0] }
 0x4ac   : > { %v3090_v17 = vmul.f32 %v8776_v12, %v3089_v16  ;;  %v8528_v16 = vld [vmem:[%s11523_s5 + $0x584] sm:$0xf] }
 0x4ae   : > { %v3094_v20 = vsel %vm3093_vm0, %v8776_v12, %v3090_v17  ;;  %v7185_v12 = vor.u32 %v8544_v4, %v7182_v6  ;;  %v7193_v17 = vor.u32 %v8545_v9, %v7190_v10  ;;  %v6937_v4 = vor.u32 %v8481_v3, %v6934_v31  ;;  %v8594_v6 = vld [vmem:[%s11523_s5 + $0x794] sm:$0xf]  ;;  %v7396_v10 = vld [vmem:[%s11523_s5 + $0x798] sm:$0xf]  ;;  %v7068_v31 = vld [vmem:[%s11523_s5 + $0x510] sm:$0xf] }
 0x4af   : > { %v3095_v21 = vmul.f32 %v3094_v20, %v3079_v2  ;;  %v7249_v2 = vor.u32 %v8560_v58, %v7246_v60  ;;  %v7124_v20 = vld [vmem:[%s11523_s5 + $0x588] sm:$0xf]  ;;  %v6924_v58 = vld [vmem:[%s11523_s5 + $0x400] sm:$0xf]  ;;  %v7393_v9 = vor.u32 %v8594_v6, %v7390_v7  ;;  %v7397_v13 = vor.u32 %v8603_v11, %v7396_v10  ;;  %v7070_v6 = vld [vmem:[%s11523_s5 + $0x550] sm:$0xf0] }
 0x4b0   : > { %4070 = vmatpush.bf16.msrb.mxu0 %v7193_v17  ;;  %v8488_v60 = vld [vmem:[%s11523_s5 + $0x43c] sm:$0xf0]  ;;  %v7069_v5 = vor.u32 %v8522_v56, %v7068_v31  ;;  %v7076_v7 = vld [vmem:[%s11523_s5 + $0x518] sm:$0xf]  ;;  %v8515_v11 = vld [vmem:[%s11523_s5 + $0x51c] sm:$0xf] }
 0x4b1   : > { %v3099_v23 = vmul.f32 %v8749_v19, %v3095_v21  ;;  %4043 = vmatpush.bf16.msra.mxu2 %v7249_v2  ;;  %v7118_v19 = vld [vmem:[%s11523_s5 + $0x5c0] sm:$0xf0]  ;;  %v8537_v21 = vld [vmem:[%s11523_s5 + $0x5c4] sm:$0xf0]  ;;  %v6925_v61 = vor.u32 %v8488_v60, %v6924_v58  ;;  %v6933_v2 = vor.u32 %v8489_v0, %v6932_v63  ;;  %v8530_v58 = vld [vmem:[%s11523_s5 + $0x594] sm:$0xf] }
 0x4b2   : > { %v8588_v31 = vld [vmem:[%s11523_s5 + $0x75c] sm:$0xf0] }
 0x4b3   : > { %v3103_v24 = vadd.f32 %v8750_v22, %v3099_v23  ;;  %v8529_v22 = vld [vmem:[%s11523_s5 + $0x58c] sm:$0xf] }
 0x4b4   : > { %v7126_v23 = vld [vmem:[%s11523_s5 + $0x5c8] sm:$0xf0] }
 0x4b5   : > { %v3104_v59 = vpack.c.bf16 %v3103_v24, %v3103_v24  ;;  %4044 = vmatpush.bf16.msra.mxu2 %v7185_v12  ;;  %v7129_v30 = vor.u32 %v8529_v22, %v7126_v23  ;;  %v8595_v12 = vld [vmem:[%s11523_s5 + $0x79c] sm:$0xf]  ;;  %v7332_v22 = vld [vmem:[%s11523_s5 + $0x718] sm:$0xf] }
 0x4b7   : > { %3183 = vmatmul.bf16.vlgmr.msra.gmra.mxu0 %v3104_v59  ;;  %v7121_v59 = vor.u32 %v8528_v16, %v7118_v19  ;;  %v8586_v16 = vld [vmem:[%s11523_s5 + $0x74c] sm:$0xf0] }
 0x4b8   : > { %4071 = vmatpush.bf16.msrb.mxu0 %v7129_v30  ;;  %v8570_v30 = vld [vmem:[%s11523_s5 + $0x6cc] sm:$0xf0] }
 0x4b9   : > { %4045 = vmatpush.bf16.msra.mxu2 %v7121_v59  ;;  %v8579_v59 = vld [vmem:[%s11523_s5 + $0x71c] sm:$0xf] }
 0x4bc   : > { %4072 = vmatpush.bf16.msrb.mxu0 %v7065_v43  ;;  %v8554_v43 = vld [vmem:[%s11523_s5 + $0x64c] sm:$0xf0] }
 0x4bd   : > { %v7197_v45 = vor.u32 %v8554_v43, %v7196_v42 }
 0x4c0   : > { %4073 = vmatpush.bf16.msrb.mxu0 %v7001_v53 }
 0x4c4   : > { %4074 = vmatpush.bf16.msrb.mxu0 %v6937_v4  ;;  %v8514_v4 = vld [vmem:[%s11523_s5 + $0x514] sm:$0xf] }
 0x534   : > { %v3184_v27 = vpop.f32.mrf.mxu0 }
 0x535   : > { %v3185_v25 = vadd.f32 %v8751_v26, %v3184_v27  ;;  %v7125_v26 = vor.u32 %v8537_v21, %v7124_v20  ;;  %v7052_v27 = vld [vmem:[%s11523_s5 + $0x500] sm:$0xf]  ;;  %v8578_v20 = vld [vmem:[%s11523_s5 + $0x714] sm:$0xf] }
 0x536   : > { %v7326_v21 = vld [vmem:[%s11523_s5 + $0x750] sm:$0xf0] }
 0x537   : > { %v10203_v28 = vadd.f32 %v3185_v25, %v3103_v24  ;;  %v7117_v24 = vor.u32 %v8536_v15, %v7116_v14  ;;  %v8520_v25 = vld [vmem:[%s11523_s5 + $0x53c] sm:$0xf0]  ;;  %4058 = vmatpush.bf16.msrb.mxu3 %v7125_v26  ;;  %v7398_v14 = vld [vmem:[%s11523_s5 + $0x7d8] sm:$0xf0]  ;;  %v7324_v15 = vld [vmem:[%s11523_s5 + $0x710] sm:$0xf]  ;;  %v7329_v23 = vor.u32 %v8578_v20, %v7326_v21 }
 0x538   : > { %v7053_v37 = vor.u32 %v8520_v25, %v7052_v27  ;;  %v7401_v17 = vor.u32 %v8595_v12, %v7398_v14  ;;  %v7325_v19 = vor.u32 %v8586_v16, %v7324_v15  ;;  %v7334_v26 = vld [vmem:[%s11523_s5 + $0x758] sm:$0xf0]  ;;  %v7004_v14 = vld [vmem:[%s11523_s5 + $0x490] sm:$0xf]  ;;  %v8498_v16 = vld [vmem:[%s11523_s5 + $0x494] sm:$0xf] }
 0x539   : > { %3193 = vadd.xlane.f32.xlu2 %v10203_v28  ;;  %4032 = vmatpush.bf16.msrb.mxu1 %v7117_v24  ;;  %v8587_v24 = vld [vmem:[%s11523_s5 + $0x754] sm:$0xf0]  ;;  %v7337_v25 = vor.u32 %v8579_v59, %v7334_v26  ;;  %v7078_v12 = vld [vmem:[%s11523_s5 + $0x558] sm:$0xf0]  ;;  %v8506_v15 = vld [vmem:[%s11523_s5 + $0x4cc] sm:$0xf0] }
 0x53a   : > { %4119 = vmatpush.bf16.msra.mxu0 %v7401_v17  ;;  %v7333_v27 = vor.u32 %v8587_v24, %v7332_v22  ;;  %v7005_v17 = vor.u32 %v8506_v15, %v7004_v14  ;;  %v7012_v20 = vld [vmem:[%s11523_s5 + $0x498] sm:$0xf]  ;;  %v8499_v24 = vld [vmem:[%s11523_s5 + $0x49c] sm:$0xf]  ;;  %v8572_v14 = vld [vmem:[%s11523_s5 + $0x6dc] sm:$0xf0] }
 0x53b   : > { %4059 = vmatpush.bf16.msrb.mxu3 %v7061_v39  ;;  %v8563_v39 = vld [vmem:[%s11523_s5 + $0x69c] sm:$0xf]  ;;  %v8507_v21 = vld [vmem:[%s11523_s5 + $0x4d4] sm:$0xf0] }
 0x53c   : > { %v3186_v29 = vpop.f32.mrf.mxu0  ;;  %v7273_v41 = vor.u32 %v8563_v39, %v7270_v40  ;;  %v7014_v59 = vld [vmem:[%s11523_s5 + $0x4d8] sm:$0xf0] }
 0x53d   : > { %v8512_v29 = vld [vmem:[%s11523_s5 + $0x504] sm:$0xf]  ;;  %4033 = vmatpush.bf16.msrb.mxu1 %v7053_v37  ;;  %v7017_v26 = vor.u32 %v8499_v24, %v7014_v59 }
 0x53e   : > { %v7057_v38 = vor.u32 %v8512_v29, %v7054_v32  ;;  %v7260_v29 = vld [vmem:[%s11523_s5 + $0x690] sm:$0xf]  ;;  %v8562_v32 = vld [vmem:[%s11523_s5 + $0x694] sm:$0xf]  ;;  %4120 = vmatpush.bf16.msra.mxu0 %v7337_v25 }
 0x53f   : > { %4060 = vmatpush.bf16.msrb.mxu3 %v6997_v51  ;;  %v7261_v33 = vor.u32 %v8570_v30, %v7260_v29  ;;  %v7265_v37 = vor.u32 %v8562_v32, %v7262_v34  ;;  %v8547_v51 = vld [vmem:[%s11523_s5 + $0x61c] sm:$0xf]  ;;  %v8490_v25 = vld [vmem:[%s11523_s5 + $0x44c] sm:$0xf0]  ;;  %v8482_v29 = vld [vmem:[%s11523_s5 + $0x414] sm:$0xf] }
 0x540   : > { %4046 = vmatpush.bf16.msra.mxu2 %v7057_v38  ;;  %v7269_v38 = vor.u32 %v8571_v36, %v7268_v35  ;;  %v6942_v32 = vld [vmem:[%s11523_s5 + $0x450] sm:$0xf0]  ;;  %v8491_v34 = vld [vmem:[%s11523_s5 + $0x454] sm:$0xf0] }
 0x541   : > { %4034 = vmatpush.bf16.msrb.mxu1 %v6989_v49  ;;  %v7201_v49 = vor.u32 %v8546_v44, %v7198_v46  ;;  %v6945_v35 = vor.u32 %v8482_v29, %v6942_v32  ;;  %v7214_v32 = vld [vmem:[%s11523_s5 + $0x660] sm:$0xf0] }
 0x542   : > { %4121 = vmatpush.bf16.msra.mxu0 %v7273_v41 }
 0x543   : > { %4061 = vmatpush.bf16.msrb.mxu3 %v6933_v2  ;;  %v7142_v2 = vld [vmem:[%s11523_s5 + $0x5d8] sm:$0xf0] }
 0x544   : > { %4047 = vmatpush.bf16.msra.mxu2 %v6993_v50  ;;  %v7205_v50 = vor.u32 %v8555_v48, %v7204_v47 }
 0x545   : > { %4035 = vmatpush.bf16.msrb.mxu1 %v6925_v61  ;;  %v7140_v61 = vld [vmem:[%s11523_s5 + $0x598] sm:$0xf] }
 0x547   : > { %4106 = vmatpush.bf16.msra.mxu3 %v7397_v13  ;;  %v7081_v13 = vor.u32 %v8515_v11, %v7078_v12 }
 0x549   : > { %4080 = vmatpush.bf16.msra.mxu1 %v7389_v8  ;;  %v8523_v8 = vld [vmem:[%s11523_s5 + $0x554] sm:$0xf0] }
 0x54a   : > { %v7077_v10 = vor.u32 %v8523_v8, %v7076_v7  ;;  %v7348_v7 = vld [vmem:[%s11523_s5 + $0x728] sm:$0xf] }
 0x54b   : > { %4107 = vmatpush.bf16.msra.mxu3 %v7333_v27  ;;  %v6940_v27 = vld [vmem:[%s11523_s5 + $0x410] sm:$0xf]  ;;  %v8589_v8 = vld [vmem:[%s11523_s5 + $0x764] sm:$0xf0] }
 0x54c   : > { %v6941_v30 = vor.u32 %v8490_v25, %v6940_v27  ;;  %v7349_v15 = vor.u32 %v8589_v8, %v7348_v7  ;;  %v8556_v27 = vld [vmem:[%s11523_s5 + $0x65c] sm:$0xf0]  ;;  %v8509_v7 = vld [vmem:[%s11523_s5 + $0x4e4] sm:$0xf0]  ;;  %v8501_v8 = vld [vmem:[%s11523_s5 + $0x4ac] sm:$0xf] }
 0x54d   : > { %4081 = vmatpush.bf16.msra.mxu1 %v7325_v19  ;;  %v7006_v19 = vld [vmem:[%s11523_s5 + $0x4d0] sm:$0xf0] }
 0x54e   : > { %v7009_v22 = vor.u32 %v8498_v16, %v7006_v19  ;;  %v7278_v19 = vld [vmem:[%s11523_s5 + $0x6e0] sm:$0xf0] }
 0x54f   : > { %4108 = vmatpush.bf16.msra.mxu3 %v7269_v38  ;;  %v6950_v38 = vld [vmem:[%s11523_s5 + $0x458] sm:$0xf0] }
 0x551   : > { %4082 = vmatpush.bf16.msra.mxu1 %v7261_v33  ;;  %v6948_v33 = vld [vmem:[%s11523_s5 + $0x418] sm:$0xf] }
 0x552   : > { %v6949_v36 = vor.u32 %v8491_v34, %v6948_v33  ;;  %v7220_v33 = vld [vmem:[%s11523_s5 + $0x628] sm:$0xf] }
 0x553   : > { %4109 = vmatpush.bf16.msra.mxu3 %v7205_v50  ;;  %v8557_v34 = vld [vmem:[%s11523_s5 + $0x664] sm:$0xf0] }
 0x555   : > { %4083 = vmatpush.bf16.msra.mxu1 %v7197_v45 }
 0x5ac   : > { %v3194_v52 = vpop.xlane.xlu2 %3193 }
 0x5ad   : > { %v3195_v54 = vmul.f32 %v3194_v52, %v9116_v18  ;;  %v7206_v52 = vld [vmem:[%s11523_s5 + $0x658] sm:$0xf0] }
 0x5ae   : > { %v7209_v53 = vor.u32 %v8547_v51, %v7206_v52  ;;  %v8753_v51 = vld [vmem:[%s11528_s10 + $0x1] ss:$0 sm:$0xff] }
 0x5af   : > { %v10376_v55 = vsub.f32 %v10203_v28, %v3195_v54  ;;  %v8480_v28 = vld [vmem:[%s11523_s5 + $0x404] sm:$0xf]  ;;  %v7132_v54 = vld [vmem:[%s11523_s5 + $0x590] sm:$0xf] }
 0x5b0   : > { %v6929_v1 = vor.u32 %v8480_v28, %v6926_v62  ;;  %v7134_v28 = vld [vmem:[%s11523_s5 + $0x5d0] sm:$0xf0]  ;;  %v8539_v62 = vld [vmem:[%s11523_s5 + $0x5d4] sm:$0xf0]  ;;  %4122 = vmatpush.bf16.msra.mxu0 %v7209_v53 }
 0x5b1   : > { %v3197_v57 = vmul.f32 %v10376_v55, %v10376_v55  ;;  %v7137_v63 = vor.u32 %v8530_v58, %v7134_v28  ;;  %v7141_v0 = vor.u32 %v8539_v62, %v7140_v61  ;;  %v8596_v58 = vld [vmem:[%s11523_s5 + $0x7a4] sm:$0xf]  ;;  %v8605_v61 = vld [vmem:[%s11523_s5 + $0x7e4] sm:$0xf0]  ;;  %v8597_v62 = vld [vmem:[%s11523_s5 + $0x7ac] sm:$0xf] }
 0x5b2   : > { %4048 = vmatpush.bf16.msra.mxu2 %v6929_v1  ;;  %v8531_v1 = vld [vmem:[%s11523_s5 + $0x59c] sm:$0xf] }
 0x5b3   : > { %3198 = vadd.xlane.f32.xlu2 %v3197_v57  ;;  %v8538_v57 = vld [vmem:[%s11523_s5 + $0x5cc] sm:$0xf0]  ;;  %v7145_v3 = vor.u32 %v8531_v1, %v7142_v2  ;;  %4110 = vmatpush.bf16.msra.mxu3 %v7141_v0 }
 0x5b4   : > { %v7133_v60 = vor.u32 %v8538_v57, %v7132_v54  ;;  %v7404_v54 = vld [vmem:[%s11523_s5 + $0x7a0] sm:$0xf] }
 0x5b5   : > { %4123 = vmatpush.bf16.msra.mxu0 %v7145_v3  ;;  %v8604_v57 = vld [vmem:[%s11523_s5 + $0x7dc] sm:$0xf0] }
 0x5b6   : > { %4093 = vmatpush.bf16.msrb.mxu2 %v7393_v9  ;;  %4084 = vmatpush.bf16.msra.mxu1 %v7133_v60  ;;  %v7073_v9 = vor.u32 %v8514_v4, %v7070_v6  ;;  %v7406_v60 = vld [vmem:[%s11523_s5 + $0x7e0] sm:$0xf0]  ;;  %v7405_v1 = vor.u32 %v8604_v57, %v7404_v54  ;;  %v7340_v3 = vld [vmem:[%s11523_s5 + $0x720] sm:$0xf] }
 0x5b7   : > { %4111 = vmatpush.bf16.msra.mxu3 %v7077_v10  ;;  %v7409_v2 = vor.u32 %v8596_v58, %v7406_v60  ;;  %v7342_v6 = vld [vmem:[%s11523_s5 + $0x760] sm:$0xf0]  ;;  %v7350_v10 = vld [vmem:[%s11523_s5 + $0x768] sm:$0xf0]  ;;  %v7341_v11 = vor.u32 %v8588_v31, %v7340_v3  ;;  %v7092_v60 = vld [vmem:[%s11523_s5 + $0x528] sm:$0xf] }
 0x5b8   : > { %v8516_v57 = vld [vmem:[%s11523_s5 + $0x524] sm:$0xf]  ;;  %v8508_v3 = vld [vmem:[%s11523_s5 + $0x4dc] sm:$0xf0] }
 0x5b9   : > { %4124 = vmatpush.bf16.msra.mxu0 %v7081_v13  ;;  %v7276_v13 = vld [vmem:[%s11523_s5 + $0x6a0] sm:$0xf]  ;;  %v7086_v58 = vld [vmem:[%s11523_s5 + $0x560] sm:$0xf0] }
 0x5ba   : > { %4094 = vmatpush.bf16.msrb.mxu2 %v7329_v23  ;;  %4085 = vmatpush.bf16.msra.mxu1 %v7069_v5  ;;  %v7013_v23 = vor.u32 %v8507_v21, %v7012_v20  ;;  %v8580_v5 = vld [vmem:[%s11523_s5 + $0x724] sm:$0xf]  ;;  %v7284_v20 = vld [vmem:[%s11523_s5 + $0x6a8] sm:$0xf]  ;;  %v7277_v24 = vor.u32 %v8572_v14, %v7276_v13  ;;  %v8492_v13 = vld [vmem:[%s11523_s5 + $0x45c] sm:$0xf0] }
 0x5bb   : > { %v7345_v12 = vor.u32 %v8580_v5, %v7342_v6  ;;  %v8573_v21 = vld [vmem:[%s11523_s5 + $0x6e4] sm:$0xf0]  ;;  %v7022_v5 = vld [vmem:[%s11523_s5 + $0x4e0] sm:$0xf0] }
 0x5bc   : > { %4112 = vmatpush.bf16.msra.mxu3 %v7013_v23  ;;  %v7286_v23 = vld [vmem:[%s11523_s5 + $0x6e8] sm:$0xf0]  ;;  %v7285_v25 = vor.u32 %v8573_v21, %v7284_v20  ;;  %v7028_v6 = vld [vmem:[%s11523_s5 + $0x4a8] sm:$0xf]  ;;  %v8484_v14 = vld [vmem:[%s11523_s5 + $0x424] sm:$0xf] }
 0x5bd   : > { %4125 = vmatpush.bf16.msra.mxu0 %v7017_v26  ;;  %v7212_v26 = vld [vmem:[%s11523_s5 + $0x620] sm:$0xf]  ;;  %v8493_v20 = vld [vmem:[%s11523_s5 + $0x464] sm:$0xf0]  ;;  %v8485_v21 = vld [vmem:[%s11523_s5 + $0x42c] sm:$0xf] }
 0x5be   : > { %4095 = vmatpush.bf16.msrb.mxu2 %v7265_v37  ;;  %4086 = vmatpush.bf16.msra.mxu1 %v7005_v17  ;;  %v8483_v37 = vld [vmem:[%s11523_s5 + $0x41c] sm:$0xf]  ;;  %v8564_v17 = vld [vmem:[%s11523_s5 + $0x6a4] sm:$0xf] }
 0x5bf   : > { %v6953_v39 = vor.u32 %v8483_v37, %v6950_v38  ;;  %v7281_v59 = vor.u32 %v8564_v17, %v7278_v19  ;;  %v7213_v37 = vor.u32 %v8556_v27, %v7212_v26  ;;  %v6964_v19 = vld [vmem:[%s11523_s5 + $0x428] sm:$0xf]  ;;  %v7422_v26 = vld [vmem:[%s11523_s5 + $0x7f0] sm:$0xf0]  ;;  %v7428_v27 = vld [vmem:[%s11523_s5 + $0x7b8] sm:$0xf] }
 0x5c0   : > { %4113 = vmatpush.bf16.msra.mxu3 %v6949_v36  ;;  %v7222_v36 = vld [vmem:[%s11523_s5 + $0x668] sm:$0xf0] }
 0x5c1   : > { %4126 = vmatpush.bf16.msra.mxu0 %v6953_v39  ;;  %v7148_v39 = vld [vmem:[%s11523_s5 + $0x5a0] sm:$0xf] }
 0x5c2   : > { %4096 = vmatpush.bf16.msrb.mxu2 %v7201_v49  ;;  %4087 = vmatpush.bf16.msra.mxu1 %v6941_v30  ;;  %v8752_v49 = vld [vmem:[%s11527_s9 + $0x1] ss:$0 sm:$0xff]  ;;  %v8548_v30 = vld [vmem:[%s11523_s5 + $0x624] sm:$0xf] }
 0x5c3   : > { %v7217_v38 = vor.u32 %v8548_v30, %v7214_v32  ;;  %v8607_v30 = vld [vmem:[%s11523_s5 + $0x7f4] sm:$0xf0]  ;;  %v8599_v32 = vld [vmem:[%s11523_s5 + $0x7bc] sm:$0xf] }
 0x5c6   : > { %4097 = vmatpush.bf16.msrb.mxu2 %v7137_v63  ;;  %v7414_v63 = vld [vmem:[%s11523_s5 + $0x7e8] sm:$0xf0] }
 0x5c7   : > { %v7417_v4 = vor.u32 %v8597_v62, %v7414_v63  ;;  %v7094_v62 = vld [vmem:[%s11523_s5 + $0x568] sm:$0xf0] }
 0x5ca   : > { %4098 = vmatpush.bf16.msrb.mxu2 %v7073_v9  ;;  %v8581_v9 = vld [vmem:[%s11523_s5 + $0x72c] sm:$0xf] }
 0x5cb   : > { %v7353_v16 = vor.u32 %v8581_v9, %v7350_v10  ;;  %v7030_v9 = vld [vmem:[%s11523_s5 + $0x4e8] sm:$0xf0]  ;;  %v6956_v10 = vld [vmem:[%s11523_s5 + $0x420] sm:$0xf] }
 0x5cc   : > { %v7033_v17 = vor.u32 %v8501_v8, %v7030_v9  ;;  %v7238_v8 = vld [vmem:[%s11523_s5 + $0x678] sm:$0xf0] }
 0x5ce   : > { %4099 = vmatpush.bf16.msrb.mxu2 %v7009_v22  ;;  %v8565_v22 = vld [vmem:[%s11523_s5 + $0x6ac] sm:$0xf] }
 0x5cf   : > { %v7289_v29 = vor.u32 %v8565_v22, %v7286_v23  ;;  %v6966_v22 = vld [vmem:[%s11523_s5 + $0x468] sm:$0xf0]  ;;  %v7420_v23 = vld [vmem:[%s11523_s5 + $0x7b0] sm:$0xf] }
 0x5d2   : > { %4100 = vmatpush.bf16.msrb.mxu2 %v6945_v35  ;;  %v8549_v35 = vld [vmem:[%s11523_s5 + $0x62c] sm:$0xf] }
 0x626   : > { %v3199_v40 = vpop.xlane.xlu2 %3198 }
 0x627   : > { %v3200_v41 = vmul.f32 %v3199_v40, %v9116_v18  ;;  %v8540_v40 = vld [vmem:[%s11523_s5 + $0x5dc] sm:$0xf0] }
 0x629   : > { %v3201_v42 = vadd.f32 1e-05, %v3200_v41  ;;  %v7221_v41 = vor.u32 %v8557_v34, %v7220_v33  ;;  %v7430_v33 = vld [vmem:[%s11523_s5 + $0x7f8] sm:$0xf0]  ;;  %v6965_v34 = vor.u32 %v8493_v20, %v6964_v19  ;;  %v8543_v19 = vld [vmem:[%s11523_s5 + $0x5f4] sm:$0xf0] }
 0x62a   : > { %v8535_v20 = vld [vmem:[%s11523_s5 + $0x5bc] sm:$0xf] }
 0x62b   : > { %8777 = vrsqrt.f32 %v3201_v42  ;;  %vm3208_vm2 = vweird.f32 %v3201_v42 }
 0x631   : > { %v8778_v43 = vpop.eup %8777 }
 0x632   : > { %v3203_v44 = vmul.f32 %v8778_v43, %v3201_v42  ;;  %vm3209_vm1 = vweird.f32 %v8778_v43  ;;  %v7225_v42 = vor.u32 %v8549_v35, %v7222_v36  ;;  %v6969_v35 = vor.u32 %v8485_v21, %v6966_v22  ;;  %v7174_v21 = vld [vmem:[%s11523_s5 + $0x5f8] sm:$0xf0] }
 0x633   : > { %vm3210_vm3 = vmor %vm3208_vm2, %vm3209_vm1 }
 0x634   : > { %v3204_v45 = vmul.f32 %v8778_v43, %v3203_v44  ;;  %v7150_v44 = vld [vmem:[%s11523_s5 + $0x5e0] sm:$0xf0] }
 0x636   : > { %v3205_v46 = vmul.f32 0.5, %v3204_v45  ;;  %v7156_v45 = vld [vmem:[%s11523_s5 + $0x5a8] sm:$0xf] }
 0x638   : > { %v3206_v47 = vsub.f32 1.5, %v3205_v46  ;;  %v8541_v46 = vld [vmem:[%s11523_s5 + $0x5e4] sm:$0xf0] }
 0x63a   : > { %v3207_v48 = vmul.f32 %v8778_v43, %v3206_v47  ;;  %v8533_v47 = vld [vmem:[%s11523_s5 + $0x5ac] sm:$0xf] }
 0x63c   : > { %v3211_v50 = vsel %vm3210_vm3, %v8778_v43, %v3207_v48  ;;  %v8532_v43 = vld [vmem:[%s11523_s5 + $0x5a4] sm:$0xf]  ;;  %v7158_v48 = vld [vmem:[%s11523_s5 + $0x5e8] sm:$0xf0] }
 0x63d   : > { %v3212_v52 = vmul.f32 %v3211_v50, %v10376_v55  ;;  %v7412_v55 = vld [vmem:[%s11523_s5 + $0x7a8] sm:$0xf]  ;;  %v7153_v50 = vor.u32 %v8532_v43, %v7150_v44  ;;  %v7161_v54 = vor.u32 %v8533_v47, %v7158_v48  ;;  %v7358_v43 = vld [vmem:[%s11523_s5 + $0x770] sm:$0xf0]  ;;  %v7364_v44 = vld [vmem:[%s11523_s5 + $0x738] sm:$0xf] }
 0x63e   : > { %v7413_v56 = vor.u32 %v8605_v61, %v7412_v55  ;;  %v8525_v55 = vld [vmem:[%s11523_s5 + $0x564] sm:$0xf0]  ;;  %v8517_v61 = vld [vmem:[%s11523_s5 + $0x52c] sm:$0xf]  ;;  %v7366_v47 = vld [vmem:[%s11523_s5 + $0x778] sm:$0xf0] }
 0x63f   : > { %v3216_v53 = vmul.f32 %v8752_v49, %v3212_v52  ;;  %v7149_v49 = vor.u32 %v8540_v40, %v7148_v39  ;;  %v8524_v52 = vld [vmem:[%s11523_s5 + $0x55c] sm:$0xf0]  ;;  %v7093_v31 = vor.u32 %v8525_v55, %v7092_v60  ;;  %v8590_v39 = vld [vmem:[%s11523_s5 + $0x76c] sm:$0xf0]  ;;  %v7429_v40 = vor.u32 %v8607_v30, %v7428_v27  ;;  %v8575_v60 = vld [vmem:[%s11523_s5 + $0x6f4] sm:$0xf0] }
 0x640   : > { %v8567_v55 = vld [vmem:[%s11523_s5 + $0x6bc] sm:$0xf]  ;;  %v7177_v27 = vor.u32 %v8535_v20, %v7174_v21  ;;  %v7108_v30 = vld [vmem:[%s11523_s5 + $0x538] sm:$0xf]  ;;  %v8610_v20 = vld [vmem:[%s11525_s7 + $0x410] sm:$0xff] }
 0x641   : > { %v10619_v28 = vadd.f32 %v8753_v51, %v3216_v53  ;;  %v7084_v51 = vld [vmem:[%s11523_s5 + $0x520] sm:$0xf]  ;;  %v7157_v53 = vor.u32 %v8541_v46, %v7156_v45  ;;  %v8591_v45 = vld [vmem:[%s11523_s5 + $0x774] sm:$0xf0]  ;;  %v8583_v46 = vld [vmem:[%s11523_s5 + $0x73c] sm:$0xf] }
 0x642   : > { %v7085_v63 = vor.u32 %v8524_v52, %v7084_v51  ;;  %v8574_v51 = vld [vmem:[%s11523_s5 + $0x6ec] sm:$0xf0]  ;;  %v7365_v52 = vor.u32 %v8591_v45, %v7364_v44  ;;  %v8511_v44 = vld [vmem:[%s11523_s5 + $0x4f4] sm:$0xf0]  ;;  %v8503_v45 = vld [vmem:[%s11523_s5 + $0x4bc] sm:$0xf] }
 0x643   : > { %v10632_v0 = vpack.c.bf16 %v10619_v28, %v10619_v28  ;;  %v8634_v21 = vld [vmem:[%s11525_s7 + $0x4d0] sm:$0xff] }
 0x645   : > { %4036 = vmatmul.bf16.vlgmr.msrb.gmra.mxu1 %v10632_v0  ;;  %4049 = vmatmul.bf16.vlgmr.msra.gmra.mxu2 %v10632_v0 }
 0x646   : > { %4062 = vmatmul.bf16.vlgmr.msrb.gmra.mxu3 %v10632_v0  ;;  %4075 = vmatmul.bf16.vlgmr.msrb.gmra.mxu0 %v10632_v0 }
 0x647   : > { %4132 = vmatpush.bf16.msrb.mxu1 %v7405_v1  ;;  %4145 = vmatpush.bf16.msra.mxu2 %v7409_v2  ;;  %v7089_v1 = vor.u32 %v8516_v57, %v7086_v58  ;;  %v7020_v2 = vld [vmem:[%s11523_s5 + $0x4a0] sm:$0xf]  ;;  %v7294_v57 = vld [vmem:[%s11523_s5 + $0x6f0] sm:$0xf0]  ;;  %v7300_v58 = vld [vmem:[%s11523_s5 + $0x6b8] sm:$0xf] }
 0x648   : > { %4158 = vmatpush.bf16.msrb.mxu3 %v7413_v56  ;;  %4171 = vmatpush.bf16.msrb.mxu0 %v7417_v4  ;;  %v7097_v56 = vor.u32 %v8517_v61, %v7094_v62  ;;  %v8500_v4 = vld [vmem:[%s11523_s5 + $0x4a4] sm:$0xf]  ;;  %v7302_v61 = vld [vmem:[%s11523_s5 + $0x6f8] sm:$0xf0] }
 0x64b   : > { %4133 = vmatpush.bf16.msrb.mxu1 %v7341_v11  ;;  %4146 = vmatpush.bf16.msra.mxu2 %v7345_v12  ;;  %v7021_v11 = vor.u32 %v8508_v3, %v7020_v2  ;;  %v7025_v12 = vor.u32 %v8500_v4, %v7022_v5  ;;  %v8558_v2 = vld [vmem:[%s11523_s5 + $0x66c] sm:$0xf0]  ;;  %v7301_v3 = vor.u32 %v8575_v60, %v7300_v58  ;;  %v7230_v4 = vld [vmem:[%s11523_s5 + $0x670] sm:$0xf0]  ;;  %v7236_v5 = vld [vmem:[%s11523_s5 + $0x638] sm:$0xf] }
 0x64c   : > { %4159 = vmatpush.bf16.msrb.mxu3 %v7349_v15  ;;  %4172 = vmatpush.bf16.msrb.mxu0 %v7353_v16  ;;  %v6958_v15 = vld [vmem:[%s11523_s5 + $0x460] sm:$0xf0]  ;;  %v7029_v16 = vor.u32 %v8509_v7, %v7028_v6  ;;  %v8559_v6 = vld [vmem:[%s11523_s5 + $0x674] sm:$0xf0]  ;;  %v8551_v7 = vld [vmem:[%s11523_s5 + $0x63c] sm:$0xf] }
 0x64d   : > { %v8495_v58 = vld [vmem:[%s11523_s5 + $0x474] sm:$0xf0]  ;;  %v8487_v60 = vld [vmem:[%s11523_s5 + $0x43c] sm:$0xf] }
 0x64f   : > { %4134 = vmatpush.bf16.msrb.mxu1 %v7277_v24  ;;  %4147 = vmatpush.bf16.msra.mxu2 %v7281_v59  ;;  %v8606_v24 = vld [vmem:[%s11523_s5 + $0x7ec] sm:$0xf0]  ;;  %v8598_v59 = vld [vmem:[%s11523_s5 + $0x7b4] sm:$0xf] }
 0x650   : > { %4160 = vmatpush.bf16.msrb.mxu3 %v7285_v25  ;;  %4173 = vmatpush.bf16.msrb.mxu0 %v7289_v29  ;;  %v6957_v25 = vor.u32 %v8492_v13, %v6956_v10  ;;  %v6961_v29 = vor.u32 %v8484_v14, %v6958_v15  ;;  %v7421_v36 = vor.u32 %v8606_v24, %v7420_v23  ;;  %v8534_v15 = vld [vmem:[%s11523_s5 + $0x5b4] sm:$0xf]  ;;  %v7100_v24 = vld [vmem:[%s11523_s5 + $0x530] sm:$0xf] }
 0x651   : > { %v7237_v13 = vor.u32 %v8559_v6, %v7236_v5  ;;  %v7241_v14 = vor.u32 %v8551_v7, %v7238_v8  ;;  %v8638_v5 = vld [vmem:[%s11525_s7 + $0x4f0] sm:$0xff]  ;;  %v8613_v8 = vld [vmem:[%s11525_s7 + $0x428] sm:$0xff] }
 0x652   : > { %v8622_v6 = vld [vmem:[%s11525_s7 + $0x470] sm:$0xff] }
 0x653   : > { %4135 = vmatpush.bf16.msrb.mxu1 %v7213_v37  ;;  %4148 = vmatpush.bf16.msra.mxu2 %v7217_v38  ;;  %v7425_v37 = vor.u32 %v8598_v59, %v7422_v26  ;;  %v7356_v38 = vld [vmem:[%s11523_s5 + $0x730] sm:$0xf] }
 0x654   : > { %4161 = vmatpush.bf16.msrb.mxu3 %v7221_v41  ;;  %4174 = vmatpush.bf16.msrb.mxu0 %v7225_v42  ;;  %v7433_v41 = vor.u32 %v8599_v32, %v7430_v33  ;;  %v8582_v42 = vld [vmem:[%s11523_s5 + $0x734] sm:$0xf]  ;;  %v7357_v48 = vor.u32 %v8590_v39, %v7356_v38  ;;  %v8526_v59 = vld [vmem:[%s11523_s5 + $0x56c] sm:$0xf0]  ;;  %v8527_v32 = vld [vmem:[%s11523_s5 + $0x574] sm:$0xf0] }
 0x655   : > { %4088 = vmatmul.bf16.vlgmr.msra.gmra.mxu1 %v10632_v0  ;;  %4101 = vmatmul.bf16.vlgmr.msrb.gmra.mxu2 %v10632_v0  ;;  %v8519_v33 = vld [vmem:[%s11523_s5 + $0x53c] sm:$0xf]  ;;  %v8510_v38 = vld [vmem:[%s11523_s5 + $0x4ec] sm:$0xf0]  ;;  %v7109_v39 = vor.u32 %v8527_v32, %v7108_v30 }
 0x656   : > { %4114 = vmatmul.bf16.vlgmr.msra.gmra.mxu3 %v10632_v0  ;;  %4127 = vmatmul.bf16.vlgmr.msra.gmra.mxu0 %v10632_v0  ;;  %v8630_v7 = vld [vmem:[%s11525_s7 + $0x4b0] sm:$0xff]  ;;  %v8647_v30 = vld [vmem:[%s11525_s7 + $0x538] sm:$0xff] }
 0x657   : > { %4136 = vmatpush.bf16.msrb.mxu1 %v7149_v49  ;;  %4149 = vmatpush.bf16.msra.mxu2 %v7153_v50  ;;  %v7361_v49 = vor.u32 %v8582_v42, %v7358_v43  ;;  %v7292_v50 = vld [vmem:[%s11523_s5 + $0x6b0] sm:$0xf]  ;;  %v7038_v42 = vld [vmem:[%s11523_s5 + $0x4f0] sm:$0xf0]  ;;  %v7044_v43 = vld [vmem:[%s11523_s5 + $0x4b8] sm:$0xf] }
 0x658   : > { %4162 = vmatpush.bf16.msrb.mxu3 %v7157_v53  ;;  %4175 = vmatpush.bf16.msrb.mxu0 %v7161_v54  ;;  %v7369_v53 = vor.u32 %v8583_v46, %v7366_v47  ;;  %v8566_v54 = vld [vmem:[%s11523_s5 + $0x6b4] sm:$0xf]  ;;  %v7293_v62 = vor.u32 %v8574_v51, %v7292_v50  ;;  %v7046_v46 = vld [vmem:[%s11523_s5 + $0x4f8] sm:$0xf0]  ;;  %v8494_v50 = vld [vmem:[%s11523_s5 + $0x46c] sm:$0xf0]  ;;  %v7045_v51 = vor.u32 %v8511_v44, %v7044_v43 }
 0x659   : > { %v8671_v32 = vld [vmem:[%s11525_s7 + $0x5f8] sm:$0xff]  ;;  %v8653_v43 = vld [vmem:[%s11525_s7 + $0x568] sm:$0xff] }
 0x65a   : > { %v8661_v44 = vld [vmem:[%s11525_s7 + $0x5a8] sm:$0xff] }
 0x65b   : > { %4137 = vmatpush.bf16.msrb.mxu1 %v7085_v63  ;;  %4150 = vmatpush.bf16.msra.mxu2 %v7089_v1  ;;  %v7297_v63 = vor.u32 %v8566_v54, %v7294_v57  ;;  %v7228_v1 = vld [vmem:[%s11523_s5 + $0x630] sm:$0xf]  ;;  %v6974_v54 = vld [vmem:[%s11523_s5 + $0x470] sm:$0xf0]  ;;  %v6980_v57 = vld [vmem:[%s11523_s5 + $0x438] sm:$0xf] }
 0x65c   : > { %4163 = vmatpush.bf16.msrb.mxu3 %v7093_v31  ;;  %4176 = vmatpush.bf16.msrb.mxu0 %v7097_v56  ;;  %v7305_v31 = vor.u32 %v8567_v55, %v7302_v61  ;;  %v8550_v56 = vld [vmem:[%s11523_s5 + $0x634] sm:$0xf]  ;;  %v7229_v9 = vor.u32 %v8558_v2, %v7228_v1  ;;  %v6982_v55 = vld [vmem:[%s11523_s5 + $0x478] sm:$0xf0] }
 0x65d   : > { %v7233_v10 = vor.u32 %v8550_v56, %v7230_v4  ;;  %v6985_v1 = vor.u32 %v8487_v60, %v6982_v55  ;;  %v8615_v2 = vld [vmem:[%s11525_s7 + $0x438] sm:$0xff]  ;;  %v8614_v4 = vld [vmem:[%s11525_s7 + $0x430] sm:$0xff]  ;;  %v8641_v60 = vld [vmem:[%s11525_s7 + $0x508] sm:$0xff] }
 0x65e   : > { %v8631_v56 = vld [vmem:[%s11525_s7 + $0x4b8] sm:$0xff]  ;;  %v8665_v55 = vld [vmem:[%s11525_s7 + $0x5c8] sm:$0xff] }
 0x65f   : > { %4138 = vmatpush.bf16.msrb.mxu1 %v7021_v11  ;;  %4151 = vmatpush.bf16.msra.mxu2 %v7025_v12  ;;  %v7164_v11 = vld [vmem:[%s11523_s5 + $0x5b0] sm:$0xf] }
 0x660   : > { %4164 = vmatpush.bf16.msrb.mxu3 %v7029_v16  ;;  %4177 = vmatpush.bf16.msrb.mxu0 %v7033_v17  ;;  %v8542_v12 = vld [vmem:[%s11523_s5 + $0x5ec] sm:$0xf0]  ;;  %v7166_v16 = vld [vmem:[%s11523_s5 + $0x5f0] sm:$0xf0]  ;;  %v7172_v17 = vld [vmem:[%s11523_s5 + $0x5b8] sm:$0xf] }
 0x661   : > { %v7165_v22 = vor.u32 %v8542_v12, %v7164_v11  ;;  %v7169_v23 = vor.u32 %v8534_v15, %v7166_v16  ;;  %v7173_v26 = vor.u32 %v8543_v19, %v7172_v17  ;;  %v8612_v11 = vld [vmem:[%s11525_s7 + $0x420] sm:$0xff]  ;;  %v8611_v15 = vld [vmem:[%s11525_s7 + $0x418] sm:$0xff] }
 0x662   : > { %v8636_v12 = vld [vmem:[%s11525_s7 + $0x4e0] sm:$0xff]  ;;  %v8635_v16 = vld [vmem:[%s11525_s7 + $0x4d8] sm:$0xff] }
 0x663   : > { %4139 = vmatpush.bf16.msrb.mxu1 %v6957_v25  ;;  %4152 = vmatpush.bf16.msra.mxu2 %v6961_v29  ;;  %v8518_v25 = vld [vmem:[%s11523_s5 + $0x534] sm:$0xf]  ;;  %v8619_v17 = vld [vmem:[%s11525_s7 + $0x458] sm:$0xff] }
 0x664   : > { %4165 = vmatpush.bf16.msrb.mxu3 %v6965_v34  ;;  %4178 = vmatpush.bf16.msrb.mxu0 %v6969_v35  ;;  %v7102_v29 = vld [vmem:[%s11523_s5 + $0x570] sm:$0xf0]  ;;  %v7110_v34 = vld [vmem:[%s11523_s5 + $0x578] sm:$0xf0]  ;;  %v7101_v35 = vor.u32 %v8526_v59, %v7100_v24  ;;  %v8609_v24 = vld [vmem:[%s11525_s7 + $0x408] sm:$0xff] }
 0x665   : > { %v8627_v19 = vld [vmem:[%s11525_s7 + $0x498] sm:$0xff]  ;;  %v8633_v59 = vld [vmem:[%s11525_s7 + $0x4c8] sm:$0xff] }
 0x666   : > { %4140 = vmatmul.bf16.vlgmr.msrb.gmra.mxu1 %v10632_v0  ;;  %4153 = vmatmul.bf16.vlgmr.msra.gmra.mxu2 %v10632_v0 }
 0x667   : > { %4184 = vmatpush.bf16.msra.mxu1 %v7421_v36  ;;  %4197 = vmatpush.bf16.msrb.mxu2 %v7425_v37  ;;  %v7105_v36 = vor.u32 %v8518_v25, %v7102_v29  ;;  %v7036_v37 = vld [vmem:[%s11523_s5 + $0x4b0] sm:$0xf]  ;;  %v8608_v25 = vld [vmem:[%s11525_s7 + $0x400] sm:$0xff] }
 0x668   : > { %4210 = vmatpush.bf16.msra.mxu3 %v7429_v40  ;;  %4223 = vmatpush.bf16.msra.mxu0 %v7433_v41  ;;  %v7113_v40 = vor.u32 %v8519_v33, %v7110_v34  ;;  %v8502_v41 = vld [vmem:[%s11523_s5 + $0x4b4] sm:$0xf]  ;;  %v7037_v47 = vor.u32 %v8510_v38, %v7036_v37  ;;  %v8632_v29 = vld [vmem:[%s11525_s7 + $0x4c0] sm:$0xff] }
 0x669   : > { %4166 = vmatmul.bf16.vlgmr.msrb.gmra.mxu3 %v10632_v0  ;;  %4179 = vmatmul.bf16.vlgmr.msrb.gmra.mxu0 %v10632_v0  ;;  %v8616_v33 = vld [vmem:[%s11525_s7 + $0x440] sm:$0xff]  ;;  %v8646_v37 = vld [vmem:[%s11525_s7 + $0x530] sm:$0xff] }
 0x66a   : > { %v8624_v34 = vld [vmem:[%s11525_s7 + $0x480] sm:$0xff]  ;;  %v8670_v38 = vld [vmem:[%s11525_s7 + $0x5f0] sm:$0xff] }
 0x66b   : > { %4185 = vmatpush.bf16.msra.mxu1 %v7357_v48  ;;  %4198 = vmatpush.bf16.msrb.mxu2 %v7361_v49  ;;  %v7041_v48 = vor.u32 %v8502_v41, %v7038_v42  ;;  %v6972_v49 = vld [vmem:[%s11523_s5 + $0x430] sm:$0xf]  ;;  %v8645_v41 = vld [vmem:[%s11525_s7 + $0x528] sm:$0xff] }
 0x66c   : > { %4211 = vmatpush.bf16.msra.mxu3 %v7365_v52  ;;  %4224 = vmatpush.bf16.msra.mxu0 %v7369_v53  ;;  %v7049_v52 = vor.u32 %v8503_v45, %v7046_v46  ;;  %v8486_v53 = vld [vmem:[%s11523_s5 + $0x434] sm:$0xf]  ;;  %v6973_v61 = vor.u32 %v8494_v50, %v6972_v49  ;;  %v8669_v42 = vld [vmem:[%s11525_s7 + $0x5e8] sm:$0xff]  ;;  %v8644_v45 = vld [vmem:[%s11525_s7 + $0x520] sm:$0xff] }
 0x66d   : > { %v8668_v46 = vld [vmem:[%s11525_s7 + $0x5e0] sm:$0xff]  ;;  %v8643_v49 = vld [vmem:[%s11525_s7 + $0x518] sm:$0xff] }
 0x66e   : > { %v8667_v50 = vld [vmem:[%s11525_s7 + $0x5d8] sm:$0xff] }
 0x66f   : > { %4186 = vmatpush.bf16.msra.mxu1 %v7293_v62  ;;  %4199 = vmatpush.bf16.msrb.mxu2 %v7297_v63  ;;  %v6977_v62 = vor.u32 %v8486_v53, %v6974_v54  ;;  %v6981_v63 = vor.u32 %v8495_v58, %v6980_v57  ;;  %v8642_v53 = vld [vmem:[%s11525_s7 + $0x510] sm:$0xff] }
 0x670   : > { %4212 = vmatpush.bf16.msra.mxu3 %v7301_v3  ;;  %4225 = vmatpush.bf16.msra.mxu0 %v7305_v31  ;;  %v8639_v3 = vld [vmem:[%s11525_s7 + $0x4f8] sm:$0xff]  ;;  %v8666_v54 = vld [vmem:[%s11525_s7 + $0x5d0] sm:$0xff] }
 0x671   : > { %v8623_v31 = vld [vmem:[%s11525_s7 + $0x478] sm:$0xff]  ;;  %v8650_v57 = vld [vmem:[%s11525_s7 + $0x550] sm:$0xff] }
 0x672   : > { %v8658_v58 = vld [vmem:[%s11525_s7 + $0x590] sm:$0xff] }
 0x673   : > { %4187 = vmatpush.bf16.msra.mxu1 %v7229_v9  ;;  %4200 = vmatpush.bf16.msrb.mxu2 %v7233_v10  ;;  %v8621_v9 = vld [vmem:[%s11525_s7 + $0x468] sm:$0xff] }
 0x674   : > { %4213 = vmatpush.bf16.msra.mxu3 %v7237_v13  ;;  %4226 = vmatpush.bf16.msra.mxu0 %v7241_v14  ;;  %v8629_v10 = vld [vmem:[%s11525_s7 + $0x4a8] sm:$0xff]  ;;  %v8620_v13 = vld [vmem:[%s11525_s7 + $0x460] sm:$0xff] }
 0x675   : > { %v8628_v14 = vld [vmem:[%s11525_s7 + $0x4a0] sm:$0xff] }
 0x677   : > { %4188 = vmatpush.bf16.msra.mxu1 %v7165_v22  ;;  %4201 = vmatpush.bf16.msrb.mxu2 %v7169_v23  ;;  %v8618_v22 = vld [vmem:[%s11525_s7 + $0x450] sm:$0xff] }
 0x678   : > { %4214 = vmatpush.bf16.msra.mxu3 %v7173_v26  ;;  %4227 = vmatpush.bf16.msra.mxu0 %v7177_v27  ;;  %v8626_v23 = vld [vmem:[%s11525_s7 + $0x490] sm:$0xff]  ;;  %v8617_v26 = vld [vmem:[%s11525_s7 + $0x448] sm:$0xff] }
 0x679   : > { %v8625_v27 = vld [vmem:[%s11525_s7 + $0x488] sm:$0xff] }
 0x67b   : > { %4189 = vmatpush.bf16.msra.mxu1 %v7101_v35  ;;  %4202 = vmatpush.bf16.msrb.mxu2 %v7105_v36  ;;  %v8655_v35 = vld [vmem:[%s11525_s7 + $0x578] sm:$0xff] }
 0x67c   : > { %4215 = vmatpush.bf16.msra.mxu3 %v7109_v39  ;;  %4228 = vmatpush.bf16.msra.mxu0 %v7113_v40  ;;  %v8663_v36 = vld [vmem:[%s11525_s7 + $0x5b8] sm:$0xff]  ;;  %v8654_v39 = vld [vmem:[%s11525_s7 + $0x570] sm:$0xff] }
 0x67d   : > { %v8662_v40 = vld [vmem:[%s11525_s7 + $0x5b0] sm:$0xff] }
 0x67f   : > { %4190 = vmatpush.bf16.msra.mxu1 %v7037_v47  ;;  %4203 = vmatpush.bf16.msrb.mxu2 %v7041_v48  ;;  %v8652_v47 = vld [vmem:[%s11525_s7 + $0x560] sm:$0xff] }
 0x680   : > { %4216 = vmatpush.bf16.msra.mxu3 %v7045_v51  ;;  %4229 = vmatpush.bf16.msra.mxu0 %v7049_v52  ;;  %v8660_v48 = vld [vmem:[%s11525_s7 + $0x5a0] sm:$0xff]  ;;  %v8651_v51 = vld [vmem:[%s11525_s7 + $0x558] sm:$0xff] }
 0x681   : > { %v8659_v52 = vld [vmem:[%s11525_s7 + $0x598] sm:$0xff] }
 0x683   : > { %4191 = vmatpush.bf16.msra.mxu1 %v6973_v61  ;;  %4204 = vmatpush.bf16.msrb.mxu2 %v6977_v62  ;;  %v8649_v61 = vld [vmem:[%s11525_s7 + $0x548] sm:$0xff] }
 0x684   : > { %4217 = vmatpush.bf16.msra.mxu3 %v6981_v63  ;;  %4230 = vmatpush.bf16.msra.mxu0 %v6985_v1  ;;  %v8657_v62 = vld [vmem:[%s11525_s7 + $0x588] sm:$0xff]  ;;  %v8640_v63 = vld [vmem:[%s11525_s7 + $0x500] sm:$0xff] }
 0x685   : > { %v8664_v1 = vld [vmem:[%s11525_s7 + $0x5c0] sm:$0xff] }
 0x686   : > { %4192 = vmatmul.bf16.vlgmr.msra.gmra.mxu1 %v10632_v0  ;;  %4205 = vmatmul.bf16.vlgmr.msrb.gmra.mxu2 %v10632_v0 }
 0x687   : > { %5298 = vmatpush.bf16.msrb.mxu1 %v8615_v2  ;;  %4218 = vmatmul.bf16.vlgmr.msra.gmra.mxu3 %v10632_v0  ;;  %v8648_v2 = vld [vmem:[%s11525_s7 + $0x540] sm:$0xff] }
 0x688   : > { %5337 = vmatpush.bf16.msrb.mxu0 %v8639_v3  ;;  %5311 = vmatpush.bf16.msra.mxu2 %v8623_v31  ;;  %v8656_v3 = vld [vmem:[%s11525_s7 + $0x580] sm:$0xff]  ;;  %v11205_v31 = vld [vmem:[%s11524_s6 + $0x10] sm:$0xff] }
 0x689   : > { %4231 = vmatmul.bf16.vlgmr.msra.gmra.mxu0 %v10632_v0  ;;  %5324 = vmatpush.bf16.msrb.mxu3 %v8631_v56  ;;  %v8637_v0 = vld [vmem:[%s11525_s7 + $0x4e8] sm:$0xff]  ;;  %v3356_v56 = vperm.slane %v11205_v31, 0 }
 0x68b   : > { %5299 = vmatpush.bf16.msrb.mxu1 %v8614_v4  ;;  %v3359_v4 = vperm.slane %v11205_v31, 3 }
 0x68c   : > { %5338 = vmatpush.bf16.msrb.mxu0 %v8638_v5  ;;  %5312 = vmatpush.bf16.msra.mxu2 %v8622_v6 }
 0x68d   : > { %5325 = vmatpush.bf16.msrb.mxu3 %v8630_v7 }
 0x68f   : > { %5300 = vmatpush.bf16.msrb.mxu1 %v8613_v8 }
 0x690   : > { %5339 = vmatpush.bf16.msrb.mxu0 %v8637_v0  ;;  %5313 = vmatpush.bf16.msra.mxu2 %v8621_v9  ;;  %v3357_v9 = vperm.slane %v11205_v31, 1 }
 0x691   : > { %5326 = vmatpush.bf16.msrb.mxu3 %v8629_v10 }
 0x693   : > { %5301 = vmatpush.bf16.msrb.mxu1 %v8612_v11  ;;  %v3358_v11 = vperm.slane %v11205_v31, 2 }
 0x694   : > { %5340 = vmatpush.bf16.msrb.mxu0 %v8636_v12  ;;  %5314 = vmatpush.bf16.msra.mxu2 %v8620_v13  ;;  %v8679_v12 = vld [vmem:[%s11525_s7 + $0x638] sm:$0xff] }
 0x695   : > { %5327 = vmatpush.bf16.msrb.mxu3 %v8628_v14  ;;  %v8703_v14 = vld [vmem:[%s11525_s7 + $0x6f8] sm:$0xff] }
 0x697   : > { %5302 = vmatpush.bf16.msrb.mxu1 %v8611_v15 }
 0x698   : > { %5341 = vmatpush.bf16.msrb.mxu0 %v8635_v16  ;;  %5315 = vmatpush.bf16.msra.mxu2 %v8619_v17 }
 0x699   : > { %5328 = vmatpush.bf16.msrb.mxu3 %v8627_v19 }
 0x69b   : > { %5303 = vmatpush.bf16.msrb.mxu1 %v8610_v20 }
 0x69c   : > { %5342 = vmatpush.bf16.msrb.mxu0 %v8634_v21  ;;  %5316 = vmatpush.bf16.msra.mxu2 %v8618_v22  ;;  %v8678_v22 = vld [vmem:[%s11525_s7 + $0x630] sm:$0xff] }
 0x69d   : > { %5329 = vmatpush.bf16.msrb.mxu3 %v8626_v23 }
 0x69f   : > { %5304 = vmatpush.bf16.msrb.mxu1 %v8609_v24 }
 0x6a0   : > { %5343 = vmatpush.bf16.msrb.mxu0 %v8633_v59  ;;  %5317 = vmatpush.bf16.msra.mxu2 %v8617_v26  ;;  %v8702_v59 = vld [vmem:[%s11525_s7 + $0x6f0] sm:$0xff] }
 0x6a1   : > { %5330 = vmatpush.bf16.msrb.mxu3 %v8625_v27  ;;  %v8687_v27 = vld [vmem:[%s11525_s7 + $0x678] sm:$0xff] }
 0x6a3   : > { %5305 = vmatpush.bf16.msrb.mxu1 %v8608_v25 }
 0x6a4   : > { %5344 = vmatpush.bf16.msrb.mxu0 %v8632_v29  ;;  %5318 = vmatpush.bf16.msra.mxu2 %v8616_v33  ;;  %v8695_v29 = vld [vmem:[%s11525_s7 + $0x6b8] sm:$0xff]  ;;  %v8701_v33 = vld [vmem:[%s11525_s7 + $0x6e8] sm:$0xff] }
 0x6a5   : > { %5331 = vmatpush.bf16.msrb.mxu3 %v8624_v34  ;;  %v3360_v34 = vperm.slane %v11205_v31, 4 }
 0x6a7   : > { %5350 = vmatpush.bf16.msra.mxu1 %v8647_v30 }
 0x6a8   : > { %5389 = vmatpush.bf16.msra.mxu0 %v8671_v32  ;;  %5363 = vmatpush.bf16.msrb.mxu2 %v8655_v35  ;;  %v8677_v32 = vld [vmem:[%s11525_s7 + $0x628] sm:$0xff] }
 0x6a9   : > { %5376 = vmatpush.bf16.msra.mxu3 %v8663_v36  ;;  %v3363_v36 = vperm.slane %v11205_v31, 7 }
 0x6ab   : > { %5351 = vmatpush.bf16.msra.mxu1 %v8646_v37  ;;  %v8686_v37 = vld [vmem:[%s11525_s7 + $0x670] sm:$0xff] }
 0x6ac   : > { %5390 = vmatpush.bf16.msra.mxu0 %v8670_v38  ;;  %5364 = vmatpush.bf16.msrb.mxu2 %v8654_v39  ;;  %v8694_v39 = vld [vmem:[%s11525_s7 + $0x6b0] sm:$0xff] }
 0x6ad   : > { %5377 = vmatpush.bf16.msra.mxu3 %v8662_v40 }
 0x6af   : > { %5352 = vmatpush.bf16.msra.mxu1 %v8645_v41  ;;  %v8676_v41 = vld [vmem:[%s11525_s7 + $0x620] sm:$0xff] }
 0x6b0   : > { %5391 = vmatpush.bf16.msra.mxu0 %v8669_v42  ;;  %5365 = vmatpush.bf16.msrb.mxu2 %v8653_v43 }
 0x6b1   : > { %5378 = vmatpush.bf16.msra.mxu3 %v8661_v44  ;;  %v8700_v44 = vld [vmem:[%s11525_s7 + $0x6e0] sm:$0xff] }
 0x6b3   : > { %5353 = vmatpush.bf16.msra.mxu1 %v8644_v45 }
 0x6b4   : > { %5392 = vmatpush.bf16.msra.mxu0 %v8668_v46  ;;  %5366 = vmatpush.bf16.msrb.mxu2 %v8652_v47  ;;  %v8685_v46 = vld [vmem:[%s11525_s7 + $0x668] sm:$0xff] }
 0x6b5   : > { %5379 = vmatpush.bf16.msra.mxu3 %v8660_v48  ;;  %v8693_v48 = vld [vmem:[%s11525_s7 + $0x6a8] sm:$0xff] }
 0x6b7   : > { %5354 = vmatpush.bf16.msra.mxu1 %v8643_v49  ;;  %v3361_v49 = vperm.slane %v11205_v31, 5 }
 0x6b8   : > { %5393 = vmatpush.bf16.msra.mxu0 %v8667_v50  ;;  %5367 = vmatpush.bf16.msrb.mxu2 %v8651_v51  ;;  %v3362_v51 = vperm.slane %v11205_v31, 6 }
 0x6b9   : > { %5380 = vmatpush.bf16.msra.mxu3 %v8659_v52  ;;  %v8675_v52 = vld [vmem:[%s11525_s7 + $0x618] sm:$0xff] }
 0x6bb   : > { %5355 = vmatpush.bf16.msra.mxu1 %v8642_v53 }
 0x6bc   : > { %5394 = vmatpush.bf16.msra.mxu0 %v8666_v54  ;;  %5368 = vmatpush.bf16.msrb.mxu2 %v8650_v57  ;;  %v8699_v54 = vld [vmem:[%s11525_s7 + $0x6d8] sm:$0xff] }
 0x6bd   : > { %5381 = vmatpush.bf16.msra.mxu3 %v8658_v58 }
 0x6bf   : > { %5356 = vmatpush.bf16.msra.mxu1 %v8641_v60  ;;  %v8684_v60 = vld [vmem:[%s11525_s7 + $0x660] sm:$0xff] }
 0x6c0   : > { %5395 = vmatpush.bf16.msra.mxu0 %v8665_v55  ;;  %5369 = vmatpush.bf16.msrb.mxu2 %v8649_v61 }
 0x6c1   : > { %5382 = vmatpush.bf16.msra.mxu3 %v8657_v62  ;;  %v8692_v62 = vld [vmem:[%s11525_s7 + $0x6a0] sm:$0xff] }
 0x6c2   : > { %v4037_v5 = vpop.f32.mrf.mxu1 }
 0x6c3   : > { %5357 = vmatpush.bf16.msra.mxu1 %v8640_v63  ;;  %v4038_v6 = vadd.f32 %v4037_v5, %v3356_v56  ;;  %v4076_v7 = vpop.f32.mrf.mxu0  ;;  %v8698_v56 = vld [vmem:[%s11525_s7 + $0x6d0] sm:$0xff]  ;;  %v8683_v5 = vld [vmem:[%s11525_s7 + $0x658] sm:$0xff] }
 0x6c4   : > { %5396 = vmatpush.bf16.msra.mxu0 %v8664_v1  ;;  %5370 = vmatpush.bf16.msrb.mxu2 %v8648_v2  ;;  %v4077_v8 = vadd.f32 %v4076_v7, %v3359_v4  ;;  %v8674_v2 = vld [vmem:[%s11525_s7 + $0x610] sm:$0xff]  ;;  %v8691_v7 = vld [vmem:[%s11525_s7 + $0x698] sm:$0xff] }
 0x6c5   : > { %5383 = vmatpush.bf16.msra.mxu3 %v8656_v3  ;;  %v4236_v0 = vmax.f32 %v4038_v6, 0.0 }
 0x6c6   : > { %v4239_v10 = vmax.f32 %v4077_v8, 0.0 }
 0x6c7   : > { %v4252_v13 = vpack.c.bf16 %v4236_v0, %v4236_v0  ;;  %v8673_v0 = vld [vmem:[%s11525_s7 + $0x608] sm:$0xff] }
 0x6c8   : > { %v4255_v15 = vpack.c.bf16 %v4239_v10, %v4239_v10  ;;  %v4050_v16 = vpop.f32.mrf.mxu2  ;;  %v8697_v10 = vld [vmem:[%s11525_s7 + $0x6c8] sm:$0xff] }
 0x6c9   : > { %v4051_v17 = vadd.f32 %v4050_v16, %v3357_v9  ;;  %v4063_v19 = vpop.f32.mrf.mxu3  ;;  %5306 = vmatmul.bf16.vlgmr.msrb.gmra.mxu1 %v4252_v13  ;;  %v11287_v9 = vld [vmem:[%s11524_s6 + $0x18] sm:$0xff] }
 0x6ca   : > { %v4064_v20 = vadd.f32 %v4063_v19, %v3358_v11  ;;  %5345 = vmatmul.bf16.vlgmr.msrb.gmra.mxu0 %v4255_v15  ;;  %5402 = vmatpush.bf16.msrb.mxu1 %v8679_v12  ;;  %v4039_v21 = vpop.f32.mrf.mxu1  ;;  %v8682_v12 = vld [vmem:[%s11525_s7 + $0x650] sm:$0xff]  ;;  %v3367_v16 = vperm.slane %v11287_v9, 3  ;;  %v8696_v19 = vld [vmem:[%s11525_s7 + $0x6c0] sm:$0xff] }
 0x6cb   : > { %v4237_v23 = vmax.f32 %v4051_v17, 0.0  ;;  %5441 = vmatpush.bf16.msrb.mxu0 %v8703_v14  ;;  %v4078_v24 = vpop.f32.mrf.mxu0  ;;  %v3364_v14 = vperm.slane %v11287_v9, 0  ;;  %v8690_v15 = vld [vmem:[%s11525_s7 + $0x690] sm:$0xff]  ;;  %v8672_v17 = vld [vmem:[%s11525_s7 + $0x600] sm:$0xff] }
 0x6cc   : > { %v4238_v26 = vmax.f32 %v4064_v20, 0.0  ;;  %v8711_v20 = vld [vmem:[%s11525_s7 + $0x738] sm:$0xff] }
 0x6cd   : > { %v4253_v25 = vpack.c.bf16 %v4237_v23, %v4237_v23  ;;  %v8681_v23 = vld [vmem:[%s11525_s7 + $0x648] sm:$0xff] }
 0x6ce   : > { %v4254_v30 = vpack.c.bf16 %v4238_v26, %v4238_v26  ;;  %5403 = vmatpush.bf16.msrb.mxu1 %v8678_v22  ;;  %v8735_v22 = vld [vmem:[%s11525_s7 + $0x7f8] sm:$0xff]  ;;  %v8689_v26 = vld [vmem:[%s11525_s7 + $0x688] sm:$0xff] }
 0x6cf   : > { %5442 = vmatpush.bf16.msrb.mxu0 %v8702_v59  ;;  %5319 = vmatmul.bf16.vlgmr.msra.gmra.mxu2 %v4253_v25 }
 0x6d0   : > { %5332 = vmatmul.bf16.vlgmr.msrb.gmra.mxu3 %v4254_v30  ;;  %5415 = vmatpush.bf16.msra.mxu2 %v8687_v27  ;;  %v4052_v35 = vpop.f32.mrf.mxu2 }
 0x6d1   : > { %5428 = vmatpush.bf16.msrb.mxu3 %v8695_v29  ;;  %v4065_v38 = vpop.f32.mrf.mxu3  ;;  %v3365_v29 = vperm.slane %v11287_v9, 1  ;;  %v8734_v35 = vld [vmem:[%s11525_s7 + $0x7f0] sm:$0xff] }
 0x6d2   : > { %5404 = vmatpush.bf16.msrb.mxu1 %v8677_v32  ;;  %v4089_v40 = vpop.f32.mrf.mxu1  ;;  %v3366_v32 = vperm.slane %v11287_v9, 2 }
 0x6d3   : > { %5443 = vmatpush.bf16.msrb.mxu0 %v8701_v33  ;;  %v4090_v42 = vadd.f32 %v4089_v40, %v3360_v34  ;;  %v4128_v43 = vpop.f32.mrf.mxu0  ;;  %v8710_v33 = vld [vmem:[%s11525_s7 + $0x730] sm:$0xff]  ;;  %v8719_v40 = vld [vmem:[%s11525_s7 + $0x778] sm:$0xff] }
 0x6d4   : > { %v4129_v45 = vadd.f32 %v4128_v43, %v3363_v36  ;;  %5416 = vmatpush.bf16.msra.mxu2 %v8686_v37  ;;  %v8680_v36 = vld [vmem:[%s11525_s7 + $0x640] sm:$0xff]  ;;  %v8727_v43 = vld [vmem:[%s11525_s7 + $0x7b8] sm:$0xff] }
 0x6d5   : > { %v4240_v47 = vmax.f32 %v4090_v42, 0.0  ;;  %5429 = vmatpush.bf16.msrb.mxu3 %v8694_v39  ;;  %v8688_v39 = vld [vmem:[%s11525_s7 + $0x680] sm:$0xff] }
 0x6d6   : > { %v4243_v50 = vmax.f32 %v4129_v45, 0.0  ;;  %5405 = vmatpush.bf16.msrb.mxu1 %v8676_v41 }
 0x6d7   : > { %v4256_v53 = vpack.c.bf16 %v4240_v47, %v4240_v47  ;;  %5444 = vmatpush.bf16.msrb.mxu0 %v8700_v44 }
 0x6d8   : > { %v4259_v57 = vpack.c.bf16 %v4243_v50, %v4243_v50  ;;  %5417 = vmatpush.bf16.msra.mxu2 %v8685_v46  ;;  %v4102_v58 = vpop.f32.mrf.mxu2  ;;  %v8709_v46 = vld [vmem:[%s11525_s7 + $0x728] sm:$0xff] }
 0x6d9   : > { %5430 = vmatpush.bf16.msrb.mxu3 %v8693_v48  ;;  %v4103_v55 = vadd.f32 %v4102_v58, %v3361_v49  ;;  %v4115_v61 = vpop.f32.mrf.mxu3  ;;  %5358 = vmatmul.bf16.vlgmr.msra.gmra.mxu1 %v4256_v53  ;;  %v8733_v49 = vld [vmem:[%s11525_s7 + $0x7e8] sm:$0xff]  ;;  %v8726_v53 = vld [vmem:[%s11525_s7 + $0x7b0] sm:$0xff]  ;;  %v8732_v58 = vld [vmem:[%s11525_s7 + $0x7e0] sm:$0xff] }
 0x6da   : > { %v4116_v63 = vadd.f32 %v4115_v61, %v3362_v51  ;;  %5397 = vmatmul.bf16.vlgmr.msra.gmra.mxu0 %v4259_v57  ;;  %5406 = vmatpush.bf16.msrb.mxu1 %v8675_v52  ;;  %v4091_v1 = vpop.f32.mrf.mxu1  ;;  %v8718_v51 = vld [vmem:[%s11525_s7 + $0x770] sm:$0xff]  ;;  %v8708_v57 = vld [vmem:[%s11525_s7 + $0x720] sm:$0xff] }
 0x6db   : > { %v4241_v3 = vmax.f32 %v4103_v55, 0.0  ;;  %5445 = vmatpush.bf16.msrb.mxu0 %v8699_v54  ;;  %v4130_v31 = vpop.f32.mrf.mxu0  ;;  %v8717_v55 = vld [vmem:[%s11525_s7 + $0x768] sm:$0xff]  ;;  %v8731_v1 = vld [vmem:[%s11525_s7 + $0x7d8] sm:$0xff] }
 0x6dc   : > { %v4242_v4 = vmax.f32 %v4116_v63, 0.0  ;;  %5418 = vmatpush.bf16.msra.mxu2 %v8684_v60  ;;  %v8707_v63 = vld [vmem:[%s11525_s7 + $0x718] sm:$0xff]  ;;  %v8706_v31 = vld [vmem:[%s11525_s7 + $0x710] sm:$0xff] }
 0x6dd   : > { %v4257_v6 = vpack.c.bf16 %v4241_v3, %v4241_v3  ;;  %5431 = vmatpush.bf16.msrb.mxu3 %v8692_v62  ;;  %v8725_v62 = vld [vmem:[%s11525_s7 + $0x7a8] sm:$0xff]  ;;  %v8724_v3 = vld [vmem:[%s11525_s7 + $0x7a0] sm:$0xff] }
 0x6de   : > { %v4258_v8 = vpack.c.bf16 %v4242_v4, %v4242_v4  ;;  %5407 = vmatpush.bf16.msrb.mxu1 %v8674_v2  ;;  %v8716_v2 = vld [vmem:[%s11525_s7 + $0x760] sm:$0xff]  ;;  %v8715_v4 = vld [vmem:[%s11525_s7 + $0x758] sm:$0xff] }
 0x6df   : > { %5446 = vmatpush.bf16.msrb.mxu0 %v8698_v56  ;;  %5371 = vmatmul.bf16.vlgmr.msrb.gmra.mxu2 %v4257_v6  ;;  %v8730_v56 = vld [vmem:[%s11525_s7 + $0x7d0] sm:$0xff]  ;;  %v8705_v6 = vld [vmem:[%s11525_s7 + $0x708] sm:$0xff] }
 0x6e0   : > { %5384 = vmatmul.bf16.vlgmr.msra.gmra.mxu3 %v4258_v8  ;;  %5419 = vmatpush.bf16.msra.mxu2 %v8683_v5  ;;  %v4104_v11 = vpop.f32.mrf.mxu2  ;;  %v8723_v5 = vld [vmem:[%s11525_s7 + $0x798] sm:$0xff]  ;;  %v3368_v8 = vperm.slane %v11287_v9, 4 }
 0x6e1   : > { %5432 = vmatpush.bf16.msrb.mxu3 %v8691_v7  ;;  %v4117_v13 = vpop.f32.mrf.mxu3  ;;  %v8729_v7 = vld [vmem:[%s11525_s7 + $0x7c8] sm:$0xff]  ;;  %v8722_v11 = vld [vmem:[%s11525_s7 + $0x790] sm:$0xff] }
 0x6e2   : > { %5408 = vmatpush.bf16.msrb.mxu1 %v8673_v0  ;;  %v8714_v0 = vld [vmem:[%s11525_s7 + $0x750] sm:$0xff] }
 0x6e3   : > { %5447 = vmatpush.bf16.msrb.mxu0 %v8697_v10  ;;  %v4141_v21 = vpop.f32.mrf.mxu1  ;;  %v3371_v10 = vperm.slane %v11287_v9, 7 }
 0x6e4   : > { %5420 = vmatpush.bf16.msra.mxu2 %v8682_v12  ;;  %v4142_v24 = vadd.f32 %v4141_v21, %v3364_v14  ;;  %v8704_v12 = vld [vmem:[%s11525_s7 + $0x700] sm:$0xff] }
 0x6e5   : > { %5433 = vmatpush.bf16.msrb.mxu3 %v8690_v15  ;;  %v8728_v14 = vld [vmem:[%s11525_s7 + $0x7c0] sm:$0xff] }
 0x6e6   : > { %v4180_v59 = vpop.f32.mrf.mxu0  ;;  %5409 = vmatpush.bf16.msrb.mxu1 %v8672_v17  ;;  %v4244_v25 = vmax.f32 %v4142_v24, 0.0  ;;  %v8713_v17 = vld [vmem:[%s11525_s7 + $0x748] sm:$0xff]  ;;  %v3370_v24 = vperm.slane %v11287_v9, 6 }
 0x6e7   : > { %v4181_v27 = vadd.f32 %v4180_v59, %v3367_v16  ;;  %5448 = vmatpush.bf16.msrb.mxu0 %v8696_v19 }
 0x6e8   : > { %5421 = vmatpush.bf16.msra.mxu2 %v8681_v23  ;;  %v4260_v34 = vpack.c.bf16 %v4244_v25, %v4244_v25 }
 0x6e9   : > { %v4247_v30 = vmax.f32 %v4181_v27, 0.0  ;;  %5434 = vmatpush.bf16.msrb.mxu3 %v8689_v26  ;;  %v4154_v38 = vpop.f32.mrf.mxu2  ;;  %v8712_v26 = vld [vmem:[%s11525_s7 + $0x740] sm:$0xff] }
 0x6ea   : > { %5454 = vmatpush.bf16.msra.mxu1 %v8711_v20  ;;  %v4155_v41 = vadd.f32 %v4154_v38, %v3365_v29  ;;  %v8721_v20 = vld [vmem:[%s11525_s7 + $0x788] sm:$0xff]  ;;  %v8720_v29 = vld [vmem:[%s11525_s7 + $0x780] sm:$0xff] }
 0x6eb   : > { %5493 = vmatpush.bf16.msra.mxu0 %v8735_v22  ;;  %v4263_v37 = vpack.c.bf16 %v4247_v30, %v4247_v30  ;;  %5410 = vmatmul.bf16.vlgmr.msrb.gmra.mxu1 %v4260_v34  ;;  %v4143_v45 = vpop.f32.mrf.mxu1  ;;  %v3369_v22 = vperm.slane %v11287_v9, 5 }
 0x6ec   : > { %v4167_v42 = vpop.f32.mrf.mxu3  ;;  %v4245_v47 = vmax.f32 %v4155_v41, 0.0  ;;  %5422 = vmatpush.bf16.msra.mxu2 %v8680_v36 }
 0x6ed   : > { %v4168_v44 = vadd.f32 %v4167_v42, %v3366_v32  ;;  %5449 = vmatmul.bf16.vlgmr.msrb.gmra.mxu0 %v4263_v37  ;;  %5435 = vmatpush.bf16.msrb.mxu3 %v8688_v39 }
 0x6ee   : > { %5455 = vmatpush.bf16.msra.mxu1 %v8710_v33  ;;  %v4182_v48 = vpop.f32.mrf.mxu0  ;;  %v4261_v52 = vpack.c.bf16 %v4245_v47, %v4245_v47 }
 0x6ef   : > { %5494 = vmatpush.bf16.msra.mxu0 %v8734_v35  ;;  %v4246_v50 = vmax.f32 %v4168_v44, 0.0 }
 0x6f0   : > { %5467 = vmatpush.bf16.msrb.mxu2 %v8719_v40 }
 0x6f1   : > { %5480 = vmatpush.bf16.msra.mxu3 %v8727_v43  ;;  %v4262_v54 = vpack.c.bf16 %v4246_v50, %v4246_v50  ;;  %5423 = vmatmul.bf16.vlgmr.msra.gmra.mxu2 %v4261_v52  ;;  %v4156_v60 = vpop.f32.mrf.mxu2 }
 0x6f2   : > { %5456 = vmatpush.bf16.msra.mxu1 %v8709_v46 }
 0x6f3   : > { %5495 = vmatpush.bf16.msra.mxu0 %v8733_v49  ;;  %5436 = vmatmul.bf16.vlgmr.msrb.gmra.mxu3 %v4262_v54 }
 0x6f4   : > { %5468 = vmatpush.bf16.msrb.mxu2 %v8718_v51  ;;  %v4169_v61 = vpop.f32.mrf.mxu3 }
 0x6f5   : > { %5481 = vmatpush.bf16.msra.mxu3 %v8726_v53 }
 0x6f6   : > { %5457 = vmatpush.bf16.msra.mxu1 %v8708_v57  ;;  %v8754_v57 = vld [vmem:[%s11526_s8 + $0x1] ss:$0 sm:$0xff] }
 0x6f7   : > { %5496 = vmatpush.bf16.msra.mxu0 %v8732_v58 }
 0x6f8   : > { %5469 = vmatpush.bf16.msrb.mxu2 %v8717_v55 }
 0x6f9   : > { %5482 = vmatpush.bf16.msra.mxu3 %v8725_v62 }
 0x6fa   : > { %5458 = vmatpush.bf16.msra.mxu1 %v8707_v63 }
 0x6fb   : > { %5497 = vmatpush.bf16.msra.mxu0 %v8731_v1 }
 0x6fc   : > { %5470 = vmatpush.bf16.msrb.mxu2 %v8716_v2 }
 0x6fd   : > { %5483 = vmatpush.bf16.msra.mxu3 %v8724_v3 }
 0x6fe   : > { %5459 = vmatpush.bf16.msra.mxu1 %v8706_v31 }
 0x6ff   : > { %5498 = vmatpush.bf16.msra.mxu0 %v8730_v56 }
 0x700   : > { %5471 = vmatpush.bf16.msrb.mxu2 %v8715_v4 }
 0x701   : > { %5484 = vmatpush.bf16.msra.mxu3 %v8723_v5 }
 0x702   : > { %5460 = vmatpush.bf16.msra.mxu1 %v8705_v6 }
 0x703   : > { %v4193_v13 = vpop.f32.mrf.mxu1  ;;  %5499 = vmatpush.bf16.msra.mxu0 %v8729_v7 }
 0x704   : > { %v4194_v15 = vadd.f32 %v4193_v13, %v3368_v8  ;;  %5472 = vmatpush.bf16.msrb.mxu2 %v8714_v0 }
 0x705   : > { %5485 = vmatpush.bf16.msra.mxu3 %v8722_v11 }
 0x706   : > { %v4232_v16 = vpop.f32.mrf.mxu0  ;;  %v4248_v21 = vmax.f32 %v4194_v15, 0.0  ;;  %5461 = vmatpush.bf16.msra.mxu1 %v8704_v12 }
 0x707   : > { %v4233_v19 = vadd.f32 %v4232_v16, %v3371_v10  ;;  %5500 = vmatpush.bf16.msra.mxu0 %v8728_v14 }
 0x708   : > { %v4264_v59 = vpack.c.bf16 %v4248_v21, %v4248_v21  ;;  %5473 = vmatpush.bf16.msrb.mxu2 %v8713_v17 }
 0x709   : > { %v4251_v23 = vmax.f32 %v4233_v19, 0.0  ;;  %v4206_v25 = vpop.f32.mrf.mxu2  ;;  %5486 = vmatpush.bf16.msra.mxu3 %v8721_v20 }
 0x70a   : > { %v4207_v30 = vadd.f32 %v4206_v25, %v3369_v22  ;;  %v4219_v32 = vpop.f32.mrf.mxu3  ;;  %5462 = vmatmul.bf16.vlgmr.msra.gmra.mxu1 %v4264_v59 }
 0x70b   : > { %v4267_v27 = vpack.c.bf16 %v4251_v23, %v4251_v23  ;;  %v4220_v33 = vadd.f32 %v4219_v32, %v3370_v24  ;;  %v4195_v34 = vpop.f32.mrf.mxu1 }
 0x70c   : > { %v4249_v9 = vmax.f32 %v4207_v30, 0.0  ;;  %5474 = vmatpush.bf16.msrb.mxu2 %v8712_v26  ;;  %v5553_v30 = vld [vmem:[%s11531_s13 + $0x70] sm:$0xff] }
 0x70d   : > { %5501 = vmatmul.bf16.vlgmr.msra.gmra.mxu0 %v4267_v27  ;;  %v4250_v36 = vmax.f32 %v4220_v33, 0.0  ;;  %5487 = vmatpush.bf16.msra.mxu3 %v8720_v29  ;;  %v5554_v29 = vld [vmem:[%s11531_s13 + $0x78] sm:$0xff] }
 0x70e   : > { %v4234_v35 = vpop.f32.mrf.mxu0  ;;  %v4265_v37 = vpack.c.bf16 %v4249_v9, %v4249_v9  ;;  %5559 = vmatpush.msrb.mxu1 %v5554_v29 }
 0x70f   : > { %v4266_v38 = vpack.c.bf16 %v4250_v36, %v4250_v36  ;;  %v5551_v35 = vld [vmem:[%s11531_s13 + $0x60] sm:$0xff]  ;;  %v5550_v36 = vld [vmem:[%s11531_s13 + $0x58] sm:$0xff] }
 0x710   : > { %5475 = vmatmul.bf16.vlgmr.msrb.gmra.mxu2 %v4265_v37  ;;  %5560 = vmatpush.msrb.mxu1 %v5553_v30  ;;  %v5549_v37 = vld [vmem:[%s11531_s13 + $0x50] sm:$0xff] }
 0x711   : > { %5488 = vmatmul.bf16.vlgmr.msra.gmra.mxu3 %v4266_v38  ;;  %v4208_v39 = vpop.f32.mrf.mxu2  ;;  %v5548_v38 = vld [vmem:[%s11531_s13 + $0x48] sm:$0xff] }
 0x712   : > { %v4221_v40 = vpop.f32.mrf.mxu3  ;;  %v5547_v39 = vld [vmem:[%s11531_s13 + $0x40] sm:$0xff] }
 0x713   : > { %v5546_v40 = vld [vmem:[%s11531_s13 + $0x38] sm:$0xff] }
 0x746   : > { %v5307_v41 = vpop.f32.mrf.mxu1 }
 0x747   : > { %v5346_v42 = vpop.f32.mrf.mxu0  ;;  %v5308_v58 = vadd.f32 %v8754_v57, %v5307_v41  ;;  %v5545_v41 = vld [vmem:[%s11531_s13 + $0x30] sm:$0xff]  ;;  %v5583_v57 = vld [vmem:[%s11533_s15 + $0x18] sm:$0xff] }
 0x74e   : > { %v5309_v43 = vpop.f32.mrf.mxu1 }
 0x74f   : > { %v5348_v44 = vpop.f32.mrf.mxu0  ;;  %v5543_v43 = vld [vmem:[%s11531_s13 + $0x20] sm:$0xff] }
 0x750   : > { %v5542_v44 = vld [vmem:[%s11531_s13 + $0x18] sm:$0xff] }
 0x752   : > { %v5320_v45 = vpop.f32.mrf.mxu2 }
 0x753   : > { %v5333_v46 = vpop.f32.mrf.mxu3  ;;  %v5321_v61 = vadd.f32 %v5320_v45, %v5308_v58  ;;  %v5541_v45 = vld [vmem:[%s11531_s13 + $0x10] sm:$0xff] }
 0x754   : > { %v5582_v58 = vld [vmem:[%s11533_s15 + $0x10] sm:$0xff] }
 0x755   : > { %v5334_v1 = vadd.f32 %v5333_v46, %v5321_v61  ;;  %v5540_v46 = vld [vmem:[%s11531_s13 + $0x8] sm:$0xff] }
 0x756   : > { %v5359_v47 = vpop.f32.mrf.mxu1 }
 0x757   : > { %v5398_v48 = vpop.f32.mrf.mxu0  ;;  %v5347_v31 = vadd.f32 %v5346_v42, %v5334_v1  ;;  %v5544_v42 = vld [vmem:[%s11531_s13 + $0x28] sm:$0xff]  ;;  %v8755_v1 = vld [vmem:[%s11529_s11 + $0x1] ss:$0 sm:$0xff] }
 0x759   : > { %v5360_v5 = vadd.f32 %v5359_v47, %v5347_v31  ;;  %v5539_v47 = vld [vmem:[%s11531_s13] sm:$0xff] }
 0x75a   : > { %v5322_v49 = vpop.f32.mrf.mxu2  ;;  %v8756_v31 = vld [vmem:[%s11530_s12 + $0x1] ss:$0 sm:$0xff] }
 0x75b   : > { %v5335_v50 = vpop.f32.mrf.mxu3  ;;  %v5586_v49 = vld [vmem:[%s11533_s15 + $0x30] sm:$0xff] }
 0x75c   : > { %v5585_v50 = vld [vmem:[%s11533_s15 + $0x28] sm:$0xff] }
 0x75e   : > { %v5361_v51 = vpop.f32.mrf.mxu1 }
 0x75f   : > { %v5400_v52 = vpop.f32.mrf.mxu0 }
 0x762   : > { %v5372_v53 = vpop.f32.mrf.mxu2 }
 0x763   : > { %v5385_v54 = vpop.f32.mrf.mxu3  ;;  %v5373_v6 = vadd.f32 %v5372_v53, %v5360_v5  ;;  %v5584_v53 = vld [vmem:[%s11533_s15 + $0x20] sm:$0xff]  ;;  %v5581_v5 = vld [vmem:[%s11533_s15 + $0x8] sm:$0xff] }
 0x765   : > { %v5386_v7 = vadd.f32 %v5385_v54, %v5373_v6  ;;  %v5580_v6 = vld [vmem:[%s11533_s15] sm:$0xff] }
 0x767   : > { %v5399_v10 = vadd.f32 %v5398_v48, %v5386_v7  ;;  %v5587_v48 = vld [vmem:[%s11533_s15 + $0x38] sm:$0xff]  ;;  %v8757_v7 = vld [vmem:[%s11532_s14] ss:$0 sm:$0xff] }
 0x768   : > { %v5411_v60 = vpop.f32.mrf.mxu1  ;;  %5604 = vmatpush.msra.mxu2 %v5587_v48 }
 0x769   : > { %v5412_v11 = vadd.f32 %v5411_v60, %v5399_v10 }
 0x76a   : > { %v5450_v55 = vpop.f32.mrf.mxu0  ;;  %v5374_v62 = vpop.f32.mrf.mxu2  ;;  %5605 = vmatpush.msra.mxu2 %v5586_v49 }
 0x76b   : > { %v5387_v63 = vpop.f32.mrf.mxu3 }
 0x76c   : > { %5606 = vmatpush.msra.mxu2 %v5585_v50 }
 0x76e   : > { %5607 = vmatpush.msra.mxu2 %v5584_v53 }
 0x770   : > { %v5413_v2 = vpop.f32.mrf.mxu1  ;;  %5608 = vmatpush.msra.mxu2 %v5583_v57 }
 0x772   : > { %v5452_v3 = vpop.f32.mrf.mxu0  ;;  %5609 = vmatpush.msra.mxu2 %v5582_v58 }
 0x774   : > { %v5424_v56 = vpop.f32.mrf.mxu2  ;;  %5610 = vmatpush.msra.mxu2 %v5581_v5 }
 0x775   : > { %v5425_v13 = vadd.f32 %v5424_v56, %v5412_v11  ;;  %v8758_v11 = vld [vmem:[%s11534_s16] ss:$0 sm:$0xff] }
 0x776   : > { %v5437_v4 = vpop.f32.mrf.mxu3  ;;  %5611 = vmatpush.msra.mxu2 %v5580_v6 }
 0x777   : > { %v5438_v15 = vadd.f32 %v5437_v4, %v5425_v13 }
 0x779   : > { %v5451_v17 = vadd.f32 %v5450_v55, %v5438_v15 }
 0x77c   : > { %v5426_v8 = vpop.f32.mrf.mxu2 }
 0x77e   : > { %v5439_v0 = vpop.f32.mrf.mxu3 }
 0x787   : > { %v5463_v12 = vpop.f32.mrf.mxu1 }
 0x788   : > { %v5464_v20 = vadd.f32 %v5463_v12, %v5451_v17 }
 0x78a   : > { %v5502_v14 = vpop.f32.mrf.mxu0 }
 0x78f   : > { %v5465_v16 = vpop.f32.mrf.mxu1 }
 0x792   : > { %v5504_v19 = vpop.f32.mrf.mxu0 }
 0x793   : > { %v5476_v21 = vpop.f32.mrf.mxu2 }
 0x794   : > { %v5477_v22 = vadd.f32 %v5476_v21, %v5464_v20  ;;  %v5489_v23 = vpop.f32.mrf.mxu3 }
 0x796   : > { %v5490_v24 = vadd.f32 %v5489_v23, %v5477_v22 }
 0x798   : > { %v5503_v59 = vadd.f32 %v5502_v14, %v5490_v24 }
 0x79a   : > { %v5506_v26 = vadd.f32 %v5503_v59, %v10619_v28  ;;  %v5552_v28 = vld [vmem:[%s11531_s13 + $0x68] sm:$0xff] }
 0x79b   : > { %v5478_v27 = vpop.f32.mrf.mxu2  ;;  %5561 = vmatpush.msrb.mxu1 %v5552_v28 }
 0x79c   : > { %v5491_v25 = vpop.f32.mrf.mxu3  ;;  %5511 = vadd.xlane.f32.xlu0 %v5506_v26 }
 0x79d   : > { %5562 = vmatpush.msrb.mxu1 %v5551_v35 }
 0x79f   : > { %5563 = vmatpush.msrb.mxu1 %v5550_v36 }
 0x7a1   : > { %5564 = vmatpush.msrb.mxu1 %v5549_v37 }
 0x7a3   : > { %5565 = vmatpush.msrb.mxu1 %v5548_v38 }
 0x7a5   : > { %5566 = vmatpush.msrb.mxu1 %v5547_v39 }
 0x7a7   : > { %5567 = vmatpush.msrb.mxu1 %v5546_v40 }
 0x7a9   : > { %5568 = vmatpush.msrb.mxu1 %v5545_v41 }
 0x7ab   : > { %5569 = vmatpush.msrb.mxu1 %v5544_v42 }
 0x7ad   : > { %5570 = vmatpush.msrb.mxu1 %v5543_v43 }
 0x7af   : > { %5571 = vmatpush.msrb.mxu1 %v5542_v44 }
 0x7b1   : > { %5572 = vmatpush.msrb.mxu1 %v5541_v45 }
 0x7b3   : > { %5573 = vmatpush.msrb.mxu1 %v5540_v46 }
 0x7b5   : > { %5574 = vmatpush.msrb.mxu1 %v5539_v47 }
 0x80f   : > { %v5512_v32 = vpop.xlane.xlu0 %5511 }
 0x810   : > { %v5513_v33 = vmul.f32 %v5512_v32, %v9116_v18 }
 0x812   : > { %v5514_v34 = vsub.f32 %v5506_v26, %v5513_v33 }
 0x814   : > { %v5515_v9 = vmul.f32 %v5514_v34, %v5514_v34 }
 0x816   : > { %5516 = vadd.xlane.f32.xlu1 %v5515_v9 }
 0x889   : > { %v5517_v51 = vpop.xlane.xlu1 %5516 }
 0x88a   : > { %v5518_v52 = vmul.f32 %v5517_v51, %v9116_v18 }
 0x88c   : > { %v5519_v54 = vadd.f32 1e-05, %v5518_v52 }
 0x88e   : > { %8779 = vrsqrt.f32 %v5519_v54  ;;  %vm5526_vm5 = vweird.f32 %v5519_v54 }
 0x894   : > { %v8780_v60 = vpop.eup %8779 }
 0x895   : > { %v5521_v18 = vmul.f32 %v8780_v60, %v5519_v54  ;;  %vm5527_vm4 = vweird.f32 %v8780_v60 }
 0x896   : > { %vm5528_vm6 = vmor %vm5526_vm5, %vm5527_vm4 }
 0x897   : > { %v5522_v55 = vmul.f32 %v8780_v60, %v5521_v18 }
 0x899   : > { %v5523_v61 = vmul.f32 0.5, %v5522_v55 }
 0x89b   : > { %v5524_v62 = vsub.f32 1.5, %v5523_v61 }
 0x89d   : > { %v5525_v63 = vmul.f32 %v8780_v60, %v5524_v62 }
 0x89f   : > { %v5529_v2 = vsel %vm5528_vm6, %v8780_v60, %v5525_v63 }
 0x8a0   : > { %v5530_v3 = vmul.f32 %v5529_v2, %v5514_v34 }
 0x8a2   : > { %v5534_v56 = vmul.f32 %v8755_v1, %v5530_v3 }
 0x8a4   : > { %v5538_v4 = vadd.f32 %v8756_v31, %v5534_v56 }
 0x8a6   : > { %5575 = vmatmul.f32.vlgmr.msrb.gmra.mxu1 %v5538_v4 }
 0x923   : > { %v5576_v8 = vpop.f32.mrf.mxu1 }
 0x924   : > { %v5577_v0 = vadd.f32 %v8757_v7, %v5576_v8 }
 0x926   : > { %v5579_v10 = vmax.f32 %v5577_v0, 0.0 }
 0x928   : > { %8205 = vmatmul.msk.f32.vlgmr.msra.gmra.mxu2 %vm5592_vm7, %v5579_v10 }
 0x9ab   : > { %v5613_v12 = vpop.f32.mrf.mxu2 }
 0x9ac   : > { %v5614_v13 = vadd.f32 %v8758_v11, %v5613_v12 }
 0x9ae   : > { %5616 = vst [vmem:[%s543_s30] sm:$0xff] %v5614_v13 }
 0x9af PF: > { %s27_s24 = sadd.s32 1, %s8787_s24  }
 0x9b0   : > { %p24_p4 = scmp.ge.s32.totalorder %s27_s24, 4  }
 0x9b2   :  { %26 = sbr.rel (!%p24_p4) target bundleno = 3 (0x3), region = 128 }

</bundles_post_ra>
